<compile_context>
chip_gen: v6e
topology: v6e:2x2x1
jax: 0.10.0
libtpu: 0.0.40
codegen_flags: <defaults>
</compile_context>

<pallas_src>
import functools

import jax
import jax.numpy as jnp
from jax.experimental import pallas as pl
from jax.experimental.pallas import tpu as pltpu

_BN_EPS = 1e-5
_LANE = 128


def _round_up(x, m):
    return ((x + m - 1) // m) * m


# ------------------------------ fused kernel -------------------------------

def _basicblock_kernel(x_ref, w1_ref, s1_ref, b1_ref,
                       w2_ref, s2_ref, b2_ref, *rest,
                       stride, out_hw, padf, has_sc_conv):
    """conv1(3x3,s)+bn1+relu -> VMEM frame -> conv2(3x3,1)+bn2 + shortcut + relu.

    x_ref : (1, s*s, HF*WF, Cin_p) bf16  phase-split, zero-padded input frames
    w*_ref: (9, Ci, Co) bf16             plain conv weights (tap-major)
    s*/b* : (1, Co) f32                  BatchNorm scale / bias (f32 epilogue)
    rest  : [ws (Cin_p,Co) bf16, ss, bs] only when the shortcut is conv1x1+BN,
            then o_ref (1, Ho*WF, Co) f32 and y1_ref (VMEM scratch, bf16).
    """
    if has_sc_conv:
        ws_ref, ss_ref, bs_ref, o_ref, y1_ref = rest
    else:
        o_ref, y1_ref = rest

    s = stride
    ho, wo = out_hw
    wf = wo + 2                       # padded frame width (== conv2 halo frame)
    cm = w1_ref.shape[-1]
    m1 = ho * wf - 2                  # rows spanning every valid conv1 output
    m2 = ho * wf                      # conv2 / output rows (full padded width)

    # ---- conv1 (stride s) + bn1 + relu, written into the scratch frame ----
    acc1 = jnp.zeros((m1, cm), jnp.float32)
    for dy in range(3):
        for dx in range(3):
            p = (dy % s) * s + (dx % s)                 # phase index
            off = (dy // s) * wf + (dx // s)            # contiguous row window
            acc1 = acc1 + jnp.dot(x_ref[0, p, pl.ds(off, m1), :],
                                  w1_ref[dy * 3 + dx],
                                  preferred_element_type=jnp.float32)
    y1 = jnp.maximum(acc1 * s1_ref[...] + b1_ref[...], 0.0)
    # zero the frame columns that act as conv2's left/right halo
    col = (jax.lax.broadcasted_iota(jnp.int32, (m1, 1), 0) + 1) % wf
    y1 = jnp.where((col >= 1) & (col <= wo), y1, 0.0).astype(y1_ref.dtype)

    data0 = padf + wf + 1             # scratch row holding frame position (1,1)
    tail = y1_ref.shape[0] - (data0 + m1)
    y1_ref[pl.ds(0, data0), :] = jnp.zeros((data0, cm), y1_ref.dtype)
    y1_ref[pl.ds(data0, m1), :] = y1
    y1_ref[pl.ds(data0 + m1, tail), :] = jnp.zeros((tail, cm), y1_ref.dtype)

    # ---- conv2 (stride 1) + bn2 ----
    acc2 = jnp.zeros((m2, cm), jnp.float32)
    for dy in range(3):
        for dx in range(3):
            off = padf + dy * wf + dx
            acc2 = acc2 + jnp.dot(y1_ref[pl.ds(off, m2), :],
                                  w2_ref[dy * 3 + dx],
                                  preferred_element_type=jnp.float32)
    out = acc2 * s2_ref[...] + b2_ref[...]

    # ---- shortcut (fused; centre-tap window of the original input) ----
    sc_off = (wf + 1) if s == 1 else 0
    sc_phase = (1 % s) * s + (1 % s)
    sc = x_ref[0, sc_phase, pl.ds(sc_off, m2), :]
    if has_sc_conv:
        res = jnp.dot(sc, ws_ref[...], preferred_element_type=jnp.float32)
        out = out + (res * ss_ref[...] + bs_ref[...])
    else:
        out = out + sc.astype(jnp.float32)       # identity: plain f32 add

    o_ref[0] = jnp.maximum(out, 0.0).astype(o_ref.dtype)


# ------------------------------ JAX wrapper --------------------------------

def _pad_last(x, to):
    c = x.shape[-1]
    if c == to:
        return x
    return jnp.pad(x, [(0, 0)] * (x.ndim - 1) + [(0, to - c)])


def _pad_last2(x, rows, cols):
    r, c = x.shape[-2:]
    return jnp.pad(x, [(0, 0)] * (x.ndim - 2) + [(0, rows - r), (0, cols - c)])


def _phase_split_frames(x_nhwc, stride, out_hw):
    """Zero-pad (conv pad=1) and split into stride x stride phases, each a
    zero-padded (Ho+2, Wo+2) frame, flattened so every conv tap in-kernel is a
    contiguous row window:
        result[n, a*s+b, ih*WF + iw, c] == x_pad[n, s*ih + a, s*iw + b, c]
    """
    n, h, w, c = x_nhwc.shape
    s = stride
    ho, wo = out_hw
    hf, wf = ho + 2, wo + 2
    xp = jnp.pad(x_nhwc, ((0, 0), (1, s * hf - h - 1), (1, s * wf - w - 1), (0, 0)))
    xp = xp.reshape(n, hf, s, wf, s, c)
    xp = jnp.transpose(xp, (0, 2, 4, 1, 3, 5))        # (n, s, s, hf, wf, c)
    return xp.reshape(n, s * s, hf * wf, c)


def basicblock_forward(x_nchw, params, stride):
    """Pallas BasicBlock.forward. Input/output are NCHW float32 (PyTorch layout)."""
    # TODO(synk): training-mode BatchNorm (batch statistics / running-stat
    # updates) has no in-kernel equivalent here; BN uses running stats
    # (inference mode), applied as an f32 scale+bias epilogue.
    x = jnp.transpose(x_nchw, (0, 2, 3, 1))                   # -> NHWC
    n, h, w, cin = x.shape
    planes = params["conv1_w"].shape[0]
    cin_p = _round_up(cin, _LANE)
    cm_p = _round_up(planes, _LANE)

    ho = (h - 1) // stride + 1
    wo = (w - 1) // stride + 1
    hf, wf = ho + 2, wo + 2
    m2 = ho * wf
    padf = (-(wf + 1)) % 16                     # align scratch data origin (bf16)
    s_rows = _round_up(padf + hf * wf + 2, 16)  # keeps conv2 windows in bounds
    has_sc_conv = (stride != 1) or (cin != planes)

    def prep_w3x3(wt, ci_p, co_p):              # (O,I,3,3) -> (9, Ci_p, Co_p) bf16
        w9 = jnp.transpose(wt, (2, 3, 1, 0)).reshape(9, wt.shape[1], wt.shape[0])
        return _pad_last2(w9, ci_p, co_p).astype(jnp.bfloat16)

    def bn_scale_bias(bn, co_p):                # f32 epilogue params
        g, b, m, v = bn
        scale = g / jnp.sqrt(v + _BN_EPS)
        bias = b - m * scale
        pad = (0, co_p - scale.shape[0])
        return (jnp.pad(scale, pad)[None, :].astype(jnp.float32),
                jnp.pad(bias, pad)[None, :].astype(jnp.float32))

    w1 = prep_w3x3(params["conv1_w"], cin_p, cm_p)
    s1, b1 = bn_scale_bias(params["bn1"], cm_p)
    w2 = prep_w3x3(params["conv2_w"], cm_p, cm_p)
    s2, b2 = bn_scale_bias(params["bn2"], cm_p)

    # bf16, channel-padded, phase-split padded input frames (one HBM pass).
    x_ph = _phase_split_frames(_pad_last(x, cin_p).astype(jnp.bfloat16),
                               stride, (ho, wo))              # (n, s*s, hf*wf, cin_p)

    args = [x_ph, w1, s1, b1, w2, s2, b2]
    in_specs = [
        pl.BlockSpec((1, stride * stride, hf * wf, cin_p), lambda i: (i, 0, 0, 0)),
        pl.BlockSpec((9, cin_p, cm_p), lambda i: (0, 0, 0)),
        pl.BlockSpec((1, cm_p), lambda i: (0, 0)),
        pl.BlockSpec((1, cm_p), lambda i: (0, 0)),
        pl.BlockSpec((9, cm_p, cm_p), lambda i: (0, 0, 0)),
        pl.BlockSpec((1, cm_p), lambda i: (0, 0)),
        pl.BlockSpec((1, cm_p), lambda i: (0, 0)),
    ]
    if has_sc_conv:
        ws = _pad_last2(params["sc_w"][:, :, 0, 0].T, cin_p, cm_p).astype(jnp.bfloat16)
        ss, bs = bn_scale_bias(params["sc_bn"], cm_p)
        args += [ws, ss, bs]
        in_specs += [pl.BlockSpec((cin_p, cm_p), lambda i: (0, 0)),
                     pl.BlockSpec((1, cm_p), lambda i: (0, 0)),
                     pl.BlockSpec((1, cm_p), lambda i: (0, 0))]

    # VMEM budget from the actual block / scratch sizes (+ temporary headroom).
    blk_in_bytes = (stride * stride * hf * wf * cin_p * 2
                    + 9 * cin_p * cm_p * 2 + 9 * cm_p * cm_p * 2
                    + (cin_p * cm_p * 2 if has_sc_conv else 0)
                    + (6 if has_sc_conv else 4) * cm_p * 4)
    blk_out_bytes = m2 * cm_p * 4
    scratch_bytes = s_rows * cm_p * 2
    vmem_limit = (2 * (blk_in_bytes + blk_out_bytes) + scratch_bytes
                  + 8 * m2 * cm_p * 4 + (4 << 20))
    vmem_limit = int(min(max(vmem_limit, 16 << 20), 100 << 20))

    kernel = functools.partial(_basicblock_kernel, stride=stride, out_hw=(ho, wo),
                               padf=padf, has_sc_conv=has_sc_conv)
    out = pl.pallas_call(
        kernel,
        out_shape=jax.ShapeDtypeStruct((n, m2, cm_p), jnp.float32),
        grid_spec=pltpu.PrefetchScalarGridSpec(
            num_scalar_prefetch=0,
            grid=(n,),                                   # one image per grid step
            in_specs=in_specs,
            out_specs=pl.BlockSpec((1, m2, cm_p), lambda i: (i, 0, 0)),
            scratch_shapes=[pltpu.VMEM((s_rows, cm_p), jnp.bfloat16)],
        ),
        compiler_params=pltpu.CompilerParams(
            dimension_semantics=("parallel",),
            vmem_limit_bytes=vmem_limit),
    )(*args)

    # TODO(synk): between stacked BasicBlocks, keep this channel-padded NHWC
    # layout and only slice/transpose to NCHW at the network boundary.
    out = out.reshape(n, ho, wf, cm_p)[:, :, :wo, :planes]
    return jnp.transpose(out, (0, 3, 1, 2))              # -> NCHW


# ---------------------------- reference (lax) -------------------------------

def _ref_basicblock(x, params, stride):
    def conv(x, w, s=1, p=0):
        return jax.lax.conv_general_dilated(
            x, w, (s, s), [(p, p), (p, p)],
            dimension_numbers=("NCHW", "OIHW", "NCHW"))

    def bn(x, bnp):
        g, b, m, v = bnp
        sc = g / jnp.sqrt(v + _BN_EPS)
        return x * sc[None, :, None, None] + (b - m * sc)[None, :, None, None]

    out = jax.nn.relu(bn(conv(x, params["conv1_w"], stride, 1), params["bn1"]))
    out = bn(conv(out, params["conv2_w"], 1, 1), params["bn2"])
    planes = params["conv2_w"].shape[0]
    if stride != 1 or x.shape[1] != planes:
        sc = bn(conv(x, params["sc_w"], stride, 0), params["sc_bn"])
    else:
        sc = x
    return jax.nn.relu(out + sc)


# --------------------------------- main -------------------------------------

def _init_params(key, in_planes, planes):
    ks = jax.random.split(key, 6)

    def conv_w(k, shape):
        return 0.1 * jax.random.normal(k, shape, dtype=jnp.float32)

    def bn_p(k, c):
        k1, k2, k3, k4 = jax.random.split(k, 4)
        gamma = 1.0 + 0.1 * jax.random.normal(k1, (c,), dtype=jnp.float32)
        beta = 0.1 * jax.random.normal(k2, (c,), dtype=jnp.float32)
        mean = 0.1 * jax.random.normal(k3, (c,), dtype=jnp.float32)
        var = 0.5 + 0.1 * jnp.abs(jax.random.normal(k4, (c,), dtype=jnp.float32))
        return (gamma, beta, mean, var)

    return {
        "conv1_w": conv_w(ks[0], (planes, in_planes, 3, 3)),
        "bn1": bn_p(ks[1], planes),
        "conv2_w": conv_w(ks[2], (planes, planes, 3, 3)),
        "bn2": bn_p(ks[3], planes),
        "sc_w": conv_w(ks[4], (planes, in_planes, 1, 1)),
        "sc_bn": bn_p(ks[5], planes),
    }


def _check(x, params, stride, atol, rtol):
    fwd = jax.jit(basicblock_forward, static_argnums=2)
    out = jax.block_until_ready(fwd(x, params, stride))
    ref = jax.block_until_ready(_ref_basicblock(x, params, stride))
    assert out.shape == ref.shape, (out.shape, ref.shape)
    max_err = float(jnp.max(jnp.abs(out - ref)))
    assert jnp.allclose(out, ref, atol=atol, rtol=rtol), max_err
    return out


if __name__ == "__main__":
    key = jax.random.PRNGKey(0)
    kx1, kp1, kx2, kp2 = jax.random.split(key, 4)

    # 1) strided block with conv1x1+BN shortcut (in_planes != planes, stride 2)
    in_planes, planes, stride = 4, 8, 2
    N, H, W = 2, 16, 16
    x1 = jax.random.normal(kx1, (N, in_planes, H, W), dtype=jnp.float32)
    p1 = _init_params(kp1, in_planes, planes)
    o1 = _check(x1, p1, stride, atol=3e-2, rtol=1e-2)
    assert o1.shape == (N, planes, H // stride, W // stride)

    # 2) identity-shortcut block (in_planes == planes, stride 1)
    x2 = jax.random.normal(kx2, (N, planes, H, W), dtype=jnp.float32)
    p2 = _init_params(kp2, planes, planes)
    o2 = _check(x2, p2, 1, atol=3e-2, rtol=1e-2)
    assert o2.shape == (N, planes, H, W)

    print("KERNEL_OK")
</pallas_src>

<mosaic_0001>
module attributes {stable_mosaic.version = 11 : i64} {
  func.func @_basicblock_kernel(%arg0: i32, %arg1: memref<1x4x100x128xbf16, #tpu.memory_space<vmem>>, %arg2: memref<9x128x128xbf16, #tpu.memory_space<vmem>>, %arg3: memref<1x128xf32, #tpu.memory_space<vmem>>, %arg4: memref<1x128xf32, #tpu.memory_space<vmem>>, %arg5: memref<9x128x128xbf16, #tpu.memory_space<vmem>>, %arg6: memref<1x128xf32, #tpu.memory_space<vmem>>, %arg7: memref<1x128xf32, #tpu.memory_space<vmem>>, %arg8: memref<128x128xbf16, #tpu.memory_space<vmem>>, %arg9: memref<1x128xf32, #tpu.memory_space<vmem>>, %arg10: memref<1x128xf32, #tpu.memory_space<vmem>>, %arg11: memref<1x80x128xf32, #tpu.memory_space<vmem>>, %arg12: memref<112x128xbf16, #tpu.memory_space<vmem>>) attributes {dimension_semantics = [#tpu.dimension_semantics<parallel>], iteration_bounds = array<i64: 2>, scalar_prefetch = 0 : i64, scratch_operands = 1 : i64, tpu.core_type = #tpu.core_type<tc>, window_params = [{transform_indices = @transform_0, window_bounds = array<i64: 1, 4, 100, 128>}, {pipeline_mode = #tpu.pipeline_mode<synchronous>, transform_indices = @transform_1, window_bounds = array<i64: 9, 128, 128>}, {pipeline_mode = #tpu.pipeline_mode<synchronous>, transform_indices = @transform_2, window_bounds = array<i64: 1, 128>}, {pipeline_mode = #tpu.pipeline_mode<synchronous>, transform_indices = @transform_3, window_bounds = array<i64: 1, 128>}, {pipeline_mode = #tpu.pipeline_mode<synchronous>, transform_indices = @transform_4, window_bounds = array<i64: 9, 128, 128>}, {pipeline_mode = #tpu.pipeline_mode<synchronous>, transform_indices = @transform_5, window_bounds = array<i64: 1, 128>}, {pipeline_mode = #tpu.pipeline_mode<synchronous>, transform_indices = @transform_6, window_bounds = array<i64: 1, 128>}, {pipeline_mode = #tpu.pipeline_mode<synchronous>, transform_indices = @transform_7, window_bounds = array<i64: 128, 128>}, {pipeline_mode = #tpu.pipeline_mode<synchronous>, transform_indices = @transform_8, window_bounds = array<i64: 1, 128>}, {pipeline_mode = #tpu.pipeline_mode<synchronous>, transform_indices = @transform_9, window_bounds = array<i64: 1, 128>}, {transform_indices = @transform_10, window_bounds = array<i64: 1, 80, 128>}]} {
    %cst = arith.constant 0.000000e+00 : f32
    %0 = vector.broadcast %cst : f32 to vector<78x128xf32>
    %c0 = arith.constant 0 : index
    %c0_0 = arith.constant 0 : index
    %c0_1 = arith.constant 0 : index
    %c0_2 = arith.constant 0 : index
    %1 = vector.load %arg1[%c0, %c0_0, %c0_1, %c0_2] : memref<1x4x100x128xbf16, #tpu.memory_space<vmem>>, vector<1x1x78x128xbf16>
    %2 = vector.shape_cast %1 : vector<1x1x78x128xbf16> to vector<78x128xbf16>
    %c0_3 = arith.constant 0 : index
    %c0_4 = arith.constant 0 : index
    %c0_5 = arith.constant 0 : index
    %3 = vector.load %arg2[%c0_3, %c0_4, %c0_5] : memref<9x128x128xbf16, #tpu.memory_space<vmem>>, vector<1x128x128xbf16>
    %4 = vector.shape_cast %3 : vector<1x128x128xbf16> to vector<128x128xbf16>
    %cst_6 = arith.constant dense<0.000000e+00> : vector<78x128xf32>
    %5 = tpu.matmul %2, %4, %cst_6 {dimension_numbers = #tpu.dot_dimension_numbers<[1], [0], [0], [1], [0, 0, 1, 1], [], []>} : vector<78x128xbf16>, vector<128x128xbf16>, vector<78x128xf32> -> vector<78x128xf32>
    %6 = arith.addf %0, %5 : vector<78x128xf32>
    %c0_7 = arith.constant 0 : index
    %c1 = arith.constant 1 : index
    %c0_8 = arith.constant 0 : index
    %c0_9 = arith.constant 0 : index
    %7 = vector.load %arg1[%c0_7, %c1, %c0_8, %c0_9] : memref<1x4x100x128xbf16, #tpu.memory_space<vmem>>, vector<1x1x78x128xbf16>
    %8 = vector.shape_cast %7 : vector<1x1x78x128xbf16> to vector<78x128xbf16>
    %c1_10 = arith.constant 1 : index
    %c0_11 = arith.constant 0 : index
    %c0_12 = arith.constant 0 : index
    %9 = vector.load %arg2[%c1_10, %c0_11, %c0_12] : memref<9x128x128xbf16, #tpu.memory_space<vmem>>, vector<1x128x128xbf16>
    %10 = vector.shape_cast %9 : vector<1x128x128xbf16> to vector<128x128xbf16>
    %cst_13 = arith.constant dense<0.000000e+00> : vector<78x128xf32>
    %11 = tpu.matmul %8, %10, %cst_13 {dimension_numbers = #tpu.dot_dimension_numbers<[1], [0], [0], [1], [0, 0, 1, 1], [], []>} : vector<78x128xbf16>, vector<128x128xbf16>, vector<78x128xf32> -> vector<78x128xf32>
    %12 = arith.addf %6, %11 : vector<78x128xf32>
    %c0_14 = arith.constant 0 : index
    %c0_15 = arith.constant 0 : index
    %c1_16 = arith.constant 1 : index
    %c0_17 = arith.constant 0 : index
    %13 = vector.load %arg1[%c0_14, %c0_15, %c1_16, %c0_17] : memref<1x4x100x128xbf16, #tpu.memory_space<vmem>>, vector<1x1x78x128xbf16>
    %14 = vector.shape_cast %13 : vector<1x1x78x128xbf16> to vector<78x128xbf16>
    %c2 = arith.constant 2 : index
    %c0_18 = arith.constant 0 : index
    %c0_19 = arith.constant 0 : index
    %15 = vector.load %arg2[%c2, %c0_18, %c0_19] : memref<9x128x128xbf16, #tpu.memory_space<vmem>>, vector<1x128x128xbf16>
    %16 = vector.shape_cast %15 : vector<1x128x128xbf16> to vector<128x128xbf16>
    %cst_20 = arith.constant dense<0.000000e+00> : vector<78x128xf32>
    %17 = tpu.matmul %14, %16, %cst_20 {dimension_numbers = #tpu.dot_dimension_numbers<[1], [0], [0], [1], [0, 0, 1, 1], [], []>} : vector<78x128xbf16>, vector<128x128xbf16>, vector<78x128xf32> -> vector<78x128xf32>
    %18 = arith.addf %12, %17 : vector<78x128xf32>
    %c0_21 = arith.constant 0 : index
    %c2_22 = arith.constant 2 : index
    %c0_23 = arith.constant 0 : index
    %c0_24 = arith.constant 0 : index
    %19 = vector.load %arg1[%c0_21, %c2_22, %c0_23, %c0_24] : memref<1x4x100x128xbf16, #tpu.memory_space<vmem>>, vector<1x1x78x128xbf16>
    %20 = vector.shape_cast %19 : vector<1x1x78x128xbf16> to vector<78x128xbf16>
    %c3 = arith.constant 3 : index
    %c0_25 = arith.constant 0 : index
    %c0_26 = arith.constant 0 : index
    %21 = vector.load %arg2[%c3, %c0_25, %c0_26] : memref<9x128x128xbf16, #tpu.memory_space<vmem>>, vector<1x128x128xbf16>
    %22 = vector.shape_cast %21 : vector<1x128x128xbf16> to vector<128x128xbf16>
    %cst_27 = arith.constant dense<0.000000e+00> : vector<78x128xf32>
    %23 = tpu.matmul %20, %22, %cst_27 {dimension_numbers = #tpu.dot_dimension_numbers<[1], [0], [0], [1], [0, 0, 1, 1], [], []>} : vector<78x128xbf16>, vector<128x128xbf16>, vector<78x128xf32> -> vector<78x128xf32>
    %24 = arith.addf %18, %23 : vector<78x128xf32>
    %c0_28 = arith.constant 0 : index
    %c3_29 = arith.constant 3 : index
    %c0_30 = arith.constant 0 : index
    %c0_31 = arith.constant 0 : index
    %25 = vector.load %arg1[%c0_28, %c3_29, %c0_30, %c0_31] : memref<1x4x100x128xbf16, #tpu.memory_space<vmem>>, vector<1x1x78x128xbf16>
    %26 = vector.shape_cast %25 : vector<1x1x78x128xbf16> to vector<78x128xbf16>
    %c4 = arith.constant 4 : index
    %c0_32 = arith.constant 0 : index
    %c0_33 = arith.constant 0 : index
    %27 = vector.load %arg2[%c4, %c0_32, %c0_33] : memref<9x128x128xbf16, #tpu.memory_space<vmem>>, vector<1x128x128xbf16>
    %28 = vector.shape_cast %27 : vector<1x128x128xbf16> to vector<128x128xbf16>
    %cst_34 = arith.constant dense<0.000000e+00> : vector<78x128xf32>
    %29 = tpu.matmul %26, %28, %cst_34 {dimension_numbers = #tpu.dot_dimension_numbers<[1], [0], [0], [1], [0, 0, 1, 1], [], []>} : vector<78x128xbf16>, vector<128x128xbf16>, vector<78x128xf32> -> vector<78x128xf32>
    %30 = arith.addf %24, %29 : vector<78x128xf32>
    %c0_35 = arith.constant 0 : index
    %c2_36 = arith.constant 2 : index
    %c1_37 = arith.constant 1 : index
    %c0_38 = arith.constant 0 : index
    %31 = vector.load %arg1[%c0_35, %c2_36, %c1_37, %c0_38] : memref<1x4x100x128xbf16, #tpu.memory_space<vmem>>, vector<1x1x78x128xbf16>
    %32 = vector.shape_cast %31 : vector<1x1x78x128xbf16> to vector<78x128xbf16>
    %c5 = arith.constant 5 : index
    %c0_39 = arith.constant 0 : index
    %c0_40 = arith.constant 0 : index
    %33 = vector.load %arg2[%c5, %c0_39, %c0_40] : memref<9x128x128xbf16, #tpu.memory_space<vmem>>, vector<1x128x128xbf16>
    %34 = vector.shape_cast %33 : vector<1x128x128xbf16> to vector<128x128xbf16>
    %cst_41 = arith.constant dense<0.000000e+00> : vector<78x128xf32>
    %35 = tpu.matmul %32, %34, %cst_41 {dimension_numbers = #tpu.dot_dimension_numbers<[1], [0], [0], [1], [0, 0, 1, 1], [], []>} : vector<78x128xbf16>, vector<128x128xbf16>, vector<78x128xf32> -> vector<78x128xf32>
    %36 = arith.addf %30, %35 : vector<78x128xf32>
    %c0_42 = arith.constant 0 : index
    %c0_43 = arith.constant 0 : index
    %c10 = arith.constant 10 : index
    %c0_44 = arith.constant 0 : index
    %37 = vector.load %arg1[%c0_42, %c0_43, %c10, %c0_44] : memref<1x4x100x128xbf16, #tpu.memory_space<vmem>>, vector<1x1x78x128xbf16>
    %38 = vector.shape_cast %37 : vector<1x1x78x128xbf16> to vector<78x128xbf16>
    %c6 = arith.constant 6 : index
    %c0_45 = arith.constant 0 : index
    %c0_46 = arith.constant 0 : index
    %39 = vector.load %arg2[%c6, %c0_45, %c0_46] : memref<9x128x128xbf16, #tpu.memory_space<vmem>>, vector<1x128x128xbf16>
    %40 = vector.shape_cast %39 : vector<1x128x128xbf16> to vector<128x128xbf16>
    %cst_47 = arith.constant dense<0.000000e+00> : vector<78x128xf32>
    %41 = tpu.matmul %38, %40, %cst_47 {dimension_numbers = #tpu.dot_dimension_numbers<[1], [0], [0], [1], [0, 0, 1, 1], [], []>} : vector<78x128xbf16>, vector<128x128xbf16>, vector<78x128xf32> -> vector<78x128xf32>
    %42 = arith.addf %36, %41 : vector<78x128xf32>
    %c0_48 = arith.constant 0 : index
    %c1_49 = arith.constant 1 : index
    %c10_50 = arith.constant 10 : index
    %c0_51 = arith.constant 0 : index
    %43 = vector.load %arg1[%c0_48, %c1_49, %c10_50, %c0_51] : memref<1x4x100x128xbf16, #tpu.memory_space<vmem>>, vector<1x1x78x128xbf16>
    %44 = vector.shape_cast %43 : vector<1x1x78x128xbf16> to vector<78x128xbf16>
    %c7 = arith.constant 7 : index
    %c0_52 = arith.constant 0 : index
    %c0_53 = arith.constant 0 : index
    %45 = vector.load %arg2[%c7, %c0_52, %c0_53] : memref<9x128x128xbf16, #tpu.memory_space<vmem>>, vector<1x128x128xbf16>
    %46 = vector.shape_cast %45 : vector<1x128x128xbf16> to vector<128x128xbf16>
    %cst_54 = arith.constant dense<0.000000e+00> : vector<78x128xf32>
    %47 = tpu.matmul %44, %46, %cst_54 {dimension_numbers = #tpu.dot_dimension_numbers<[1], [0], [0], [1], [0, 0, 1, 1], [], []>} : vector<78x128xbf16>, vector<128x128xbf16>, vector<78x128xf32> -> vector<78x128xf32>
    %48 = arith.addf %42, %47 : vector<78x128xf32>
    %c0_55 = arith.constant 0 : index
    %c0_56 = arith.constant 0 : index
    %c11 = arith.constant 11 : index
    %c0_57 = arith.constant 0 : index
    %49 = vector.load %arg1[%c0_55, %c0_56, %c11, %c0_57] : memref<1x4x100x128xbf16, #tpu.memory_space<vmem>>, vector<1x1x78x128xbf16>
    %50 = vector.shape_cast %49 : vector<1x1x78x128xbf16> to vector<78x128xbf16>
    %c8 = arith.constant 8 : index
    %c0_58 = arith.constant 0 : index
    %c0_59 = arith.constant 0 : index
    %51 = vector.load %arg2[%c8, %c0_58, %c0_59] : memref<9x128x128xbf16, #tpu.memory_space<vmem>>, vector<1x128x128xbf16>
    %52 = vector.shape_cast %51 : vector<1x128x128xbf16> to vector<128x128xbf16>
    %cst_60 = arith.constant dense<0.000000e+00> : vector<78x128xf32>
    %53 = tpu.matmul %50, %52, %cst_60 {dimension_numbers = #tpu.dot_dimension_numbers<[1], [0], [0], [1], [0, 0, 1, 1], [], []>} : vector<78x128xbf16>, vector<128x128xbf16>, vector<78x128xf32> -> vector<78x128xf32>
    %54 = arith.addf %48, %53 : vector<78x128xf32>
    %c0_61 = arith.constant 0 : index
    %c0_62 = arith.constant 0 : index
    %55 = vector.load %arg3[%c0_61, %c0_62] : memref<1x128xf32, #tpu.memory_space<vmem>>, vector<1x128xf32>
    %56 = vector.broadcast %55 : vector<1x128xf32> to vector<78x128xf32>
    %57 = arith.mulf %54, %56 : vector<78x128xf32>
    %c0_63 = arith.constant 0 : index
    %c0_64 = arith.constant 0 : index
    %58 = vector.load %arg4[%c0_63, %c0_64] : memref<1x128xf32, #tpu.memory_space<vmem>>, vector<1x128xf32>
    %59 = vector.broadcast %58 : vector<1x128xf32> to vector<78x128xf32>
    %60 = arith.addf %57, %59 : vector<78x128xf32>
    %cst_65 = arith.constant 0.000000e+00 : f32
    %61 = vector.broadcast %cst_65 : f32 to vector<78x128xf32>
    %62 = arith.maximumf %60, %61 : vector<78x128xf32>
    %63 = tpu.iota {dimensions = array<i32: 0>} : vector<78x1xi32>
    %c1_i32 = arith.constant 1 : i32
    %64 = vector.broadcast %c1_i32 : i32 to vector<78x1xi32>
    %65 = arith.addi %63, %64 : vector<78x1xi32>
    %c10_i32 = arith.constant 10 : i32
    %c0_i32 = arith.constant 0 : i32
    %66 = arith.cmpi eq, %c10_i32, %c0_i32 : i32
    %c1_i32_66 = arith.constant 1 : i32
    %67 = arith.select %66, %c1_i32_66, %c10_i32 : i32
    %68 = vector.broadcast %67 : i32 to vector<78x1xi32>
    %69 = arith.remsi %65, %68 : vector<78x1xi32>
    %c0_i32_67 = arith.constant 0 : i32
    %70 = vector.broadcast %c0_i32_67 : i32 to vector<78x1xi32>
    %71 = arith.cmpi ne, %69, %70 : vector<78x1xi32>
    %c0_i32_68 = arith.constant 0 : i32
    %72 = vector.broadcast %c0_i32_68 : i32 to vector<78x1xi32>
    %73 = arith.cmpi slt, %69, %72 : vector<78x1xi32>
    %c0_i32_69 = arith.constant 0 : i32
    %74 = arith.cmpi slt, %67, %c0_i32_69 : i32
    %75 = vector.broadcast %74 : i1 to vector<78x1xi1>
    %76 = vector.broadcast %75 : vector<78x1xi1> to vector<78x1xi1>
    %77 = arith.xori %73, %76 : vector<78x1xi1>
    %78 = arith.andi %77, %71 : vector<78x1xi1>
    %79 = vector.broadcast %67 : i32 to vector<78x1xi32>
    %80 = arith.addi %69, %79 : vector<78x1xi32>
    %81 = arith.select %78, %80, %69 : vector<78x1xi1>, vector<78x1xi32>
    %c1_i32_70 = arith.constant 1 : i32
    %82 = vector.broadcast %c1_i32_70 : i32 to vector<78x1xi32>
    %83 = arith.cmpi sge, %81, %82 : vector<78x1xi32>
    %c8_i32 = arith.constant 8 : i32
    %84 = vector.broadcast %c8_i32 : i32 to vector<78x1xi32>
    %85 = arith.cmpi sle, %81, %84 : vector<78x1xi32>
    %86 = arith.andi %83, %85 : vector<78x1xi1>
    %cst_71 = arith.constant 0.000000e+00 : f32
    %87 = vector.shape_cast %86 : vector<78x1xi1> to vector<78x1xi1>
    %88 = vector.broadcast %87 : vector<78x1xi1> to vector<78x128xi1>
    %89 = vector.broadcast %cst_71 : f32 to vector<78x128xf32>
    %90 = arith.select %88, %62, %89 : vector<78x128xi1>, vector<78x128xf32>
    %91 = arith.truncf %90 : vector<78x128xf32> to vector<78x128xbf16>
    %cst_72 = arith.constant 0.000000e+00 : bf16
    %92 = vector.broadcast %cst_72 : bf16 to vector<16x128xbf16>
    %c0_73 = arith.constant 0 : index
    %c0_74 = arith.constant 0 : index
    %93 = vector.load %arg12[%c0_73, %c0_74] : memref<112x128xbf16, #tpu.memory_space<vmem>>, vector<16x128xbf16>
    tpu.vector_store %arg12[%c0_73, %c0_74], %92 {strides = array<i32>} : memref<112x128xbf16, #tpu.memory_space<vmem>>, vector<16x128xbf16>,
    %c16 = arith.constant 16 : index
    %c0_75 = arith.constant 0 : index
    %94 = vector.load %arg12[%c16, %c0_75] : memref<112x128xbf16, #tpu.memory_space<vmem>>, vector<78x128xbf16>
    tpu.vector_store %arg12[%c16, %c0_75], %91 {strides = array<i32>} : memref<112x128xbf16, #tpu.memory_space<vmem>>, vector<78x128xbf16>,
    %cst_76 = arith.constant 0.000000e+00 : bf16
    %95 = vector.broadcast %cst_76 : bf16 to vector<18x128xbf16>
    %c94 = arith.constant 94 : index
    %c0_77 = arith.constant 0 : index
    %96 = vector.load %arg12[%c94, %c0_77] : memref<112x128xbf16, #tpu.memory_space<vmem>>, vector<18x128xbf16>
    tpu.vector_store %arg12[%c94, %c0_77], %95 {strides = array<i32>} : memref<112x128xbf16, #tpu.memory_space<vmem>>, vector<18x128xbf16>,
    %cst_78 = arith.constant 0.000000e+00 : f32
    %97 = vector.broadcast %cst_78 : f32 to vector<80x128xf32>
    %c5_79 = arith.constant 5 : index
    %c0_80 = arith.constant 0 : index
    %98 = vector.load %arg12[%c5_79, %c0_80] : memref<112x128xbf16, #tpu.memory_space<vmem>>, vector<80x128xbf16>
    %c0_81 = arith.constant 0 : index
    %c0_82 = arith.constant 0 : index
    %c0_83 = arith.constant 0 : index
    %99 = vector.load %arg5[%c0_81, %c0_82, %c0_83] : memref<9x128x128xbf16, #tpu.memory_space<vmem>>, vector<1x128x128xbf16>
    %100 = vector.shape_cast %99 : vector<1x128x128xbf16> to vector<128x128xbf16>
    %cst_84 = arith.constant dense<0.000000e+00> : vector<80x128xf32>
    %101 = tpu.matmul %98, %100, %cst_84 {dimension_numbers = #tpu.dot_dimension_numbers<[1], [0], [0], [1], [0, 0, 1, 1], [], []>} : vector<80x128xbf16>, vector<128x128xbf16>, vector<80x128xf32> -> vector<80x128xf32>
    %102 = arith.addf %97, %101 : vector<80x128xf32>
    %c6_85 = arith.constant 6 : index
    %c0_86 = arith.constant 0 : index
    %103 = vector.load %arg12[%c6_85, %c0_86] : memref<112x128xbf16, #tpu.memory_space<vmem>>, vector<80x128xbf16>
    %c1_87 = arith.constant 1 : index
    %c0_88 = arith.constant 0 : index
    %c0_89 = arith.constant 0 : index
    %104 = vector.load %arg5[%c1_87, %c0_88, %c0_89] : memref<9x128x128xbf16, #tpu.memory_space<vmem>>, vector<1x128x128xbf16>
    %105 = vector.shape_cast %104 : vector<1x128x128xbf16> to vector<128x128xbf16>
    %cst_90 = arith.constant dense<0.000000e+00> : vector<80x128xf32>
    %106 = tpu.matmul %103, %105, %cst_90 {dimension_numbers = #tpu.dot_dimension_numbers<[1], [0], [0], [1], [0, 0, 1, 1], [], []>} : vector<80x128xbf16>, vector<128x128xbf16>, vector<80x128xf32> -> vector<80x128xf32>
    %107 = arith.addf %102, %106 : vector<80x128xf32>
    %c7_91 = arith.constant 7 : index
    %c0_92 = arith.constant 0 : index
    %108 = vector.load %arg12[%c7_91, %c0_92] : memref<112x128xbf16, #tpu.memory_space<vmem>>, vector<80x128xbf16>
    %c2_93 = arith.constant 2 : index
    %c0_94 = arith.constant 0 : index
    %c0_95 = arith.constant 0 : index
    %109 = vector.load %arg5[%c2_93, %c0_94, %c0_95] : memref<9x128x128xbf16, #tpu.memory_space<vmem>>, vector<1x128x128xbf16>
    %110 = vector.shape_cast %109 : vector<1x128x128xbf16> to vector<128x128xbf16>
    %cst_96 = arith.constant dense<0.000000e+00> : vector<80x128xf32>
    %111 = tpu.matmul %108, %110, %cst_96 {dimension_numbers = #tpu.dot_dimension_numbers<[1], [0], [0], [1], [0, 0, 1, 1], [], []>} : vector<80x128xbf16>, vector<128x128xbf16>, vector<80x128xf32> -> vector<80x128xf32>
    %112 = arith.addf %107, %111 : vector<80x128xf32>
    %c15 = arith.constant 15 : index
    %c0_97 = arith.constant 0 : index
    %113 = vector.load %arg12[%c15, %c0_97] : memref<112x128xbf16, #tpu.memory_space<vmem>>, vector<80x128xbf16>
    %c3_98 = arith.constant 3 : index
    %c0_99 = arith.constant 0 : index
    %c0_100 = arith.constant 0 : index
    %114 = vector.load %arg5[%c3_98, %c0_99, %c0_100] : memref<9x128x128xbf16, #tpu.memory_space<vmem>>, vector<1x128x128xbf16>
    %115 = vector.shape_cast %114 : vector<1x128x128xbf16> to vector<128x128xbf16>
    %cst_101 = arith.constant dense<0.000000e+00> : vector<80x128xf32>
    %116 = tpu.matmul %113, %115, %cst_101 {dimension_numbers = #tpu.dot_dimension_numbers<[1], [0], [0], [1], [0, 0, 1, 1], [], []>} : vector<80x128xbf16>, vector<128x128xbf16>, vector<80x128xf32> -> vector<80x128xf32>
    %117 = arith.addf %112, %116 : vector<80x128xf32>
    %c16_102 = arith.constant 16 : index
    %c0_103 = arith.constant 0 : index
    %118 = vector.load %arg12[%c16_102, %c0_103] : memref<112x128xbf16, #tpu.memory_space<vmem>>, vector<80x128xbf16>
    %c4_104 = arith.constant 4 : index
    %c0_105 = arith.constant 0 : index
    %c0_106 = arith.constant 0 : index
    %119 = vector.load %arg5[%c4_104, %c0_105, %c0_106] : memref<9x128x128xbf16, #tpu.memory_space<vmem>>, vector<1x128x128xbf16>
    %120 = vector.shape_cast %119 : vector<1x128x128xbf16> to vector<128x128xbf16>
    %cst_107 = arith.constant dense<0.000000e+00> : vector<80x128xf32>
    %121 = tpu.matmul %118, %120, %cst_107 {dimension_numbers = #tpu.dot_dimension_numbers<[1], [0], [0], [1], [0, 0, 1, 1], [], []>} : vector<80x128xbf16>, vector<128x128xbf16>, vector<80x128xf32> -> vector<80x128xf32>
    %122 = arith.addf %117, %121 : vector<80x128xf32>
    %c17 = arith.constant 17 : index
    %c0_108 = arith.constant 0 : index
    %123 = vector.load %arg12[%c17, %c0_108] : memref<112x128xbf16, #tpu.memory_space<vmem>>, vector<80x128xbf16>
    %c5_109 = arith.constant 5 : index
    %c0_110 = arith.constant 0 : index
    %c0_111 = arith.constant 0 : index
    %124 = vector.load %arg5[%c5_109, %c0_110, %c0_111] : memref<9x128x128xbf16, #tpu.memory_space<vmem>>, vector<1x128x128xbf16>
    %125 = vector.shape_cast %124 : vector<1x128x128xbf16> to vector<128x128xbf16>
    %cst_112 = arith.constant dense<0.000000e+00> : vector<80x128xf32>
    %126 = tpu.matmul %123, %125, %cst_112 {dimension_numbers = #tpu.dot_dimension_numbers<[1], [0], [0], [1], [0, 0, 1, 1], [], []>} : vector<80x128xbf16>, vector<128x128xbf16>, vector<80x128xf32> -> vector<80x128xf32>
    %127 = arith.addf %122, %126 : vector<80x128xf32>
    %c25 = arith.constant 25 : index
    %c0_113 = arith.constant 0 : index
    %128 = vector.load %arg12[%c25, %c0_113] : memref<112x128xbf16, #tpu.memory_space<vmem>>, vector<80x128xbf16>
    %c6_114 = arith.constant 6 : index
    %c0_115 = arith.constant 0 : index
    %c0_116 = arith.constant 0 : index
    %129 = vector.load %arg5[%c6_114, %c0_115, %c0_116] : memref<9x128x128xbf16, #tpu.memory_space<vmem>>, vector<1x128x128xbf16>
    %130 = vector.shape_cast %129 : vector<1x128x128xbf16> to vector<128x128xbf16>
    %cst_117 = arith.constant dense<0.000000e+00> : vector<80x128xf32>
    %131 = tpu.matmul %128, %130, %cst_117 {dimension_numbers = #tpu.dot_dimension_numbers<[1], [0], [0], [1], [0, 0, 1, 1], [], []>} : vector<80x128xbf16>, vector<128x128xbf16>, vector<80x128xf32> -> vector<80x128xf32>
    %132 = arith.addf %127, %131 : vector<80x128xf32>
    %c26 = arith.constant 26 : index
    %c0_118 = arith.constant 0 : index
    %133 = vector.load %arg12[%c26, %c0_118] : memref<112x128xbf16, #tpu.memory_space<vmem>>, vector<80x128xbf16>
    %c7_119 = arith.constant 7 : index
    %c0_120 = arith.constant 0 : index
    %c0_121 = arith.constant 0 : index
    %134 = vector.load %arg5[%c7_119, %c0_120, %c0_121] : memref<9x128x128xbf16, #tpu.memory_space<vmem>>, vector<1x128x128xbf16>
    %135 = vector.shape_cast %134 : vector<1x128x128xbf16> to vector<128x128xbf16>
    %cst_122 = arith.constant dense<0.000000e+00> : vector<80x128xf32>
    %136 = tpu.matmul %133, %135, %cst_122 {dimension_numbers = #tpu.dot_dimension_numbers<[1], [0], [0], [1], [0, 0, 1, 1], [], []>} : vector<80x128xbf16>, vector<128x128xbf16>, vector<80x128xf32> -> vector<80x128xf32>
    %137 = arith.addf %132, %136 : vector<80x128xf32>
    %c27 = arith.constant 27 : index
    %c0_123 = arith.constant 0 : index
    %138 = vector.load %arg12[%c27, %c0_123] : memref<112x128xbf16, #tpu.memory_space<vmem>>, vector<80x128xbf16>
    %c8_124 = arith.constant 8 : index
    %c0_125 = arith.constant 0 : index
    %c0_126 = arith.constant 0 : index
    %139 = vector.load %arg5[%c8_124, %c0_125, %c0_126] : memref<9x128x128xbf16, #tpu.memory_space<vmem>>, vector<1x128x128xbf16>
    %140 = vector.shape_cast %139 : vector<1x128x128xbf16> to vector<128x128xbf16>
    %cst_127 = arith.constant dense<0.000000e+00> : vector<80x128xf32>
    %141 = tpu.matmul %138, %140, %cst_127 {dimension_numbers = #tpu.dot_dimension_numbers<[1], [0], [0], [1], [0, 0, 1, 1], [], []>} : vector<80x128xbf16>, vector<128x128xbf16>, vector<80x128xf32> -> vector<80x128xf32>
    %142 = arith.addf %137, %141 : vector<80x128xf32>
    %c0_128 = arith.constant 0 : index
    %c0_129 = arith.constant 0 : index
    %143 = vector.load %arg6[%c0_128, %c0_129] : memref<1x128xf32, #tpu.memory_space<vmem>>, vector<1x128xf32>
    %144 = vector.broadcast %143 : vector<1x128xf32> to vector<80x128xf32>
    %145 = arith.mulf %142, %144 : vector<80x128xf32>
    %c0_130 = arith.constant 0 : index
    %c0_131 = arith.constant 0 : index
    %146 = vector.load %arg7[%c0_130, %c0_131] : memref<1x128xf32, #tpu.memory_space<vmem>>, vector<1x128xf32>
    %147 = vector.broadcast %146 : vector<1x128xf32> to vector<80x128xf32>
    %148 = arith.addf %145, %147 : vector<80x128xf32>
    %c0_132 = arith.constant 0 : index
    %c3_133 = arith.constant 3 : index
    %c0_134 = arith.constant 0 : index
    %c0_135 = arith.constant 0 : index
    %149 = vector.load %arg1[%c0_132, %c3_133, %c0_134, %c0_135] : memref<1x4x100x128xbf16, #tpu.memory_space<vmem>>, vector<1x1x80x128xbf16>
    %150 = vector.shape_cast %149 : vector<1x1x80x128xbf16> to vector<80x128xbf16>
    %c0_136 = arith.constant 0 : index
    %c0_137 = arith.constant 0 : index
    %151 = vector.load %arg8[%c0_136, %c0_137] : memref<128x128xbf16, #tpu.memory_space<vmem>>, vector<128x128xbf16>
    %cst_138 = arith.constant dense<0.000000e+00> : vector<80x128xf32>
    %152 = tpu.matmul %150, %151, %cst_138 {dimension_numbers = #tpu.dot_dimension_numbers<[1], [0], [0], [1], [0, 0, 1, 1], [], []>} : vector<80x128xbf16>, vector<128x128xbf16>, vector<80x128xf32> -> vector<80x128xf32>
    %c0_139 = arith.constant 0 : index
    %c0_140 = arith.constant 0 : index
    %153 = vector.load %arg9[%c0_139, %c0_140] : memref<1x128xf32, #tpu.memory_space<vmem>>, vector<1x128xf32>
    %154 = vector.broadcast %153 : vector<1x128xf32> to vector<80x128xf32>
    %155 = arith.mulf %152, %154 : vector<80x128xf32>
    %c0_141 = arith.constant 0 : index
    %c0_142 = arith.constant 0 : index
    %156 = vector.load %arg10[%c0_141, %c0_142] : memref<1x128xf32, #tpu.memory_space<vmem>>, vector<1x128xf32>
    %157 = vector.broadcast %156 : vector<1x128xf32> to vector<80x128xf32>
    %158 = arith.addf %155, %157 : vector<80x128xf32>
    %159 = arith.addf %148, %158 : vector<80x128xf32>
    %cst_143 = arith.constant 0.000000e+00 : f32
    %160 = vector.broadcast %cst_143 : f32 to vector<80x128xf32>
    %161 = arith.maximumf %159, %160 : vector<80x128xf32>
    %c0_144 = arith.constant 0 : index
    %c0_145 = arith.constant 0 : index
    %c0_146 = arith.constant 0 : index
    %162 = vector.load %arg11[%c0_144, %c0_145, %c0_146] : memref<1x80x128xf32, #tpu.memory_space<vmem>>, vector<1x80x128xf32>
    %163 = vector.shape_cast %162 : vector<1x80x128xf32> to vector<80x128xf32>
    %164 = vector.shape_cast %161 : vector<80x128xf32> to vector<1x80x128xf32>
    tpu.vector_store %arg11[%c0_144, %c0_145, %c0_146], %164 {strides = array<i32>} : memref<1x80x128xf32, #tpu.memory_space<vmem>>, vector<1x80x128xf32>,
    return
  }
  func.func @transform_0(%arg0: i32) -> (i32, i32, i32, i32) {
    %c0_i32 = arith.constant 0 : i32
    %c0_i32_0 = arith.constant 0 : i32
    %c0_i32_1 = arith.constant 0 : i32
    %c0_i32_2 = arith.constant 0 : i32
    return %arg0, %c0_i32, %c0_i32_0, %c0_i32_1 : i32, i32, i32, i32
  }
  func.func @transform_1(%arg0: i32) -> (i32, i32, i32) {
    %c0_i32 = arith.constant 0 : i32
    %c0_i32_0 = arith.constant 0 : i32
    %c0_i32_1 = arith.constant 0 : i32
    %c0_i32_2 = arith.constant 0 : i32
    return %c0_i32, %c0_i32_0, %c0_i32_1 : i32, i32, i32
  }
  func.func @transform_2(%arg0: i32) -> (i32, i32) {
    %c0_i32 = arith.constant 0 : i32
    %c0_i32_0 = arith.constant 0 : i32
    %c0_i32_1 = arith.constant 0 : i32
    return %c0_i32, %c0_i32_0 : i32, i32
  }
  func.func @transform_3(%arg0: i32) -> (i32, i32) {
    %c0_i32 = arith.constant 0 : i32
    %c0_i32_0 = arith.constant 0 : i32
    %c0_i32_1 = arith.constant 0 : i32
    return %c0_i32, %c0_i32_0 : i32, i32
  }
  func.func @transform_4(%arg0: i32) -> (i32, i32, i32) {
    %c0_i32 = arith.constant 0 : i32
    %c0_i32_0 = arith.constant 0 : i32
    %c0_i32_1 = arith.constant 0 : i32
    %c0_i32_2 = arith.constant 0 : i32
    return %c0_i32, %c0_i32_0, %c0_i32_1 : i32, i32, i32
  }
  func.func @transform_5(%arg0: i32) -> (i32, i32) {
    %c0_i32 = arith.constant 0 : i32
    %c0_i32_0 = arith.constant 0 : i32
    %c0_i32_1 = arith.constant 0 : i32
    return %c0_i32, %c0_i32_0 : i32, i32
  }
  func.func @transform_6(%arg0: i32) -> (i32, i32) {
    %c0_i32 = arith.constant 0 : i32
    %c0_i32_0 = arith.constant 0 : i32
    %c0_i32_1 = arith.constant 0 : i32
    return %c0_i32, %c0_i32_0 : i32, i32
  }
  func.func @transform_7(%arg0: i32) -> (i32, i32) {
    %c0_i32 = arith.constant 0 : i32
    %c0_i32_0 = arith.constant 0 : i32
    %c0_i32_1 = arith.constant 0 : i32
    return %c0_i32, %c0_i32_0 : i32, i32
  }
  func.func @transform_8(%arg0: i32) -> (i32, i32) {
    %c0_i32 = arith.constant 0 : i32
    %c0_i32_0 = arith.constant 0 : i32
    %c0_i32_1 = arith.constant 0 : i32
    return %c0_i32, %c0_i32_0 : i32, i32
  }
  func.func @transform_9(%arg0: i32) -> (i32, i32) {
    %c0_i32 = arith.constant 0 : i32
    %c0_i32_0 = arith.constant 0 : i32
    %c0_i32_1 = arith.constant 0 : i32
    return %c0_i32, %c0_i32_0 : i32, i32
  }
  func.func @transform_10(%arg0: i32) -> (i32, i32, i32) {
    %c0_i32 = arith.constant 0 : i32
    %c0_i32_0 = arith.constant 0 : i32
    %c0_i32_1 = arith.constant 0 : i32
    return %arg0, %c0_i32, %c0_i32_0 : i32, i32, i32
  }
}

</mosaic_0001>

<bundles_post_ra>
// kernel: basicblock_forward.1
= control target key start
LH: loop header
LB: loop body
LE: loop exit
PB: predicated region body
PF: predicated region fallthrough
CT: control target
= control target key end

     0   :  { %s6481_s13 = smov 0   ;;  %s8244_s0 = inlined_call_operand.vmem [shape: bf16[2,4,100,128], index: 0, kind: input, shape index: {}]   ;;  %s8245_s1 = inlined_call_operand.vmem [shape: bf16[9,128,128], index: 1, kind: input, shape index: {}]   ;;  %s8246_s2 = inlined_call_operand.vmem [shape: f32[1,128], index: 2, kind: input, shape index: {}]   ;;  %s8247_s3 = inlined_call_operand.vmem [shape: f32[1,128], index: 3, kind: input, shape index: {}]   ;;  %s8248_s4 = inlined_call_operand.vmem [shape: bf16[9,128,128], index: 4, kind: input, shape index: {}]   ;;  %s8249_s5 = inlined_call_operand.vmem [shape: f32[1,128], index: 5, kind: input, shape index: {}]   ;;  %s8250_s6 = inlined_call_operand.vmem [shape: f32[1,128], index: 6, kind: input, shape index: {}]   ;;  %s8251_s7 = inlined_call_operand.vmem [shape: bf16[128,128], index: 7, kind: input, shape index: {}]   ;;  %s8252_s8 = inlined_call_operand.vmem [shape: f32[1,128], index: 8, kind: input, shape index: {}]   ;;  %s8253_s9 = inlined_call_operand.vmem [shape: f32[1,128], index: 9, kind: input, shape index: {}]   ;;  %s8254_s10 = inlined_call_operand.vmem [shape: f32[2,80,128], index: 10, kind: output, shape index: {}]  }
   0x1 LB: > { %s4613_s14 = sadd.s32 4294967295, %s6421_s13   ;;  %p4617_p0 = scmp.ge.s32.totalorder %s6421_s13, 1  ;;  %s6421_s13 = sphi %s6481_s13, %s20_s13  }
   0x2   : > { %p312_p1 = scmp.lt.s32.totalorder %s6421_s13, 3 }
   0x4   : > { %p313_p2 = pnand %p4617_p0, %p312_p1 }
   0x5   : > { %p350_p3 = scmp.lt.s32.totalorder (!%p313_p2), %s4613_s14, 1 }
   0x6   : > { %316 = sbr.rel (%p313_p2) target bundleno = 837 (0x345), region = 60 }
   0xb   : > { %v6187_v0 = vld [vmem:[%s8245_s1 + $0x78] sm:$0xff]   ;;  %v6423_v1 = vmov 0.0   ;;  %v6189_v3 = vld [vmem:[%s8245_s1 + $0x70] sm:$0xff]   ;;  %vm6424_vm0 = vmmov 0   ;;  %v6191_v5 = vld [vmem:[%s8245_s1 + $0x68] sm:$0xff]   ;;  %s8292_s14 = smov (!%p350_p3, %s4613_s14), 1 }
   0xc   : > { %5454 = vmatprep.subr.bf16.mxu0 %v6423_v1  ;;  %5490 = vmatprep.subr.bf16.mxu1 %v6423_v1  ;;  %v6188_v2 = vld [vmem:[%s8245_s1 + $0x38] sm:$0xff]   ;;  %v6190_v4 = vld [vmem:[%s8245_s1 + $0x30] sm:$0xff]   ;;  %v6192_v6 = vld [vmem:[%s8245_s1 + $0x28] sm:$0xff]   ;;  %s6154_s11 = smul.u32 208, %s8292_s14  ;;  %vm738_vm1 = vsmask.f32 7424 }
   0xd   : > { %5455 = vmatpush3.bf16.msra.mxu0 %v6187_v0  ;;  %5470 = vmatprep.mubr.msk.bf16.mxu0 %vm6424_vm0, %v6423_v1  ;;  %v6193_v7 = vld [vmem:[%s8245_s1 + $0x60] sm:$0xff]   ;;  %v6195_v9 = vld [vmem:[%s8245_s1 + $0x58] sm:$0xff]   ;;  %v6197_v11 = vld [vmem:[%s8245_s1 + $0x50] sm:$0xff]   ;;  %vm8256_vm2 = vcmask 1046528   ;;  %vm8255_vm3 = vsmask.f32 6400 }
   0xe   : > { %5491 = vmatpush3.bf16.msra.mxu1 %v6188_v2  ;;  %5456 = vmatprep.subr.bf16.mxu0 %v6423_v1  ;;  %v6194_v8 = vld [vmem:[%s8245_s1 + $0x20] sm:$0xff]   ;;  %v6196_v10 = vld [vmem:[%s8245_s1 + $0x18] sm:$0xff]   ;;  %s6538_s20 = scalar_lea.vmem %s8244_s0, %s6154_s11  ;;  %v6198_v12 = vld [vmem:[%s8245_s1 + $0x10] sm:$0xff]   ;;  %s6155_s27 = smul.u32 80, %s8292_s14 }
   0xf   : > { %5492 = vmatprep.subr.bf16.mxu1 %v6423_v1  ;;  %5506 = vmatprep.mubr.msk.bf16.mxu1 %vm6424_vm0, %v6423_v1  ;;  %v6199_v13 = vld [vmem:[%s8245_s1 + $0x48] sm:$0xff]   ;;  %v6201_v15 = vld [vmem:[%s8245_s1 + $0x40] sm:$0xff]   ;;  %v6203_v17 = vld [vmem:[%s6538_s20 + $0x34] sm:$0xff]  }
  0x10   : > { %v6200_v14 = vld [vmem:[%s8245_s1 + $0x8] sm:$0xff]   ;;  %v6202_v16 = vld [vmem:[%s8245_s1] sm:$0xff]   ;;  %v6205_v19 = vld [vmem:[%s8245_s1 + $0xb8] sm:$0xff]   ;;  %s8177_s14 = scalar_lea.vmem %s8254_s10, %s6155_s27 }
  0x11   : > { %5457 = vmatpush3.bf16.msra.mxu0 %v6189_v3  ;;  %v6567_v18 = vld [vmem:[%s6538_s20] sm:$0xff]   ;;  %v6210_v20 = vld [vmem:[%s8245_s1 + $0xf8] sm:$0xff]   ;;  %v6206_v21 = vld [vmem:[%s8245_s1 + $0xb0] sm:$0xff]  }
  0x12   : > { %5493 = vmatpush3.bf16.msra.mxu1 %v6190_v4  ;;  %5458 = vmatprep.subr.bf16.mxu0 %v6423_v1  ;;  %v6211_v22 = vld [vmem:[%s8245_s1 + $0xf0] sm:$0xff]   ;;  %v6207_v23 = vld [vmem:[%s6538_s20 + $0x3c] sm:$0xff]   ;;  %v6592_v24 = vld [vmem:[%s6538_s20 + $0x8] sm:$0xff]   ;;  %v742_v39 = vshll.u32 %v6567_v18, 16  ;;  %v740_v43 = vshrl.u32 %v6567_v18, 16 }
  0x13   : > { %5494 = vmatprep.subr.bf16.mxu1 %v6423_v1  ;;  %v6209_v25 = vld [vmem:[%s8245_s1 + $0xa8] sm:$0xff]   ;;  %v6214_v27 = vld [vmem:[%s8245_s1 + $0xa0] sm:$0xff]   ;;  %v6616_v30 = vld [vmem:[%s6538_s20 + $0x10] sm:$0xff]   ;;  %v747_v47 = vshll.u32 %v6592_v24, 16  ;;  %v751_v52 = vshrl.u32 %v6592_v24, 16 }
  0x14   : > { %v6215_v26 = vld [vmem:[%s8245_s1 + $0xe8] sm:$0xff]   ;;  %v6217_v29 = vld [vmem:[%s8245_s1 + $0xe0] sm:$0xff]   ;;  %v6216_v31 = vld [vmem:[%s8245_s1 + $0x98] sm:$0xff]   ;;  %v744_v46 = vrot.slane %v742_v39, 1  ;;  %v755_v55 = vshll.u32 %v6616_v30, 16  ;;  %v759_v62 = vshrl.u32 %v6616_v30, 16 }
  0x15   : > { %5459 = vmatpush3.bf16.msra.mxu0 %v6191_v5  ;;  %v6212_v28 = vld [vmem:[%s6538_s20 + $0x44] sm:$0xff]   ;;  %v6221_v32 = vld [vmem:[%s8245_s1 + $0xd8] sm:$0xff]   ;;  %v6220_v33 = vld [vmem:[%s8245_s1 + $0x90] sm:$0xff]   ;;  %v749_v49 = vrot.slane %v747_v47, 1 }
  0x16   : > { %5495 = vmatpush3.bf16.msra.mxu1 %v6192_v6  ;;  %5460 = vmatprep.subr.bf16.mxu0 %v6423_v1  ;;  %v6223_v34 = vld [vmem:[%s8245_s1 + $0xd0] sm:$0xff]   ;;  %v6642_v36 = vld [vmem:[%s6538_s20 + $0x18] sm:$0xff]   ;;  %v6222_v37 = vld [vmem:[%s8245_s1 + $0x88] sm:$0xff]   ;;  %v745_v50 = vor.u32 %v744_v46, %v740_v43  ;;  %v757_v59 = vrot.slane %v755_v55, 1 }
  0x17   : > { %5496 = vmatprep.subr.bf16.mxu1 %v6423_v1  ;;  %v6218_v35 = vld [vmem:[%s6538_s20 + $0x4c] sm:$0xff]   ;;  %v369_v40 = vld [vmem:[%s6538_s20 + $0x20] sm:$0xf]  ;;  %v370_v41 = vld [vmem:[%s6538_s20 + $0x24] sm:$0x7]  ;;  %v753_v58 = vor.u32 %v751_v52, %v749_v49  ;;  %v763_v2 = vshll.u32 %v6642_v36, 16 }
  0x18   : > { %v6227_v38 = vld [vmem:[%s8245_s1 + $0xc8] sm:$0xff]   ;;  %v6228_v42 = vld [vmem:[%s8245_s1 + $0x80] sm:$0xff]   ;;  %v6224_v45 = vld [vmem:[%s6538_s20 + $0x54] sm:$0x7f]   ;;  %v4663_v48 = vcombine.low %v369_v40, %v370_v41  ;;  %v750_v53 = vsel %vm738_vm1, %v745_v50, %v749_v49  ;;  %v761_v6 = vor.u32 %v759_v62, %v757_v59 }
  0x19   : > { %5461 = vmatpush3.bf16.msra.mxu0 %v6193_v7  ;;  %v6229_v44 = vld [vmem:[%s8245_s1 + $0xc0] sm:$0xff]   ;;  %v6230_v51 = vld [vmem:[%s8245_s1 + $0x138] sm:$0xff]   ;;  %v6683_v54 = vld [vmem:[%s6538_s20 + $0x68] sm:$0xff]   ;;  %v758_v63 = vsel %vm738_vm1, %v753_v58, %v757_v59  ;;  %v765_v7 = vrot.slane %v763_v2, 1 }
  0x1a   : > { %5497 = vmatpush3.bf16.msra.mxu1 %v6194_v8  ;;  %5462 = vmatprep.subr.bf16.mxu0 %v6423_v1  ;;  %v6235_v56 = vld [vmem:[%s8245_s1 + $0x178] sm:$0xff]   ;;  %v6232_v57 = vld [vmem:[%s8245_s1 + $0x130] sm:$0xff]   ;;  %v6234_v0 = vld [vmem:[%s8245_s1 + $0x128] sm:$0xff]  }
  0x1b   : > { %5498 = vmatprep.subr.bf16.mxu1 %v6423_v1  ;;  %v6236_v60 = vld [vmem:[%s8245_s1 + $0x170] sm:$0xff]   ;;  %v717_v3 = vld [vmem:[%s6538_s20 + $0x24] sm:$0xf]  ;;  %v6239_v4 = vld [vmem:[%s8245_s1 + $0x168] sm:$0xff]  }
  0x1c   : > { %v6702_v61 = vld [vmem:[%s6538_s20 + $0x70] sm:$0xff]   ;;  %v4688_v5 = vcombine.low %v369_v40, %v717_v3  ;;  %v6237_v8 = vld [vmem:[%s8245_s1 + $0x120] sm:$0xff]   ;;  %v6816_v50 = vld [vmem:[%s6538_s20 + $0x48] sm:$0xff]  }
  0x1d   : > { %5463 = vmatpush3.bf16.msra.mxu0 %v6195_v9  ;;  %v6241_v9 = vld [vmem:[%s8245_s1 + $0x160] sm:$0xff]   ;;  %v6800_v43 = vld [vmem:[%s6538_s20 + $0xc] sm:$0xff]   ;;  %v6813_v49 = vld [vmem:[%s6538_s20 + $0x14] sm:$0xff]  }
  0x1e   : > { %5499 = vmatpush3.bf16.msra.mxu1 %v6196_v10  ;;  %5464 = vmatprep.subr.bf16.mxu0 %v6423_v1  ;;  %v6730_v10 = vld [vmem:[%s6538_s20 + $0x78] sm:$0xff]   ;;  %v6809_v46 = vld [vmem:[%s6538_s20 + $0x40] sm:$0xff]   ;;  %v1542_v62 = vrot.slane %v6800_v43, 1  ;;  %v6254_v2 = vld [vmem:[%s8245_s1 + $0x1b0] sm:$0xff]   ;;  %v1544_v3 = vrot.slane %v6813_v49, 1 }
  0x1f   : > { %5500 = vmatprep.subr.bf16.mxu1 %v6423_v1  ;;  %v6253_v52 = vld [vmem:[%s8245_s1 + $0x1b8] sm:$0xff]   ;;  %v6292_v49 = vld [vmem:[%s6538_s20 + $0xc] sm:$0xff]  }
  0x20   : > { %v6831_v59 = vld [vmem:[%s6538_s20 + $0x1c] sm:$0xff]  }
  0x21   : > { %5465 = vmatpush3.bf16.msra.mxu0 %v6197_v11  ;;  %v767_v11 = vshrl.u32 %v6642_v36, 16 }
  0x22   : > { %5501 = vmatpush3.bf16.msra.mxu1 %v6198_v12  ;;  %5466 = vmatprep.subr.bf16.mxu0 %v6423_v1  ;;  %v766_v12 = vsel %vm738_vm1, %v761_v6, %v765_v7  ;;  %v1546_v6 = vrot.slane %v6831_v59, 1 }
  0x23   : > { %5502 = vmatprep.subr.bf16.mxu1 %v6423_v1 }
  0x25   : > { %5467 = vmatpush3.bf16.msra.mxu0 %v6199_v13  ;;  %v6240_v13 = vld [vmem:[%s8245_s1 + $0x118] sm:$0xff]  }
  0x26   : > { %5503 = vmatpush3.bf16.msra.mxu1 %v6200_v14  ;;  %5468 = vmatprep.subr.bf16.mxu0 %v6423_v1  ;;  %v771_v14 = vshll.u32 %v4688_v5, 16 }
  0x27   : > { %5504 = vmatprep.subr.bf16.mxu1 %v6423_v1 }
  0x29   : > { %5469 = vmatpush3.bf16.msra.mxu0 %v6201_v15  ;;  %v6244_v15 = vld [vmem:[%s8245_s1 + $0x158] sm:$0xff]  }
  0x2a   : > { %5505 = vmatpush3.bf16.msra.mxu1 %v6202_v16  ;;  %5526 = vmatprep.subr.bf16.mxu0 %v6423_v1  ;;  %v769_v16 = vor.u32 %v767_v11, %v765_v7  ;;  %v6261_v11 = vld [vmem:[%s8245_s1 + $0x1e8] sm:$0xff]  }
  0x2b   : > { %5562 = vmatprep.subr.bf16.mxu1 %v6423_v1 }
  0x2c   : > { %5471 = vmatmul.mubr.bf16.vlgmr.msra.gmra.mxu0 %v6203_v17  ;;  %v773_v17 = vrot.slane %v771_v14, 1  ;;  %v6263_v14 = vld [vmem:[%s8245_s1 + $0x1e0] sm:$0xff]  }
  0x2d   : > { %5507 = vmatmul.mubr.bf16.vlgmr.msra.gmra.mxu1 %v6567_v18  ;;  %5527 = vmatpush3.bf16.msra.mxu0 %v6205_v19  ;;  %v6243_v18 = vld [vmem:[%s8245_s1 + $0x110] sm:$0xff]  }
  0x2e   : > { %5528 = vmatprep.subr.bf16.mxu0 %v6423_v1  ;;  %5474 = vmatprep.mubr.msk.bf16.mxu0 %vm6424_vm0, %v6423_v1  ;;  %v6246_v19 = vld [vmem:[%s8245_s1 + $0x150] sm:$0xff]  }
  0x2f   : > { %5510 = vmatprep.mubr.msk.bf16.mxu1 %vm6424_vm0, %v6423_v1  ;;  %5563 = vmatpush3.bf16.msra.mxu1 %v6210_v20  ;;  %v774_v20 = vsel %vm738_vm1, %v769_v16, %v773_v17 }
  0x30   : > { %5564 = vmatprep.subr.bf16.mxu1 %v6423_v1 }
  0x31   : > { %5529 = vmatpush3.bf16.msra.mxu0 %v6206_v21  ;;  %v6758_v21 = vld [vmem:[%s6538_s20 + $0x80] sm:$0xff]  }
  0x32   : > { %5530 = vmatprep.subr.bf16.mxu0 %v6423_v1  ;;  %v1337_v39 = vshll.u32 %v6758_v21, 16 }
  0x33   : > { %5565 = vmatpush3.bf16.msra.mxu1 %v6211_v22  ;;  %v6245_v22 = vld [vmem:[%s8245_s1 + $0x108] sm:$0xff]  }
  0x34   : > { %5475 = vmatmul.mubr.bf16.gmra.mxu0 %v6207_v23  ;;  %5566 = vmatprep.subr.bf16.mxu1 %v6423_v1  ;;  %v775_v23 = vshrl.u32 %v4688_v5, 16  ;;  %v6258_v5 = vld [vmem:[%s8245_s1 + $0x1f0] sm:$0xff]  }
  0x35   : > { %5511 = vmatmul.mubr.bf16.gmra.mxu1 %v6592_v24  ;;  %5531 = vmatpush3.bf16.msra.mxu0 %v6209_v25  ;;  %v6249_v24 = vld [vmem:[%s8245_s1 + $0x148] sm:$0xff]   ;;  %v1316_v25 = vshll.u32 %v6683_v54, 16 }
  0x36   : > { %5478 = vmatprep.mubr.msk.bf16.mxu0 %vm6424_vm0, %v6423_v1  ;;  %5514 = vmatprep.mubr.msk.bf16.mxu1 %vm6424_vm0, %v6423_v1 }
  0x37   : > { %5532 = vmatprep.subr.bf16.mxu0 %v6423_v1  ;;  %5567 = vmatpush3.bf16.msra.mxu1 %v6215_v26  ;;  %v4705_v26 = vld [vmem:[%s6538_s20 + $0x88] sm:$0xf] }
  0x38   : > { %5568 = vmatprep.subr.bf16.mxu1 %v6423_v1 }
  0x39   : > { %5533 = vmatpush3.bf16.msra.mxu0 %v6214_v27  ;;  %v4706_v27 = vld [vmem:[%s6538_s20 + $0x8c] sm:$0x7] }
  0x3a   : > { %5534 = vmatprep.subr.bf16.mxu0 %v6423_v1 }
  0x3b   : > { %5569 = vmatpush3.bf16.msra.mxu1 %v6217_v29  ;;  %v6250_v29 = vld [vmem:[%s8245_s1 + $0x100] sm:$0xff]  }
  0x3c   : > { %5479 = vmatmul.mubr.bf16.gmra.mxu0 %v6212_v28  ;;  %5570 = vmatprep.subr.bf16.mxu1 %v6423_v1  ;;  %v4775_v28 = vld [vmem:[%s6538_s20 + $0x8c] sm:$0xf] }
  0x3d   : > { %5515 = vmatmul.mubr.bf16.gmra.mxu1 %v6616_v30  ;;  %5535 = vmatpush3.bf16.msra.mxu0 %v6216_v31  ;;  %v6251_v30 = vld [vmem:[%s8245_s1 + $0x140] sm:$0xff]   ;;  %v1321_v31 = vshll.u32 %v6702_v61, 16 }
  0x3e   : > { %5482 = vmatprep.mubr.msk.bf16.mxu0 %vm6424_vm0, %v6423_v1  ;;  %5518 = vmatprep.mubr.msk.bf16.mxu1 %vm6424_vm0, %v6423_v1 }
  0x3f   : > { %5536 = vmatprep.subr.bf16.mxu0 %v6423_v1  ;;  %5571 = vmatpush3.bf16.msra.mxu1 %v6221_v32  ;;  %v777_v32 = vor.u32 %v775_v23, %v773_v17  ;;  %v6262_v17 = vld [vmem:[%s8245_s1 + $0x198] sm:$0xff]  }
  0x40   : > { %5572 = vmatprep.subr.bf16.mxu1 %v6423_v1 }
  0x41   : > { %5537 = vmatpush3.bf16.msra.mxu0 %v6220_v33  ;;  %v4727_v33 = vcombine.low %v4705_v26, %v4706_v27  ;;  %v6271_v27 = vld [vmem:[%s8245_s1 + $0x180] sm:$0xff]  }
  0x42   : > { %5538 = vmatprep.subr.bf16.mxu0 %v6423_v1 }
  0x43   : > { %5573 = vmatpush3.bf16.msra.mxu1 %v6223_v34  ;;  %v6786_v34 = vcombine.low %v4705_v26, %v4775_v28  ;;  %v6272_v28 = vld [vmem:[%s8245_s1 + $0x1c0] sm:$0xff]  }
  0x44   : > { %5483 = vmatmul.mubr.bf16.gmra.mxu0 %v6218_v35  ;;  %5574 = vmatprep.subr.bf16.mxu1 %v6423_v1  ;;  %v1314_v35 = vshrl.u32 %v6683_v54, 16 }
  0x45   : > { %5519 = vmatmul.mubr.bf16.gmra.mxu1 %v6642_v36  ;;  %5486 = vmatprep.mubr.msk.bf16.mxu0 %vm6424_vm0, %v6423_v1  ;;  %v1318_v36 = vrot.slane %v1316_v25, 1  ;;  %v1345_v41 = vshll.u32 %v6786_v34, 16  ;;  %v1349_v58 = vshrl.u32 %v6786_v34, 16  ;;  %v6270_v25 = vld [vmem:[%s8245_s1 + $0x1c8] sm:$0xff]   ;;  %v6278_v34 = vld [vmem:[%s8245_s1 + $0x230] sm:$0xff]  }
  0x46   : > { %5522 = vmatprep.mubr.msk.bf16.mxu1 %vm6424_vm0, %v6423_v1  ;;  %5539 = vmatpush3.bf16.msra.mxu0 %v6222_v37  ;;  %v1329_v37 = vshll.u32 %v6730_v10, 16 }
  0x47   : > { %5540 = vmatprep.subr.bf16.mxu0 %v6423_v1  ;;  %5575 = vmatpush3.bf16.msra.mxu1 %v6227_v38  ;;  %v1323_v38 = vrot.slane %v1321_v31, 1  ;;  %v1319_v40 = vor.u32 %v1318_v36, %v1314_v35  ;;  %v6275_v31 = vld [vmem:[%s8245_s1 + $0x238] sm:$0xff]   ;;  %v6281_v35 = vld [vmem:[%s8245_s1 + $0x228] sm:$0xff]   ;;  %v1545_v36 = vsel %vm8256_vm2, %v1542_v62, %v1544_v3 }
  0x48   : > { %5576 = vmatprep.subr.bf16.mxu1 %v6423_v1  ;;  %v1331_v47 = vrot.slane %v1329_v37, 1 }
  0x49   : > { %v1324_v55 = vsel %vm738_vm1, %v1319_v40, %v1323_v38  ;;  %v6286_v40 = vld [vmem:[%s6538_s20 + $0x24] sm:$0xff]  }
  0x4a   : > { %5541 = vmatpush3.bf16.msra.mxu0 %v6228_v42  ;;  %v6797_v42 = vld [vmem:[%s6538_s20 + $0x4] sm:$0xfe]  }
  0x4b   : > { %5577 = vmatpush3.bf16.msra.mxu1 %v6229_v44  ;;  %5598 = vmatprep.subr.bf16.mxu0 %v6423_v1  ;;  %v1325_v44 = vshrl.u32 %v6702_v61, 16 }
  0x4c   : > { %5487 = vmatmul.mubr.bf16.gmra.mxu0 %v6224_v45  ;;  %5634 = vmatprep.subr.bf16.mxu1 %v6423_v1  ;;  %v6806_v45 = vld [vmem:[%s6538_s20 + $0x38] sm:$0xfe]  }
  0x4d   : > { %5523 = vmatmul.mubr.bf16.gmra.mxu1 %v4663_v48  ;;  %5542 = vmatprep.mubr.msk.bf16.mxu0 %vm6424_vm0, %v6423_v1  ;;  %v1333_v48 = vshrl.u32 %v6730_v10, 16 }
  0x4e   : > { %5578 = vmatprep.mubr.msk.bf16.mxu1 %vm6424_vm0, %v6423_v1 }
  0x4f   : > { %v1335_v16 = vor.u32 %v1333_v48, %v1331_v47  ;;  %v6291_v48 = vld [vmem:[%s6538_s20 + $0x4] sm:$0xfe]  }
  0x54   : > { %5543 = vmatmul.mubr.bf16.vlgmr.msra.gmra.mxu0 %v750_v53  ;;  %v1339_v53 = vrot.slane %v1337_v39, 1  ;;  %v6285_v39 = vld [vmem:[%s8245_s1 + $0x218] sm:$0xff]  }
  0x55   : > { %5599 = vmatpush3.bf16.msra.mxu0 %v6230_v51  ;;  %5579 = vmatmul.mubr.bf16.vlgmr.msra.gmra.mxu1 %v6683_v54  ;;  %v6252_v51 = vld [vmem:[%s6538_s20 + $0x9c] sm:$0xff]   ;;  %v1341_v54 = vshrl.u32 %v6758_v21, 16 }
  0x56   : > { %5600 = vmatprep.subr.bf16.mxu0 %v6423_v1  ;;  %5546 = vmatprep.mubr.msk.bf16.mxu0 %vm6424_vm0, %v6423_v1 }
  0x57   : > { %5582 = vmatprep.mubr.msk.bf16.mxu1 %vm6424_vm0, %v6423_v1  ;;  %5635 = vmatpush3.bf16.msra.mxu1 %v6235_v56  ;;  %v6257_v56 = vld [vmem:[%s8245_s1 + $0x1f8] sm:$0xff]   ;;  %v1343_v23 = vor.u32 %v1341_v54, %v1339_v53  ;;  %v1949_v54 = vshrl.u32 %v6292_v49, 16 }
  0x58   : > { %5636 = vmatprep.subr.bf16.mxu1 %v6423_v1 }
  0x59   : > { %5601 = vmatpush3.bf16.msra.mxu0 %v6232_v57  ;;  %v6827_v57 = vrot.slane %v1345_v41, 1  ;;  %v6287_v41 = vld [vmem:[%s6538_s20 + $0x58] sm:$0xff]   ;;  %v1951_v59 = vrot.slane %v1949_v54, 1 }
  0x5a   : > { %5602 = vmatprep.subr.bf16.mxu0 %v6423_v1 }
  0x5b   : > { %5637 = vmatpush3.bf16.msra.mxu1 %v6236_v60  ;;  %v6834_v60 = vld [vmem:[%s6538_s20 + $0x50] sm:$0xff]   ;;  %v1348_v26 = vsel %vm738_vm1, %v1343_v23, %v6827_v57 }
  0x5c   : > { %5547 = vmatmul.mubr.bf16.gmra.mxu0 %v758_v63  ;;  %5638 = vmatprep.subr.bf16.mxu1 %v6423_v1  ;;  %v1738_v63 = vrot.slane %v6806_v45, 1  ;;  %v1743_v7 = vrot.slane %v6834_v60, 1  ;;  %v6288_v45 = vld [vmem:[%s8245_s1 + $0x210] sm:$0xff]  }
  0x5d   : > { %5583 = vmatmul.mubr.bf16.gmra.mxu1 %v6702_v61  ;;  %5603 = vmatpush3.bf16.msra.mxu0 %v6234_v0  ;;  %v1541_v61 = vrot.slane %v6797_v42, 1  ;;  %v1739_v0 = vrot.slane %v6809_v46, 1  ;;  %v1547_v42 = vsel %vm8256_vm2, %v1544_v3, %v1546_v6  ;;  %v1745_v46 = vrot.slane %v6287_v41, 1 }
  0x5e   : > { %5550 = vmatprep.mubr.msk.bf16.mxu0 %vm6424_vm0, %v6423_v1  ;;  %5604 = vmatprep.subr.bf16.mxu0 %v6423_v1 }
  0x5f   : > { %5586 = vmatprep.mubr.msk.bf16.mxu1 %vm6424_vm0, %v6423_v1  ;;  %5639 = vmatpush3.bf16.msra.mxu1 %v6239_v4  ;;  %v1741_v4 = vrot.slane %v6816_v50, 1  ;;  %v1746_v50 = vsel %vm8256_vm2, %v1743_v7, %v1745_v46 }
  0x60   : > { %5640 = vmatprep.subr.bf16.mxu1 %v6423_v1 }
  0x61   : > { %5605 = vmatpush3.bf16.msra.mxu0 %v6237_v8  ;;  %v6255_v8 = vld [vmem:[%s6538_s20 + $0xa4] sm:$0xff]   ;;  %v1742_v37 = vsel %vm8256_vm2, %v1739_v0, %v1741_v4  ;;  %v1744_v43 = vsel %vm8256_vm2, %v1741_v4, %v1743_v7 }
  0x62   : > { %5606 = vmatprep.subr.bf16.mxu0 %v6423_v1 }
  0x63   : > { %5641 = vmatpush3.bf16.msra.mxu1 %v6241_v9  ;;  %v1327_v9 = vor.u32 %v1325_v44, %v1323_v38  ;;  %v6283_v38 = vld [vmem:[%s8245_s1 + $0x220] sm:$0xff]   ;;  %v1548_v44 = vrot.slane %v6286_v40, 1 }
  0x64   : > { %5551 = vmatmul.mubr.bf16.gmra.mxu0 %v766_v12  ;;  %5642 = vmatprep.subr.bf16.mxu1 %v6423_v1 }
  0x65   : > { %5587 = vmatmul.mubr.bf16.gmra.mxu1 %v6730_v10  ;;  %5607 = vmatpush3.bf16.msra.mxu0 %v6240_v13  ;;  %v6256_v10 = vld [vmem:[%s8245_s1 + $0x1a8] sm:$0xff]   ;;  %v1332_v12 = vsel %vm738_vm1, %v1327_v9, %v1331_v47  ;;  %v6260_v13 = vld [vmem:[%s8245_s1 + $0x1a0] sm:$0xff]   ;;  %v1549_v47 = vsel %vm8256_vm2, %v1546_v6, %v1548_v44 }
  0x66   : > { %5554 = vmatprep.mubr.msk.bf16.mxu0 %vm6424_vm0, %v6423_v1  ;;  %5590 = vmatprep.mubr.msk.bf16.mxu1 %vm6424_vm0, %v6423_v1  ;;  %v6294_v6 = vld [vmem:[%s6538_s20 + $0x1c] sm:$0xff]  }
  0x67   : > { %5608 = vmatprep.subr.bf16.mxu0 %v6423_v1  ;;  %5643 = vmatpush3.bf16.msra.mxu1 %v6244_v15  ;;  %v6259_v15 = vld [vmem:[%s6538_s20 + $0xac] sm:$0xff]   ;;  %v1970_v9 = vshll.u32 %v6294_v6, 16 }
  0x68   : > { %5644 = vmatprep.subr.bf16.mxu1 %v6423_v1 }
  0x69   : > { %5609 = vmatpush3.bf16.msra.mxu0 %v6243_v18  ;;  %v6266_v18 = vld [vmem:[%s8245_s1 + $0x1d8] sm:$0xff]  }
  0x6a   : > { %5610 = vmatprep.subr.bf16.mxu0 %v6423_v1 }
  0x6b   : > { %5645 = vmatpush3.bf16.msra.mxu1 %v6246_v19  ;;  %v1340_v19 = vsel %vm738_vm1, %v1335_v16, %v1339_v53  ;;  %v1944_v53 = vshll.u32 %v6291_v48, 16 }
  0x6c   : > { %5555 = vmatmul.mubr.bf16.gmra.mxu0 %v774_v20  ;;  %5646 = vmatprep.subr.bf16.mxu1 %v6423_v1  ;;  %v6265_v20 = vld [vmem:[%s8245_s1 + $0x190] sm:$0xff]  }
  0x6d   : > { %5591 = vmatmul.mubr.bf16.gmra.mxu1 %v6758_v21  ;;  %5558 = vmatprep.mubr.msk.bf16.mxu0 %vm6424_vm0, %v6423_v1  ;;  %v6268_v21 = vld [vmem:[%s8245_s1 + $0x1d0] sm:$0xff]  }
  0x6e   : > { %5611 = vmatpush3.bf16.msra.mxu0 %v6245_v22  ;;  %5594 = vmatprep.mubr.msk.bf16.mxu1 %vm6424_vm0, %v6423_v1  ;;  %v6264_v22 = vld [vmem:[%s6538_s20 + $0xb4] sm:$0xff]  }
  0x6f   : > { %5612 = vmatprep.subr.bf16.mxu0 %v6423_v1  ;;  %5647 = vmatpush3.bf16.msra.mxu1 %v6249_v24  ;;  %v6267_v24 = vld [vmem:[%s8245_s1 + $0x188] sm:$0xff]  }
  0x70   : > { %5648 = vmatprep.subr.bf16.mxu1 %v6423_v1 }
  0x72   : > { %5613 = vmatpush3.bf16.msra.mxu0 %v6250_v29  ;;  %v6269_v29 = vld [vmem:[%s6538_s20 + $0xbc] sm:$0x7f]  }
  0x73   : > { %5649 = vmatpush3.bf16.msra.mxu1 %v6251_v30  ;;  %5670 = vmatprep.subr.bf16.mxu0 %v6423_v1  ;;  %v1351_v30 = vor.u32 %v1349_v58, %v6827_v57  ;;  %v1946_v58 = vrot.slane %v1944_v53, 2 }
  0x74   : > { %5559 = vmatmul.mubr.bf16.gmra.mxu0 %v777_v32  ;;  %5706 = vmatprep.subr.bf16.mxu1 %v6423_v1  ;;  %v1543_v32 = vsel %vm8256_vm2, %v1541_v61, %v1542_v62  ;;  %v6293_v61 = vld [vmem:[%s6538_s20 + $0x14] sm:$0xff]  }
  0x75   : > { %5595 = vmatmul.mubr.bf16.gmra.mxu1 %v4727_v33  ;;  %5614 = vmatprep.mubr.msk.bf16.mxu0 %vm6424_vm0, %v6423_v1  ;;  %v1740_v33 = vsel %vm8256_vm2, %v1738_v63, %v1739_v0  ;;  %v1958_v0 = vshrl.u32 %v6293_v61, 16 }
  0x76   : > { %5650 = vmatprep.mubr.msk.bf16.mxu1 %vm6424_vm0, %v6423_v1 }
  0x77   : > { %v1960_v4 = vrot.slane %v1958_v0, 1 }
  0x7c   : > { %5615 = vmatmul.mubr.bf16.vlgmr.msra.gmra.mxu0 %v6252_v51  ;;  %v6289_v51 = vld [vmem:[%s8245_s1 + $0x208] sm:$0xff]  }
  0x7d   : > { %5671 = vmatpush3.bf16.msra.mxu0 %v6253_v52  ;;  %5651 = vmatmul.mubr.bf16.vlgmr.msra.gmra.mxu1 %v1324_v55  ;;  %v1941_v52 = vshrl.u32 %v6291_v48, 16  ;;  %v1952_v55 = vshll.u32 %v6292_v49, 16 }
  0x7e   : > { %5672 = vmatprep.subr.bf16.mxu0 %v6423_v1  ;;  %5618 = vmatprep.mubr.msk.bf16.mxu0 %vm6424_vm0, %v6423_v1 }
  0x7f   : > { %5654 = vmatprep.mubr.msk.bf16.mxu1 %vm6424_vm0, %v6423_v1  ;;  %5707 = vmatpush3.bf16.msra.mxu1 %v6257_v56  ;;  %v6290_v56 = vld [vmem:[%s8245_s1 + $0x200] sm:$0xff]   ;;  %v1943_v57 = vrot.slane %v1941_v52, 1  ;;  %v1954_v60 = vrot.slane %v1952_v55, 2 }
  0x80   : > { %5708 = vmatprep.subr.bf16.mxu1 %v6423_v1 }
  0x81   : > { %5673 = vmatpush3.bf16.msra.mxu0 %v6254_v2  ;;  %v1947_v62 = vor.u32 %v1946_v58, %v1943_v57  ;;  %v1955_v63 = vor.u32 %v1954_v60, %v1951_v59  ;;  %v1961_v2 = vshll.u32 %v6293_v61, 16 }
  0x82   : > { %5674 = vmatprep.subr.bf16.mxu0 %v6423_v1 }
  0x83   : > { %5709 = vmatpush3.bf16.msra.mxu1 %v6258_v5  ;;  %v1956_v3 = vsel %vm8255_vm3, %v1947_v62, %v1955_v63  ;;  %v1963_v5 = vrot.slane %v1961_v2, 2  ;;  %v6298_v62 = vld [vmem:[%s8248_s4 + $0x70] sm:$0xff]  }
  0x84   : > { %5619 = vmatmul.mubr.bf16.gmra.mxu0 %v6255_v8  ;;  %5710 = vmatprep.subr.bf16.mxu1 %v6423_v1  ;;  %v1967_v8 = vshrl.u32 %v6294_v6, 16  ;;  %v6300_v6 = vld [vmem:[%s8248_s4 + $0x38] sm:$0xff]  }
  0x85   : > { %5655 = vmatmul.mubr.bf16.gmra.mxu1 %v1332_v12  ;;  %5675 = vmatpush3.bf16.msra.mxu0 %v6256_v10  ;;  %v1964_v7 = vor.u32 %v1963_v5, %v1960_v4  ;;  %v1972_v12 = vrot.slane %v1970_v9, 2 }
  0x86   : > { %5622 = vmatprep.mubr.msk.bf16.mxu0 %vm6424_vm0, %v6423_v1  ;;  %5676 = vmatprep.subr.bf16.mxu0 %v6423_v1 }
  0x87   : > { %5658 = vmatprep.mubr.msk.bf16.mxu1 %vm6424_vm0, %v6423_v1  ;;  %5711 = vmatpush3.bf16.msra.mxu1 %v6261_v11  ;;  %v1965_v10 = vsel %vm8255_vm3, %v1955_v63, %v1964_v7  ;;  %v1969_v11 = vrot.slane %v1967_v8, 1 }
  0x88   : > { %5712 = vmatprep.subr.bf16.mxu1 %v6423_v1 }
  0x89   : > { %5677 = vmatpush3.bf16.msra.mxu0 %v6260_v13  ;;  %v6295_v13 = vld [vmem:[%s6538_s20 + $0x24] sm:$0xff]  }
  0x8a   : > { %5678 = vmatprep.subr.bf16.mxu0 %v6423_v1  ;;  %v1979_v16 = vshll.u32 %v6295_v13, 16 }
  0x8b   : > { %5713 = vmatpush3.bf16.msra.mxu1 %v6263_v14  ;;  %v1973_v14 = vor.u32 %v1972_v12, %v1969_v11  ;;  %v6299_v12 = vld [vmem:[%s8248_s4 + $0x68] sm:$0xff]  }
  0x8c   : > { %5623 = vmatmul.mubr.bf16.gmra.mxu0 %v6259_v15  ;;  %5714 = vmatprep.subr.bf16.mxu1 %v6423_v1  ;;  %v1976_v15 = vshrl.u32 %v6295_v13, 16  ;;  %v6302_v13 = vld [vmem:[%s8248_s4 + $0x30] sm:$0xff]  }
  0x8d   : > { %5659 = vmatmul.mubr.bf16.gmra.mxu1 %v1340_v19  ;;  %5679 = vmatpush3.bf16.msra.mxu0 %v6262_v17  ;;  %v1974_v17 = vsel %vm8255_vm3, %v1964_v7, %v1973_v14  ;;  %v1981_v19 = vrot.slane %v1979_v16, 2 }
  0x8e   : > { %5626 = vmatprep.mubr.msk.bf16.mxu0 %vm6424_vm0, %v6423_v1  ;;  %5662 = vmatprep.mubr.msk.bf16.mxu1 %vm6424_vm0, %v6423_v1 }
  0x8f   : > { %5680 = vmatprep.subr.bf16.mxu0 %v6423_v1  ;;  %5715 = vmatpush3.bf16.msra.mxu1 %v6266_v18  ;;  %v1978_v18 = vrot.slane %v1976_v15, 1 }
  0x90   : > { %5716 = vmatprep.subr.bf16.mxu1 %v6423_v1 }
  0x91   : > { %5681 = vmatpush3.bf16.msra.mxu0 %v6265_v20  ;;  %v1982_v20 = vor.u32 %v1981_v19, %v1978_v18  ;;  %v6301_v19 = vld [vmem:[%s8248_s4 + $0x60] sm:$0xff]  }
  0x92   : > { %5682 = vmatprep.subr.bf16.mxu0 %v6423_v1 }
  0x93   : > { %5717 = vmatpush3.bf16.msra.mxu1 %v6268_v21  ;;  %v6296_v21 = vld [vmem:[%s6538_s20 + $0x2c] ss:$0 sps:$4 sm:$0x11]  }
  0x94   : > { %5627 = vmatmul.mubr.bf16.gmra.mxu0 %v6264_v22  ;;  %5718 = vmatprep.subr.bf16.mxu1 %v6423_v1  ;;  %v1983_v22 = vsel %vm8255_vm3, %v1973_v14, %v1982_v20  ;;  %v1985_v23 = vshll.u32 %v6296_v21, 16 }
  0x95   : > { %5663 = vmatmul.mubr.bf16.gmra.mxu1 %v1348_v26  ;;  %5630 = vmatprep.mubr.msk.bf16.mxu0 %vm6424_vm0, %v6423_v1 }
  0x96   : > { %5683 = vmatpush3.bf16.msra.mxu0 %v6267_v24  ;;  %5666 = vmatprep.mubr.msk.bf16.mxu1 %vm6424_vm0, %v6423_v1  ;;  %v1987_v24 = vrot.slane %v1985_v23, 2 }
  0x97   : > { %5684 = vmatprep.subr.bf16.mxu0 %v6423_v1  ;;  %5719 = vmatpush3.bf16.msra.mxu1 %v6270_v25 }
  0x98   : > { %5720 = vmatprep.subr.bf16.mxu1 %v6423_v1  ;;  %v1988_v25 = vsel %vm8255_vm3, %v1982_v20, %v1987_v24  ;;  %v6304_v20 = vld [vmem:[%s8248_s4 + $0x28] sm:$0xff]  }
  0x9a   : > { %5685 = vmatpush3.bf16.msra.mxu0 %v6271_v27 }
  0x9b   : > { %5721 = vmatpush3.bf16.msra.mxu1 %v6272_v28  ;;  %5742 = vmatprep.subr.bf16.mxu0 %v6423_v1 }
  0x9c   : > { %5631 = vmatmul.mubr.bf16.gmra.mxu0 %v6269_v29  ;;  %5778 = vmatprep.subr.bf16.mxu1 %v6423_v1 }
  0x9d   : > { %5667 = vmatmul.mubr.bf16.gmra.mxu1 %v1351_v30  ;;  %5686 = vmatprep.mubr.msk.bf16.mxu0 %vm6424_vm0, %v6423_v1 }
  0x9e   : > { %5722 = vmatprep.mubr.msk.bf16.mxu1 %vm6424_vm0, %v6423_v1 }
  0xa4   : > { %5687 = vmatmul.mubr.bf16.vlgmr.msra.gmra.mxu0 %v1543_v32 }
  0xa5   : > { %5743 = vmatpush3.bf16.msra.mxu0 %v6275_v31  ;;  %5723 = vmatmul.mubr.bf16.vlgmr.msra.gmra.mxu1 %v1740_v33 }
  0xa6   : > { %5744 = vmatprep.subr.bf16.mxu0 %v6423_v1  ;;  %5690 = vmatprep.mubr.msk.bf16.mxu0 %vm6424_vm0, %v6423_v1 }
  0xa7   : > { %5726 = vmatprep.mubr.msk.bf16.mxu1 %vm6424_vm0, %v6423_v1 }
  0xa9   : > { %5745 = vmatpush3.bf16.msra.mxu0 %v6278_v34 }
  0xaa   : > { %5746 = vmatprep.subr.bf16.mxu0 %v6423_v1 }
  0xac   : > { %5691 = vmatmul.mubr.bf16.gmra.mxu0 %v1545_v36 }
  0xad   : > { %5727 = vmatmul.mubr.bf16.gmra.mxu1 %v1742_v37  ;;  %5747 = vmatpush3.bf16.msra.mxu0 %v6281_v35 }
  0xae   : > { %5694 = vmatprep.mubr.msk.bf16.mxu0 %vm6424_vm0, %v6423_v1  ;;  %5748 = vmatprep.subr.bf16.mxu0 %v6423_v1 }
  0xaf   : > { %5730 = vmatprep.mubr.msk.bf16.mxu1 %vm6424_vm0, %v6423_v1 }
  0xb1   : > { %5749 = vmatpush3.bf16.msra.mxu0 %v6283_v38 }
  0xb2   : > { %5750 = vmatprep.subr.bf16.mxu0 %v6423_v1 }
  0xb4   : > { %5695 = vmatmul.mubr.bf16.gmra.mxu0 %v1547_v42 }
  0xb5   : > { %5731 = vmatmul.mubr.bf16.gmra.mxu1 %v1744_v43  ;;  %5751 = vmatpush3.bf16.msra.mxu0 %v6285_v39 }
  0xb6   : > { %5698 = vmatprep.mubr.msk.bf16.mxu0 %vm6424_vm0, %v6423_v1  ;;  %5734 = vmatprep.mubr.msk.bf16.mxu1 %vm6424_vm0, %v6423_v1 }
  0xb7   : > { %5752 = vmatprep.subr.bf16.mxu0 %v6423_v1 }
  0xb9   : > { %5753 = vmatpush3.bf16.msra.mxu0 %v6288_v45 }
  0xba   : > { %5754 = vmatprep.subr.bf16.mxu0 %v6423_v1 }
  0xbc   : > { %5699 = vmatmul.mubr.bf16.gmra.mxu0 %v1549_v47 }
  0xbd   : > { %5735 = vmatmul.mubr.bf16.gmra.mxu1 %v1746_v50  ;;  %5702 = vmatprep.mubr.msk.bf16.mxu0 %vm6424_vm0, %v6423_v1 }
  0xbe   : > { %5755 = vmatpush3.bf16.msra.mxu0 %v6289_v51  ;;  %5738 = vmatprep.mubr.msk.bf16.mxu1 %vm6424_vm0, %v6423_v1 }
  0xbf   : > { %5756 = vmatprep.subr.bf16.mxu0 %v6423_v1 }
  0xc2   : > { %5757 = vmatpush3.bf16.msra.mxu0 %v6290_v56  ;;  %v6297_v56 = vld [vmem:[%s8248_s4 + $0x78] sm:$0xff]  }
  0xc3   : > { %5814 = vmatprep.subr.bf16.mxu0 %v6423_v1  ;;  %5779 = vmatpush3.bf16.msra.mxu1 %v6297_v56 }
  0xc4   : > { %5703 = vmatmul.mubr.bf16.gmra.mxu0 %v1548_v44  ;;  %5780 = vmatprep.subr.bf16.mxu1 %v6423_v1 }
  0xc5   : > { %5739 = vmatmul.mubr.bf16.gmra.mxu1 %v1745_v46  ;;  %5758 = vmatprep.mubr.msk.bf16.mxu0 %vm6424_vm0, %v6423_v1 }
  0xc6   : > { %5794 = vmatprep.mubr.msk.bf16.mxu1 %vm6424_vm0, %v6423_v1 }
  0xc7   : > { %5781 = vmatpush3.bf16.msra.mxu1 %v6298_v62 }
  0xc8   : > { %5782 = vmatprep.subr.bf16.mxu1 %v6423_v1 }
  0xcb   : > { %5783 = vmatpush3.bf16.msra.mxu1 %v6299_v12 }
  0xcc   : > { %5759 = vmatmul.mubr.bf16.vlgmr.msra.gmra.mxu0 %v1956_v3  ;;  %5784 = vmatprep.subr.bf16.mxu1 %v6423_v1 }
  0xcd   : > { %5762 = vmatprep.mubr.msk.bf16.mxu0 %vm6424_vm0, %v6423_v1  ;;  %5815 = vmatpush3.bf16.msra.mxu0 %v6300_v6 }
  0xce   : > { %5816 = vmatprep.subr.bf16.mxu0 %v6423_v1 }
  0xcf   : > { %5785 = vmatpush3.bf16.msra.mxu1 %v6301_v19 }
  0xd0   : > { %5786 = vmatprep.subr.bf16.mxu1 %v6423_v1 }
  0xd1   : > { %5817 = vmatpush3.bf16.msra.mxu0 %v6302_v13 }
  0xd2   : > { %5818 = vmatprep.subr.bf16.mxu0 %v6423_v1 }
  0xd4   : > { %5763 = vmatmul.mubr.bf16.gmra.mxu0 %v1965_v10 }
  0xd5   : > { %5766 = vmatprep.mubr.msk.bf16.mxu0 %vm6424_vm0, %v6423_v1  ;;  %5819 = vmatpush3.bf16.msra.mxu0 %v6304_v20 }
  0xd6   : > { %5820 = vmatprep.subr.bf16.mxu0 %v6423_v1 }
  0xdc   : > { %5767 = vmatmul.mubr.bf16.gmra.mxu0 %v1974_v17 }
  0xdd   : > { %5770 = vmatprep.mubr.msk.bf16.mxu0 %vm6424_vm0, %v6423_v1 }
  0xe4   : > { %5771 = vmatmul.mubr.bf16.gmra.mxu0 %v1983_v22 }
  0xe5   : > { %5774 = vmatprep.mubr.msk.bf16.mxu0 %vm6424_vm0, %v6423_v1 }
  0xec   : > { %v527_v26 = vpop.f32.mrf.mxu0  ;;  %5775 = vmatmul.mubr.bf16.gmra.mxu0 %v1988_v25 }
  0xed   : > { %v678_v27 = vpop.f32.mrf.mxu1  ;;  %5830 = vmatprep.mubr.msk.bf16.mxu0 %vm6424_vm0, %v6423_v1 }
  0xee   : > { %v7044_v28 = vadd.f32 %v678_v27, %v527_v26  ;;  %v5472_v29 = vpop.f32.mrf.mxu0  ;;  %v6303_v27 = vld [vmem:[%s8248_s4 + $0x58] sm:$0xff]  }
  0xef   : > { %v5508_v30 = vpop.f32.mrf.mxu1  ;;  %5787 = vmatpush3.bf16.msra.mxu1 %v6303_v27 }
  0xf0   : > { %v530_v31 = vpop.f32.mrf.mxu0  ;;  %5788 = vmatprep.subr.bf16.mxu1 %v6423_v1 }
  0xf1   : > { %v681_v32 = vpop.f32.mrf.mxu1 }
  0xf2   : > { %v7046_v33 = vadd.f32 %v681_v32, %v530_v31  ;;  %v5473_v34 = vpop.f32.mrf.mxu0 }
  0xf3   : > { %v5509_v35 = vpop.f32.mrf.mxu1 }
  0xf4   : > { %v535_v36 = vpop.f32.mrf.mxu0 }
  0xf5   : > { %v686_v37 = vpop.f32.mrf.mxu1 }
  0xf6   : > { %v7048_v38 = vadd.f32 %v686_v37, %v535_v36  ;;  %v5476_v39 = vpop.f32.mrf.mxu0  ;;  %v6306_v36 = vld [vmem:[%s8248_s4 + $0x50] sm:$0xff]  }
  0xf7   : > { %v5512_v40 = vpop.f32.mrf.mxu1  ;;  %5789 = vmatpush3.bf16.msra.mxu1 %v6306_v36 }
  0xf8   : > { %v538_v41 = vpop.f32.mrf.mxu0  ;;  %v6425_v40 = vmov 0   ;;  %5790 = vmatprep.subr.bf16.mxu1 %v6423_v1 }
  0xf9   : > { %v689_v42 = vpop.f32.mrf.mxu1  ;;  %2415 = vst [vmem:[#allocation2] sm:$0xf] %v6425_v40  ;;  %2416 = vst [vmem:[#allocation2 + $0x4] sm:$0xf] %v6425_v40 }
  0xfa   : > { %v7050_v43 = vadd.f32 %v689_v42, %v538_v41  ;;  %v5477_v44 = vpop.f32.mrf.mxu0  ;;  %2462 = vst [vmem:[#allocation2 + $0x2c] sm:$0x8] %v6425_v40  ;;  %2463 = vst [vmem:[#allocation2 + $0x30] sm:$0xf] %v6425_v40 }
  0xfb   : > { %v5513_v45 = vpop.f32.mrf.mxu1  ;;  %2464 = vst [vmem:[#allocation2 + $0x34] sm:$0xf] %v6425_v40 }
  0xfc   : > { %v543_v46 = vpop.f32.mrf.mxu0 }
  0xfd   : > { %v694_v47 = vpop.f32.mrf.mxu1 }
  0xfe   : > { %v7052_v48 = vadd.f32 %v694_v47, %v543_v46  ;;  %v5480_v49 = vpop.f32.mrf.mxu0  ;;  %v6309_v46 = vld [vmem:[%s8248_s4 + $0x10] sm:$0xff]  }
  0xff   : > { %v5516_v50 = vpop.f32.mrf.mxu1 }
 0x100   : > { %v546_v51 = vpop.f32.mrf.mxu0 }
 0x101   : > { %v697_v52 = vpop.f32.mrf.mxu1 }
 0x102   : > { %v7054_v53 = vadd.f32 %v697_v52, %v546_v51  ;;  %v5481_v54 = vpop.f32.mrf.mxu0 }
 0x103   : > { %v5517_v55 = vpop.f32.mrf.mxu1 }
 0x104   : > { %v551_v57 = vpop.f32.mrf.mxu0  ;;  %v6310_v55 = vld [vmem:[%s8248_s4 + $0x40] sm:$0xff]  }
 0x105   : > { %v702_v58 = vpop.f32.mrf.mxu1 }
 0x106   : > { %v7059_v59 = vadd.f32 %v702_v58, %v551_v57  ;;  %v5484_v60 = vpop.f32.mrf.mxu0 }
 0x107   : > { %v5520_v61 = vpop.f32.mrf.mxu1 }
 0x108   : > { %v554_v63 = vpop.f32.mrf.mxu0 }
 0x109   : > { %v705_v0 = vpop.f32.mrf.mxu1 }
 0x10a   : > { %v7065_v2 = vadd.f32 %v705_v0, %v554_v63  ;;  %v5485_v3 = vpop.f32.mrf.mxu0  ;;  %v6314_v63 = vld [vmem:[%s8248_s4] sm:$0xff]  }
 0x10b   : > { %v5521_v4 = vpop.f32.mrf.mxu1 }
 0x10c   : > { %v559_v5 = vpop.f32.mrf.mxu0 }
 0x10d   : > { %v710_v7 = vpop.f32.mrf.mxu1 }
 0x10e   : > { %v7071_v8 = vadd.f32 %v710_v7, %v559_v5  ;;  %v5488_v9 = vpop.f32.mrf.mxu0 }
 0x10f   : > { %v5524_v10 = vpop.f32.mrf.mxu1 }
 0x110   : > { %v562_v11 = vpop.f32.mrf.mxu0 }
 0x111   : > { %v713_v14 = vpop.f32.mrf.mxu1 }
 0x112   : > { %v7080_v15 = vadd.f32 %v713_v14, %v562_v11  ;;  %v5489_v16 = vpop.f32.mrf.mxu0 }
 0x113   : > { %v5525_v17 = vpop.f32.mrf.mxu1 }
 0x114   : > { %v865_v18 = vpop.f32.mrf.mxu0 }
 0x115   : > { %v904_v21 = vadd.f32 %v865_v18, %v7044_v28  ;;  %v1054_v22 = vpop.f32.mrf.mxu1  ;;  %v6305_v28 = vld [vmem:[%s8248_s4 + $0x20] sm:$0xff]  }
 0x116   : > { %v5544_v23 = vpop.f32.mrf.mxu0  ;;  %5821 = vmatpush3.bf16.msra.mxu0 %v6305_v28 }
 0x117   : > { %v7091_v24 = vadd.f32 %v1054_v22, %v904_v21  ;;  %v5580_v25 = vpop.f32.mrf.mxu1  ;;  %5822 = vmatprep.subr.bf16.mxu0 %v6423_v1 }
 0x118   : > { %v868_v26 = vpop.f32.mrf.mxu0 }
 0x119   : > { %v905_v29 = vadd.f32 %v868_v26, %v7046_v33  ;;  %v1057_v30 = vpop.f32.mrf.mxu1  ;;  %v6307_v33 = vld [vmem:[%s8248_s4 + $0x18] sm:$0xff]  }
 0x11a   : > { %v5545_v31 = vpop.f32.mrf.mxu0  ;;  %5823 = vmatpush3.bf16.msra.mxu0 %v6307_v33 }
 0x11b   : > { %v7102_v32 = vadd.f32 %v1057_v30, %v905_v29  ;;  %v5581_v34 = vpop.f32.mrf.mxu1  ;;  %5824 = vmatprep.subr.bf16.mxu0 %v6423_v1 }
 0x11c   : > { %v873_v35 = vpop.f32.mrf.mxu0 }
 0x11d   : > { %v906_v37 = vadd.f32 %v873_v35, %v7048_v38  ;;  %v1062_v39 = vpop.f32.mrf.mxu1  ;;  %v6308_v38 = vld [vmem:[%s8248_s4 + $0x48] sm:$0xff]  }
 0x11e   : > { %v5548_v41 = vpop.f32.mrf.mxu0  ;;  %5791 = vmatpush3.bf16.msra.mxu1 %v6308_v38  ;;  %5825 = vmatpush3.bf16.msra.mxu0 %v6309_v46 }
 0x11f   : > { %v7113_v42 = vadd.f32 %v1062_v39, %v906_v37  ;;  %v5584_v44 = vpop.f32.mrf.mxu1  ;;  %5792 = vmatprep.subr.bf16.mxu1 %v6423_v1  ;;  %5826 = vmatprep.subr.bf16.mxu0 %v6423_v1 }
 0x120   : > { %v876_v45 = vpop.f32.mrf.mxu0 }
 0x121   : > { %v907_v47 = vadd.f32 %v876_v45, %v7050_v43  ;;  %v1065_v49 = vpop.f32.mrf.mxu1  ;;  %v6311_v43 = vld [vmem:[%s8248_s4 + $0x8] sm:$0xff]  }
 0x122   : > { %v5549_v50 = vpop.f32.mrf.mxu0  ;;  %5793 = vmatpush3.bf16.msra.mxu1 %v6310_v55  ;;  %5827 = vmatpush3.bf16.msra.mxu0 %v6311_v43 }
 0x123   : > { %v7124_v51 = vadd.f32 %v1065_v49, %v907_v47  ;;  %v5585_v52 = vpop.f32.mrf.mxu1  ;;  %5828 = vmatprep.subr.bf16.mxu0 %v6423_v1  ;;  %5850 = vmatprep.subr.bf16.mxu1 %v6423_v1 }
 0x124   : > { %v881_v54 = vpop.f32.mrf.mxu0 }
 0x125   : > { %v908_v56 = vadd.f32 %v881_v54, %v7052_v48  ;;  %v1070_v57 = vpop.f32.mrf.mxu1 }
 0x126   : > { %v5552_v58 = vpop.f32.mrf.mxu0  ;;  %5829 = vmatpush3.bf16.msra.mxu0 %v6314_v63 }
 0x127   : > { %v1097_v60 = vadd.f32 %v1070_v57, %v908_v56  ;;  %v5588_v61 = vpop.f32.mrf.mxu1  ;;  %5886 = vmatprep.subr.bf16.mxu0 %v6423_v1 }
 0x128   : > { %v884_v62 = vpop.f32.mrf.mxu0 }
 0x129   : > { %v909_v0 = vadd.f32 %v884_v62, %v7054_v53  ;;  %v1073_v3 = vpop.f32.mrf.mxu1 }
 0x12a   : > { %v5553_v4 = vpop.f32.mrf.mxu0 }
 0x12b   : > { %v1098_v48 = vadd.f32 %v1073_v3, %v909_v0  ;;  %v5589_v5 = vpop.f32.mrf.mxu1 }
 0x12c   : > { %v889_v6 = vpop.f32.mrf.mxu0 }
 0x12d   : > { %v910_v7 = vadd.f32 %v889_v6, %v7059_v59  ;;  %v1078_v9 = vpop.f32.mrf.mxu1 }
 0x12e   : > { %v5556_v10 = vpop.f32.mrf.mxu0 }
 0x12f   : > { %v1099_v11 = vadd.f32 %v1078_v9, %v910_v7  ;;  %v5592_v12 = vpop.f32.mrf.mxu1 }
 0x130   : > { %v892_v13 = vpop.f32.mrf.mxu0 }
 0x131   : > { %v911_v14 = vadd.f32 %v892_v13, %v7065_v2  ;;  %v1081_v16 = vpop.f32.mrf.mxu1 }
 0x132   : > { %v5557_v17 = vpop.f32.mrf.mxu0 }
 0x133   : > { %v1100_v53 = vadd.f32 %v1081_v16, %v911_v14  ;;  %v5593_v18 = vpop.f32.mrf.mxu1 }
 0x134   : > { %v897_v19 = vpop.f32.mrf.mxu0 }
 0x135   : > { %v912_v20 = vadd.f32 %v897_v19, %v7071_v8  ;;  %v1086_v21 = vpop.f32.mrf.mxu1 }
 0x136   : > { %v5560_v22 = vpop.f32.mrf.mxu0 }
 0x137   : > { %v1101_v23 = vadd.f32 %v1086_v21, %v912_v20  ;;  %v5596_v25 = vpop.f32.mrf.mxu1 }
 0x138   : > { %v900_v26 = vpop.f32.mrf.mxu0 }
 0x139   : > { %v913_v59 = vadd.f32 %v900_v26, %v7080_v15  ;;  %v1089_v27 = vpop.f32.mrf.mxu1 }
 0x13a   : > { %v5561_v28 = vpop.f32.mrf.mxu0 }
 0x13b   : > { %v1102_v29 = vadd.f32 %v1089_v27, %v913_v59  ;;  %v5597_v30 = vpop.f32.mrf.mxu1  ;;  %v2169_v27 = vlaneseq }
 0x13c   : > { %v1243_v31 = vpop.f32.mrf.mxu0 }
 0x13d   : > { %v1282_v2 = vadd.f32 %v1243_v31, %v7091_v24  ;;  %v1439_v34 = vpop.f32.mrf.mxu1 }
 0x13e   : > { %v5616_v35 = vpop.f32.mrf.mxu0 }
 0x13f   : > { %v7147_v36 = vadd.f32 %v1439_v34, %v1282_v2  ;;  %v5652_v33 = vpop.f32.mrf.mxu1  ;;  %v7174_v34 = vshrl.u32 %v2169_v27, 7 }
 0x140   : > { %v1246_v8 = vpop.f32.mrf.mxu0 }
 0x141   : > { %v1283_v37 = vadd.f32 %v1246_v8, %v7102_v32  ;;  %v1442_v39 = vpop.f32.mrf.mxu1  ;;  %v2171_v33 = vadd.s32 8, %v7174_v34 }
 0x142   : > { %v5617_v40 = vpop.f32.mrf.mxu0 }
 0x143   : > { %v7150_v41 = vadd.f32 %v1442_v39, %v1283_v37  ;;  %v5653_v15 = vpop.f32.mrf.mxu1  ;;  %v2180_v39 = vadd.s32 1, %v7174_v34 }
 0x144   : > { %v1251_v44 = vpop.f32.mrf.mxu0  ;;  %v2181_v15 = vadd.s32 1, %v2171_v33 }
 0x145   : > { %v1284_v45 = vadd.f32 %v1251_v44, %v7113_v42  ;;  %v1447_v38 = vpop.f32.mrf.mxu1  ;;  %v2172_v44 = vadd.s32 16, %v7174_v34 }
 0x146   : > { %v5620_v46 = vpop.f32.mrf.mxu0 }
 0x147   : > { %v7153_v47 = vadd.f32 %v1447_v38, %v1284_v45  ;;  %v5656_v24 = vpop.f32.mrf.mxu1 }
 0x148   : > { %v1254_v49 = vpop.f32.mrf.mxu0 }
 0x149   : > { %v1285_v50 = vadd.f32 %v1254_v49, %v7124_v51  ;;  %v1450_v52 = vpop.f32.mrf.mxu1  ;;  %v7187_v24 = vmul.u32.u64.low 3435973837, %v2180_v39  ;;  %v7188_v49 = vmul.u32.u64.high 3435973837, %v2180_v39, %v7187_v24 }
 0x14a   : > { %v5621_v54 = vpop.f32.mrf.mxu0 }
 0x14b   : > { %v7156_v55 = vadd.f32 %v1450_v52, %v1285_v50  ;;  %v5657_v32 = vpop.f32.mrf.mxu1  ;;  %v7190_v52 = vmul.u32.u64.low 3435973837, %v2181_v15  ;;  %v7191_v54 = vmul.u32.u64.high 3435973837, %v2181_v15, %v7190_v52 }
 0x14c   : > { %v1259_v43 = vpop.f32.mrf.mxu0  ;;  %v2182_v32 = vadd.s32 1, %v2172_v44 }
 0x14d   : > { %v1286_v56 = vadd.f32 %v1259_v43, %v1097_v60  ;;  %v1455_v57 = vpop.f32.mrf.mxu1  ;;  %v2173_v43 = vadd.s32 24, %v7174_v34 }
 0x14e   : > { %v5624_v58 = vpop.f32.mrf.mxu0 }
 0x14f   : > { %v7158_v61 = vadd.f32 %v1455_v57, %v1286_v56  ;;  %v5660_v42 = vpop.f32.mrf.mxu1  ;;  %v2174_v58 = vadd.s32 32, %v7174_v34 }
 0x150   : > { %v1262_v62 = vpop.f32.mrf.mxu0 }
 0x151   : > { %v1287_v63 = vadd.f32 %v1262_v62, %v1098_v48  ;;  %v1458_v0 = vpop.f32.mrf.mxu1 }
 0x152   : > { %v5625_v3 = vpop.f32.mrf.mxu0 }
 0x153   : > { %v7160_v4 = vadd.f32 %v1458_v0, %v1287_v63  ;;  %v5661_v5 = vpop.f32.mrf.mxu1  ;;  %v7199_v63 = vmul.u32.u64.low 3435973837, %v2182_v32  ;;  %v7200_v0 = vmul.u32.u64.high 3435973837, %v2182_v32, %v7199_v63  ;;  %v2183_v3 = vadd.s32 1, %v2173_v43 }
 0x154   : > { %v1267_v51 = vpop.f32.mrf.mxu0 }
 0x155   : > { %v1288_v6 = vadd.f32 %v1267_v51, %v1099_v11  ;;  %v1463_v7 = vpop.f32.mrf.mxu1  ;;  %v2218_v27 = vshrl.u32 %v7200_v0, 3 }
 0x156   : > { %v5628_v9 = vpop.f32.mrf.mxu0 }
 0x157   : > { %v7162_v10 = vadd.f32 %v1463_v7, %v1288_v6  ;;  %v5664_v12 = vpop.f32.mrf.mxu1  ;;  %v7206_v6 = vadd.s32 1, %v2174_v58  ;;  %v2196_v9 = vshrl.u32 %v7188_v49, 3  ;;  %v2219_v24 = vmul.u32 10, %v2218_v27 }
 0x158   : > { %v1270_v60 = vpop.f32.mrf.mxu0  ;;  %v2175_v12 = vadd.s32 40, %v7174_v34  ;;  %v2179_v27 = vadd.s32 72, %v7174_v34 }
 0x159   : > { %v1289_v13 = vadd.f32 %v1270_v60, %v1100_v53  ;;  %v1466_v14 = vpop.f32.mrf.mxu1 }
 0x15a   : > { %v5629_v16 = vpop.f32.mrf.mxu0 }
 0x15b   : > { %v7164_v17 = vadd.f32 %v1466_v14, %v1289_v13  ;;  %v5665_v18 = vpop.f32.mrf.mxu1  ;;  %v2207_v13 = vshrl.u32 %v7191_v54, 3  ;;  %v7211_v14 = vmul.u32.u64.low 3435973837, %v2183_v3  ;;  %v7212_v16 = vmul.u32.u64.high 3435973837, %v2183_v3, %v7211_v14 }
 0x15c   : > { %v1275_v48 = vpop.f32.mrf.mxu0 }
 0x15d   : > { %v1290_v19 = vadd.f32 %v1275_v48, %v1101_v23  ;;  %v1471_v20 = vpop.f32.mrf.mxu1  ;;  %v2229_v49 = vshrl.u32 %v7212_v16, 3 }
 0x15e   : > { %v5632_v21 = vpop.f32.mrf.mxu0 }
 0x15f   : > { %v7166_v22 = vadd.f32 %v1471_v20, %v1290_v19  ;;  %v5668_v25 = vpop.f32.mrf.mxu1  ;;  %v7219_v19 = vmul.u32.u64.low 3435973837, %v7206_v6  ;;  %v7220_v20 = vmul.u32.u64.high 3435973837, %v7206_v6, %v7219_v19 }
 0x160   : > { %v1278_v11 = vpop.f32.mrf.mxu0  ;;  %v2197_v25 = vmul.u32 10, %v2196_v9 }
 0x161   : > { %v1291_v26 = vadd.f32 %v1278_v11, %v1102_v29  ;;  %v1474_v59 = vpop.f32.mrf.mxu1  ;;  %v7222_v11 = vadd.s32 1, %v2175_v12  ;;  %v2240_v43 = vshrl.u32 %v7220_v20, 3  ;;  %v2178_v20 = vadd.s32 64, %v7174_v34 }
 0x162   : > { %v5633_v28 = vpop.f32.mrf.mxu0  ;;  %v2198_v33 = vsub.s32 %v2180_v39, %v2197_v25  ;;  %v2177_v39 = vadd.s32 56, %v7174_v34 }
 0x163   : > { %v7168_v30 = vadd.f32 %v1474_v59, %v1291_v26  ;;  %v5669_v53 = vpop.f32.mrf.mxu1  ;;  %v2208_v59 = vmul.u32 10, %v2207_v13  ;;  %v2241_v14 = vmul.u32 10, %v2240_v43 }
 0x164   : > { %v7170_v31 = vpop.f32.mrf.mxu0  ;;  %v2176_v53 = vadd.s32 48, %v7174_v34  ;;  %vm2300_vm4 = vcmp.ne.s32.totalorder %v2198_v33, 0  ;;  %vm2310_vm5 = vcmp.lt.s32.totalorder %v2198_v33, 0  ;;  %v7256_v19 = vadd.s32 1, %v2177_v39 }
 0x165   : > { %v7172_v2 = vpop.f32.mrf.mxu1  ;;  %vm7251_vm8 = vmand %vm2310_vm5, %vm2300_vm4 }
 0x166   : > { %v5688_v23 = vpop.f32.mrf.mxu0  ;;  %v7237_v52 = vadd.s32 1, %v2176_v53 }
 0x167   : > { %v5724_v35 = vpop.f32.mrf.mxu1 }
 0x168   : > { %v7177_v8 = vpop.f32.mrf.mxu0 }
 0x169   : > { %v7179_v37 = vpop.f32.mrf.mxu1 }
 0x16a   : > { %v5689_v29 = vpop.f32.mrf.mxu0 }
 0x16b   : > { %v5725_v40 = vpop.f32.mrf.mxu1 }
 0x16c   : > { %v7183_v45 = vpop.f32.mrf.mxu0  ;;  %v7231_v29 = vmul.u32.u64.low 3435973837, %v7222_v11  ;;  %v7232_v40 = vmul.u32.u64.high 3435973837, %v7222_v11, %v7231_v29 }
 0x16d   : > { %v7185_v38 = vpop.f32.mrf.mxu1 }
 0x16e   : > { %v5692_v46 = vpop.f32.mrf.mxu0 }
 0x16f   : > { %v5728_v50 = vpop.f32.mrf.mxu1  ;;  %v2209_v46 = vsub.s32 %v2181_v15, %v2208_v59  ;;  %v2220_v15 = vsub.s32 %v2182_v32, %v2219_v24  ;;  %v2251_v32 = vshrl.u32 %v7232_v40, 3 }
 0x170   : > { %v7194_v56 = vpop.f32.mrf.mxu0  ;;  %v7278_v24 = vmul.u32.u64.low 3435973837, %v7256_v19  ;;  %v7279_v34 = vmul.u32.u64.high 3435973837, %v7256_v19, %v7278_v24 }
 0x171   : > { %v7196_v57 = vpop.f32.mrf.mxu1  ;;  %vm2301_vm6 = vcmp.ne.s32.totalorder %v2209_v46, 0  ;;  %vm2311_vm7 = vcmp.lt.s32.totalorder %v2209_v46, 0  ;;  %v2331_v13 = vadd.s32 10, %v2209_v46  ;;  %vm2302_vm10 = vcmp.ne.s32.totalorder %v2220_v15, 0  ;;  %v2492_v24 = vld [vmem:[#allocation2] sm:$0x8] }
 0x172   : > { %v5693_v42 = vpop.f32.mrf.mxu0  ;;  %vm2321_vm9 = vmand %vm2311_vm7, %vm2301_vm6  ;;  %vm2312_vm11 = vcmp.lt.s32.totalorder %v2220_v15, 0  ;;  %v2332_v40 = vadd.s32 10, %v2220_v15 }
 0x173   : > { %v5729_v62 = vpop.f32.mrf.mxu1  ;;  %v7268_v29 = vsel %vm2321_vm9, %v2331_v13, %v2209_v46  ;;  %vm7273_vm12 = vmand %vm2312_vm11, %vm2302_vm10  ;;  %v1677_v46 = vadd.f32 %v7177_v8, %v7150_v41  ;;  %v7302_v8 = vld [vmem:[%s8247_s3] ss:$0 sm:$0xff]  ;;  %v1678_v13 = vadd.f32 %v7183_v45, %v7153_v47 }
 0x174   : > { %v7202_v5 = vpop.f32.mrf.mxu0  ;;  %v2230_v62 = vmul.u32 10, %v2229_v49  ;;  %v7281_v49 = vadd.s32 1, %v2178_v20  ;;  %vm2351_vm5 = vcmp.ge.s32.totalorder %v7268_v29, 1  ;;  %v7297_v41 = vsel %vm7273_vm12, %v2332_v40, %v2220_v15 }
 0x175   : > { %v7204_v51 = vpop.f32.mrf.mxu1  ;;  %v1874_v15 = vadd.f32 %v7179_v37, %v1677_v46  ;;  %vm2361_vm9 = vcmp.le.s32.totalorder %v7268_v29, 8  ;;  %vm2352_vm10 = vcmp.ge.s32.totalorder %v7297_v41, 1  ;;  %vm2362_vm11 = vcmp.le.s32.totalorder %v7297_v41, 8 }
 0x176   : > { %v5696_v7 = vpop.f32.mrf.mxu0  ;;  %v2273_v40 = vshrl.u32 %v7279_v34, 3 }
 0x177   : > { %v5732_v60 = vpop.f32.mrf.mxu1  ;;  %v7246_v0 = vmul.u32.u64.low 3435973837, %v7237_v52  ;;  %v7247_v7 = vmul.u32.u64.high 3435973837, %v7237_v52, %v7246_v0 }
 0x178   : > { %v7214_v18 = vpop.f32.mrf.mxu0  ;;  %v2330_v60 = vadd.s32 10, %v2198_v33 }
 0x179   : > { %v7216_v48 = vpop.f32.mrf.mxu1  ;;  %v2262_v39 = vshrl.u32 %v7247_v7, 3 }
 0x17a   : > { %v5697_v21 = vpop.f32.mrf.mxu0 }
 0x17b   : > { %v5733_v26 = vpop.f32.mrf.mxu1  ;;  %v1676_v21 = vadd.f32 %v7170_v31, %v7147_v36 }
 0x17c   : > { %v7225_v28 = vpop.f32.mrf.mxu0  ;;  %v2231_v26 = vsub.s32 %v2183_v3, %v2230_v62  ;;  %v2252_v3 = vmul.u32 10, %v2251_v32  ;;  %v2263_v32 = vmul.u32 10, %v2262_v39 }
 0x17d   : > { %v7228_v23 = vpop.f32.mrf.mxu1 }
 0x17e   : > { %v5700_v35 = vpop.f32.mrf.mxu0  ;;  %vm2303_vm13 = vcmp.ne.s32.totalorder %v2231_v26, 0  ;;  %vm2313_vm14 = vcmp.lt.s32.totalorder %v2231_v26, 0  ;;  %v2253_v7 = vsub.s32 %v7222_v11, %v2252_v3  ;;  %v2466_v3 = vld [vmem:[#allocation2 + $0x4] sm:$0xf]  ;;  %v2264_v34 = vsub.s32 %v7237_v52, %v2263_v32 }
 0x17f   : > { %v5736_v44 = vpop.f32.mrf.mxu1  ;;  %v2340_v35 = vsel %vm7251_vm8, %v2330_v60, %v2198_v33  ;;  %v1873_v33 = vadd.f32 %v7172_v2, %v1676_v21  ;;  %v2333_v2 = vadd.s32 10, %v2231_v26  ;;  %vm2323_vm6 = vmand %vm2313_vm14, %vm2303_vm13 }
 0x180   : > { %v7235_v50 = vpop.f32.mrf.mxu0  ;;  %v7271_v44 = vsub.s32 %v7206_v6, %v2241_v14  ;;  %vm2350_vm15 = vcmp.ge.s32.totalorder %v2340_v35, 1  ;;  %vm2360_vm4 = vcmp.le.s32.totalorder %v2340_v35, 8  ;;  %vm2305_vm13 = vcmp.ne.s32.totalorder %v2253_v7, 0 }
 0x181   : > { %v7239_v54 = vpop.f32.mrf.mxu1  ;;  %v7308_v12 = vmul.u32.u64.low 3435973837, %v7281_v49  ;;  %v7309_v60 = vmul.u32.u64.high 3435973837, %v7281_v49, %v7308_v12  ;;  %vm2315_vm14 = vcmp.lt.s32.totalorder %v2253_v7, 0 }
 0x182   : > { %v5701_v58 = vpop.f32.mrf.mxu0  ;;  %vm2304_vm7 = vcmp.ne.s32.totalorder %v7271_v44, 0  ;;  %vm2314_vm8 = vcmp.lt.s32.totalorder %v7271_v44, 0  ;;  %v2334_v37 = vadd.s32 10, %v7271_v44 }
 0x183   : > { %v5737_v42 = vpop.f32.mrf.mxu1  ;;  %v7289_v58 = vld [vmem:[%s8246_s2] ss:$0 sm:$0xff]  ;;  %vm7329_vm12 = vmand %vm2314_vm8, %vm2304_vm7 }
 0x184   : > { %v7243_v63 = vpop.f32.mrf.mxu0  ;;  %v7292_v42 = vadd.s32 1, %v2179_v27  ;;  %v7322_v27 = vsel %vm2323_vm6, %v2333_v2, %v2231_v26  ;;  %v1875_v26 = vadd.f32 %v7185_v38, %v1678_v13  ;;  %vm7340_vm6 = vmand %vm2350_vm15, %vm2360_vm4  ;;  %v2335_v38 = vadd.s32 10, %v2253_v7 }
 0x185   : > { %v7249_v9 = vpop.f32.mrf.mxu1  ;;  %vm2353_vm7 = vcmp.ge.s32.totalorder %v7322_v27, 1  ;;  %vm2363_vm8 = vcmp.le.s32.totalorder %v7322_v27, 8  ;;  %v7351_v35 = vsel %vm7329_vm12, %v2334_v37, %v7271_v44  ;;  %vm2325_vm15 = vmand %vm2315_vm14, %vm2305_vm13  ;;  %v7363_v2 = vcombine.low %v2492_v24, %v2466_v3 }
 0x186   : > { %v5704_v16 = vpop.f32.mrf.mxu0  ;;  %v7318_v20 = vmul.u32.u64.low 3435973837, %v7292_v42  ;;  %v7319_v11 = vmul.u32.u64.high 3435973837, %v7292_v42, %v7318_v20  ;;  %vm7359_vm4 = vmand %vm2351_vm5, %vm2361_vm9  ;;  %vm2306_vm5 = vcmp.ne.s32.totalorder %v2264_v34, 0  ;;  %vm2316_vm9 = vcmp.lt.s32.totalorder %v2264_v34, 0 }
 0x187   : > { %v5740_v25 = vpop.f32.mrf.mxu1  ;;  %vm2354_vm12 = vcmp.ge.s32.totalorder %v7351_v35, 1  ;;  %vm2364_vm13 = vcmp.le.s32.totalorder %v7351_v35, 8  ;;  %vm2326_vm14 = vmand %vm2316_vm9, %vm2306_vm5  ;;  %v6315_v35 = vld [vmem:[%s8248_s4 + $0xb8] sm:$0xff]  }
 0x188   : > { %v7261_v59 = vpop.f32.mrf.mxu0  ;;  %v2295_v32 = vshrl.u32 %v7319_v11, 3  ;;  %v1681_v11 = vadd.f32 %v7214_v18, %v7160_v4  ;;  %vm7406_vm9 = vmand %vm2353_vm7, %vm2363_vm8  ;;  %vm2679_vm8 = vsmask.f32 5376 }
 0x189   : > { %v7264_v53 = vpop.f32.mrf.mxu1 }
 0x18a   : > { %v5705_v36 = vpop.f32.mrf.mxu0  ;;  %v1878_v46 = vadd.f32 %v7216_v48, %v1681_v11 }
 0x18b   : > { %v5741_v6 = vpop.f32.mrf.mxu1  ;;  %v1679_v36 = vadd.f32 %v7194_v56, %v7156_v55 }
 0x18c   : > { %v2076_v43 = vpop.f32.mrf.mxu0 }
 0x18d   : > { %v2115_v62 = vadd.f32 %v2076_v43, %v1873_v33  ;;  %v2465_v33 = vld [vmem:[#allocation2] sm:$0xc]  ;;  %v1876_v44 = vadd.f32 %v7196_v57, %v1679_v36 }
 0x18e   : > { %v5760_v0 = vpop.f32.mrf.mxu0  ;;  %v7366_v12 = vcombine.low %v2465_v33, %v2466_v3 }
 0x18f   : > { %v2132_v14 = vmul.f32 %v7289_v58, %v2115_v62  ;;  %v2274_v62 = vmul.u32 10, %v2273_v40  ;;  %v2284_v0 = vshrl.u32 %v7309_v60, 3 }
 0x190   : > { %v2079_v16 = vpop.f32.mrf.mxu0  ;;  %v2684_v39 = vshll.u32 %v7366_v12, 16 }
 0x191   : > { %v2149_v21 = vadd.f32 %v7302_v8, %v2132_v14  ;;  %v2116_v25 = vadd.f32 %v2079_v16, %v1874_v15  ;;  %v1680_v15 = vadd.f32 %v7202_v5, %v7158_v61  ;;  %v7372_v16 = vsel %vm2325_vm15, %v2335_v38, %v2253_v7 }
 0x192   : > { %v5761_v47 = vpop.f32.mrf.mxu0  ;;  %v2275_v7 = vsub.s32 %v7256_v19, %v2274_v62  ;;  %v2285_v37 = vmul.u32 10, %v2284_v0  ;;  %vm2538_vm15 = vcmask 1044480   ;;  %v2539_v19 = vrot.slane %v7363_v2, 3 }
 0x193   : > { %v2133_v31 = vmul.f32 %v7289_v58, %v2116_v25  ;;  %v2159_v55 = vmax.f32 %v2149_v21, 0.0  ;;  %v2336_v25 = vadd.s32 10, %v2264_v34  ;;  %v1877_v47 = vadd.f32 %v7204_v51, %v1680_v15 }
 0x194   : > { %v2084_v6 = vpop.f32.mrf.mxu0  ;;  %v2296_v51 = vmul.u32 10, %v2295_v32  ;;  %vm2365_vm5 = vcmp.le.s32.totalorder %v7372_v16, 8  ;;  %v2286_v41 = vsub.s32 %v7281_v49, %v2285_v37 }
 0x195   : > { %v2150_v56 = vadd.f32 %v7302_v8, %v2133_v31  ;;  %v2117_v43 = vadd.f32 %v2084_v6, %v1875_v26  ;;  %v2400_v60 = vsel %vm7340_vm6, %v2159_v55, 0.0  ;;  %vm2355_vm6 = vcmp.ge.s32.totalorder %v7372_v16, 1 }
 0x196   : > { %v5764_v52 = vpop.f32.mrf.mxu0  ;;  %v2681_v26 = vshrl.u32 %v7366_v12, 16  ;;  %v7410_v33 = vsel %vm2326_vm14, %v2336_v25, %v2264_v34  ;;  %v1682_v6 = vadd.f32 %v7225_v28, %v7162_v10  ;;  %v7421_v34 = vsub.s32 %v7292_v42, %v2296_v51  ;;  %v6317_v51 = vld [vmem:[%s8248_s4 + $0xb0] sm:$0xff]  }
 0x197   : > { %v2160_v13 = vmax.f32 %v2150_v56, 0.0  ;;  %v2134_v29 = vmul.f32 %v7289_v58, %v2117_v43  ;;  %v2337_v56 = vadd.s32 10, %v2275_v7  ;;  %v1683_v52 = vadd.f32 %v7235_v50, %v7164_v17 }
 0x198   : > { %v2087_v14 = vpop.f32.mrf.mxu0  ;;  %v7417_v43 = vrot.slane %v2681_v26, 2  ;;  %vm2356_vm14 = vcmp.ge.s32.totalorder %v7410_v33, 1  ;;  %vm2308_vm3 = vcmp.ne.s32.totalorder %v2286_v41, 0  ;;  %vm2318_vm2 = vcmp.lt.s32.totalorder %v2286_v41, 0 }
 0x199   : > { %v2401_v20 = vsel %vm7359_vm4, %v2160_v13, 0.0  ;;  %v2151_v57 = vadd.f32 %v7302_v8, %v2134_v29  ;;  %v2118_v21 = vadd.f32 %v2087_v14, %v1876_v44  ;;  %vm7396_vm4 = vmand %vm2352_vm10, %vm2362_vm11  ;;  %vm2307_vm10 = vcmp.ne.s32.totalorder %v2275_v7, 0 }
 0x19a   : > { %v5186_v61 = vpack.c.bf16 %v2401_v20, %v2400_v60  ;;  %v5765_v5 = vpop.f32.mrf.mxu0  ;;  %vm2317_vm11 = vcmp.lt.s32.totalorder %v2275_v7, 0  ;;  %v1879_v42 = vadd.f32 %v7228_v23, %v1682_v6  ;;  %v2338_v13 = vadd.s32 10, %v2286_v41 }
 0x19b   : > { %v2135_v45 = vmul.f32 %v7289_v58, %v2118_v21  ;;  %v2161_v36 = vmax.f32 %v2151_v57, 0.0  ;;  %vm2327_vm7 = vmand %vm2317_vm11, %vm2307_vm10  ;;  %v2686_v29 = vrot.slane %v2684_v39, 3  ;;  %vm2309_vm10 = vcmp.ne.s32.totalorder %v7421_v34, 0 }
 0x19c   : > { %5203 = vst [vmem:[#allocation2 + $0x8] sm:$0xff] %v5186_v61   ;;  %v2092_v40 = vpop.f32.mrf.mxu0  ;;  %v2347_v15 = vsel %vm2327_vm7, %v2337_v56, %v2275_v7  ;;  %v1880_v20 = vadd.f32 %v7239_v54, %v1683_v52  ;;  %vm2319_vm11 = vcmp.lt.s32.totalorder %v7421_v34, 0  ;;  %v1684_v25 = vadd.f32 %v7243_v63, %v7166_v22  ;;  %v6319_v56 = vld [vmem:[%s8248_s4 + $0xa8] sm:$0xff]  }
 0x19d   : > { %v2152_v18 = vadd.f32 %v7302_v8, %v2135_v45  ;;  %v2119_v31 = vadd.f32 %v2092_v40, %v1877_v47  ;;  %v2402_v49 = vsel %vm7396_vm4, %v2161_v36, 0.0  ;;  %vm2366_vm4 = vcmp.le.s32.totalorder %v7410_v33, 8 }
 0x19e   : > { %v5768_v24 = vpop.f32.mrf.mxu0  ;;  %v2687_v11 = vor.u32 %v2686_v29, %v7417_v43  ;;  %v2339_v3 = vadd.s32 10, %v7421_v34  ;;  %vm7517_vm7 = vmand %vm2356_vm14, %vm2366_vm4 }
 0x19f   : > { %v2162_v38 = vmax.f32 %v2152_v18, 0.0  ;;  %v2136_v55 = vmul.f32 %v7289_v58, %v2119_v31  ;;  %v6320_v24 = vld [vmem:[%s8248_s4 + $0xf8] sm:$0xff]  }
 0x1a0   : > { %v2095_v27 = vpop.f32.mrf.mxu0 }
 0x1a1   : > { %v2403_v48 = vsel %vm7406_vm9, %v2162_v38, 0.0  ;;  %v2153_v10 = vadd.f32 %v7302_v8, %v2136_v55  ;;  %v2120_v28 = vadd.f32 %v2095_v27, %v1878_v46  ;;  %vm7442_vm9 = vmand %vm2354_vm12, %vm2364_vm13  ;;  %v1685_v46 = vadd.f32 %v7261_v59, %v7168_v30 }
 0x1a2   : > { %v5191_v62 = vpack.c.bf16 %v2403_v48, %v2402_v49  ;;  %v5769_v0 = vpop.f32.mrf.mxu0  ;;  %vm2328_vm12 = vmand %vm2318_vm2, %vm2308_vm3  ;;  %vm2357_vm2 = vcmp.ge.s32.totalorder %v2347_v15, 1  ;;  %v2882_v30 = vshrl.u32 %v7363_v2, 16  ;;  %v3050_v49 = vld [vmem:[#allocation2 + $0x4] sm:$0x8] }
 0x1a3   : > { %v2137_v12 = vmul.f32 %v7289_v58, %v2120_v28  ;;  %v7436_v44 = vld [vmem:[#allocation2 + $0x8] sm:$0xff]   ;;  %v2163_v23 = vmax.f32 %v2153_v10, 0.0  ;;  %vm7459_vm13 = vmand %vm2355_vm6, %vm2365_vm5  ;;  %v7472_v47 = vsel %vm2328_vm12, %v2338_v13, %v2286_v41  ;;  %v1881_v41 = vadd.f32 %v7249_v9, %v1684_v25 }
 0x1a4   : > { %5204 = vst [vmem:[#allocation2 + $0x10] sm:$0xff] %v5191_v62   ;;  %v2100_v50 = vpop.f32.mrf.mxu0  ;;  %v2540_v60 = vrot.slane %v7436_v44, 3  ;;  %v2689_v61 = vshrl.u32 %v7436_v44, 16  ;;  %v2692_v5 = vshll.u32 %v7436_v44, 16  ;;  %vm7494_vm3 = vmand %vm2319_vm11, %vm2309_vm10  ;;  %vm2367_vm6 = vcmp.le.s32.totalorder %v2347_v15, 8 }
 0x1a5   : > { %v2154_v14 = vadd.f32 %v7302_v8, %v2137_v12  ;;  %v2121_v32 = vadd.f32 %v2100_v50, %v1879_v42  ;;  %v2404_v22 = vsel %vm7442_vm9, %v2163_v23, 0.0  ;;  %vm2358_vm5 = vcmp.ge.s32.totalorder %v7472_v47, 1  ;;  %vm7524_vm9 = vmand %vm2357_vm2, %vm2367_vm6  ;;  %v6322_v23 = vld [vmem:[%s8248_s4 + $0xa0] sm:$0xff]  }
 0x1a6   : > { %v5772_v21 = vpop.f32.mrf.mxu0  ;;  %v2541_v16 = vsel %vm2538_vm15, %v2539_v19, %v2540_v60  ;;  %v2691_v45 = vrot.slane %v2689_v61, 2  ;;  %v2694_v40 = vrot.slane %v2692_v5, 3  ;;  %vm2368_vm10 = vcmp.le.s32.totalorder %v7472_v47, 8 }
 0x1a7   : > { %v2164_v7 = vmax.f32 %v2154_v14, 0.0  ;;  %v2138_v54 = vmul.f32 %v7289_v58, %v2121_v32  ;;  %5795 = vmatmul.mubr.bf16.vlgmr.msra.gmra.mxu1 %v2541_v16  ;;  %v2349_v33 = vsel %vm7494_vm3, %v2339_v3, %v7421_v34  ;;  %v1882_v52 = vadd.f32 %v7264_v53, %v1685_v46  ;;  %v6323_v34 = vld [vmem:[%s8248_s4 + $0xf0] sm:$0xff]   ;;  %vm2378_vm14 = vmand %vm2358_vm5, %vm2368_vm10  ;;  %v6330_v46 = vld [vmem:[%s8248_s4 + $0x88] sm:$0xff]  }
 0x1a8   : > { %v2103_v37 = vpop.f32.mrf.mxu0  ;;  %5851 = vmatpush3.bf16.msra.mxu1 %v6315_v35  ;;  %5798 = vmatprep.mubr.msk.bf16.mxu1 %vm6424_vm0, %v6423_v1  ;;  %v2695_v18 = vor.u32 %v2694_v40, %v2691_v45  ;;  %vm2359_vm4 = vcmp.ge.s32.totalorder %v2349_v33, 1  ;;  %vm2369_vm12 = vcmp.le.s32.totalorder %v2349_v33, 8  ;;  %v6325_v35 = vld [vmem:[%s8248_s4 + $0xe8] sm:$0xff]   ;;  %vm8286_vm6 = vsmask.f32 6400 }
 0x1a9   : > { %v2405_v63 = vsel %vm7459_vm13, %v2164_v7, 0.0  ;;  %v2155_v19 = vadd.f32 %v7302_v8, %v2138_v54  ;;  %v2122_v26 = vadd.f32 %v2103_v37, %v1880_v20  ;;  %5852 = vmatprep.subr.bf16.mxu1 %v6423_v1  ;;  %vm2379_vm13 = vmand %vm2359_vm4, %vm2369_vm12 }
 0x1aa   : > { %v5196_v36 = vpack.c.bf16 %v2405_v63, %v2404_v22  ;;  %v5773_v4 = vpop.f32.mrf.mxu0  ;;  %v2696_v27 = vsel %vm2679_vm8, %v2687_v11, %v2695_v18  ;;  %v6327_v22 = vld [vmem:[%s8248_s4 + $0xe0] sm:$0xff]   ;;  %vm8287_vm5 = vmmov %vm8286_vm6 }
 0x1ab   : > { %v2139_v6 = vmul.f32 %v7289_v58, %v2122_v26  ;;  %v7506_v38 = vld [vmem:[#allocation2 + $0x10] sm:$0xff]   ;;  %v2165_v43 = vmax.f32 %v2155_v19, 0.0  ;;  %5831 = vmatmul.mubr.bf16.vlgmr.msra.gmra.mxu0 %v2696_v27  ;;  %v6329_v4 = vld [vmem:[%s8248_s4 + $0xd8] sm:$0xff]   ;;  %vm8290_vm10 = vmmov %vm8287_vm5 }
 0x1ac   : > { %5205 = vst [vmem:[#allocation2 + $0x18] sm:$0xff] %v5196_v36   ;;  %v2108_v55 = vpop.f32.mrf.mxu0  ;;  %5853 = vmatpush3.bf16.msra.mxu1 %v6317_v51  ;;  %v2542_v39 = vrot.slane %v7506_v38, 3  ;;  %5834 = vmatprep.mubr.msk.bf16.mxu0 %vm6424_vm0, %v6423_v1  ;;  %v2698_v10 = vshrl.u32 %v7506_v38, 16  ;;  %v2701_v28 = vshll.u32 %v7506_v38, 16  ;;  %v6328_v26 = vld [vmem:[%s8248_s4 + $0x90] sm:$0xff]   ;;  %v6342_v38 = vld [vmem:[%s8248_s4 + $0x178] sm:$0xff]  }
 0x1ad   : > { %v2156_v9 = vadd.f32 %v7302_v8, %v2139_v6  ;;  %v2123_v59 = vadd.f32 %v2108_v55, %v1881_v41  ;;  %5854 = vmatprep.subr.bf16.mxu1 %v6423_v1  ;;  %5887 = vmatpush3.bf16.msra.mxu0 %v6320_v24  ;;  %v2406_v50 = vsel %vm7517_vm7, %v2165_v43, 0.0  ;;  %vm8288_vm7 = vmmov %vm8287_vm5 }
 0x1ae   : > { %v5776_v48 = vpop.f32.mrf.mxu0  ;;  %v2543_v42 = vsel %vm2538_vm15, %v2540_v60, %v2542_v39  ;;  %v2700_v17 = vrot.slane %v2698_v10, 2  ;;  %v2703_v53 = vrot.slane %v2701_v28, 3  ;;  %5888 = vmatprep.subr.bf16.mxu0 %v6423_v1 }
 0x1af   : > { %v2166_v62 = vmax.f32 %v2156_v9, 0.0  ;;  %v2140_v0 = vmul.f32 %v7289_v58, %v2123_v59  ;;  %5799 = vmatmul.mubr.bf16.gmra.mxu1 %v2543_v42  ;;  %v6333_v59 = vld [vmem:[%s8248_s4 + $0x80] sm:$0xff]   ;;  %v7632_v48 = vld [vmem:[#allocation2 + $0x10] sm:$0xf] }
 0x1b0   : > { %v2111_v12 = vpop.f32.mrf.mxu0  ;;  %5855 = vmatpush3.bf16.msra.mxu1 %v6319_v56  ;;  %5802 = vmatprep.mubr.msk.bf16.mxu1 %vm6424_vm0, %v6423_v1  ;;  %v2704_v60 = vor.u32 %v2703_v53, %v2700_v17  ;;  %v6332_v56 = vld [vmem:[%s8248_s4 + $0xd0] sm:$0xff]  }
 0x1b1   : > { %v2407_v15 = vsel %vm7524_vm9, %v2166_v62, 0.0  ;;  %v2157_v13 = vadd.f32 %v7302_v8, %v2140_v0  ;;  %v2124_v29 = vadd.f32 %v2111_v12, %v1882_v52  ;;  %5856 = vmatprep.subr.bf16.mxu1 %v6423_v1  ;;  %5889 = vmatpush3.bf16.msra.mxu0 %v6323_v34  ;;  %v7635_v62 = vld [vmem:[#allocation2 + $0x8] sm:$0xf]  ;;  %v7637_v0 = vld [vmem:[#allocation2 + $0xc] sm:$0xf]  ;;  %vm8289_vm9 = vmmov %vm8287_vm5 }
 0x1b2   : > { %v5201_v14 = vpack.c.bf16 %v2407_v15, %v2406_v50  ;;  %v5777_v32 = vpop.f32.mrf.mxu0  ;;  %v2705_v25 = vsel %vm2679_vm8, %v2695_v18, %v2704_v60  ;;  %5890 = vmatprep.subr.bf16.mxu0 %v6423_v1  ;;  %v6334_v12 = vld [vmem:[%s8248_s4 + $0xc8] sm:$0xff]   ;;  %v4992_v53 = vcombine.low %v7637_v0, %v7632_v48  ;;  %v2884_v50 = vrot.slane %v2882_v30, 3 }
 0x1b3   : > { %v2167_v20 = vmax.f32 %v2157_v13, 0.0  ;;  %v2141_v57 = vmul.f32 %v7289_v58, %v2124_v29  ;;  %v7569_v21 = vld [vmem:[#allocation2 + $0x18] sm:$0xff]   ;;  %5835 = vmatmul.mubr.bf16.gmra.mxu0 %v2705_v25  ;;  %v4991_v15 = vcombine.low %v3050_v49, %v7635_v62  ;;  %v6335_v32 = vld [vmem:[%s8248_s4 + $0xc0] sm:$0xff]  }
 0x1b4   : > { %5206 = vst [vmem:[#allocation2 + $0x20] sm:$0xff] %v5201_v14   ;;  %v2544_v16 = vrot.slane %v7569_v21, 3  ;;  %5857 = vmatpush3.bf16.msra.mxu1 %v6322_v23  ;;  %v2707_v37 = vshrl.u32 %v7569_v21, 16  ;;  %v6324_v58 = vld [vmem:[%s8248_s4 + $0x98] sm:$0xff]   ;;  %5838 = vmatprep.mubr.msk.bf16.mxu0 %vm6424_vm0, %v6423_v1  ;;  %v2710_v11 = vshll.u32 %v7569_v21, 16  ;;  %v2889_v23 = vrot.slane %v2689_v61, 3 }
 0x1b5   : > { %v2408_v7 = vsel %vm2378_vm14, %v2167_v20, 0.0  ;;  %v2158_v54 = vadd.f32 %v7302_v8, %v2141_v57  ;;  %5858 = vmatprep.subr.bf16.mxu1 %v6423_v1  ;;  %5891 = vmatpush3.bf16.msra.mxu0 %v6325_v35  ;;  %v2890_v14 = vrot.slane %v2692_v5, 4  ;;  %v3115_v35 = vshrl.u32 %v4992_v53, 16  ;;  %v7661_v57 = vld [vmem:[#allocation2 + $0x18] sm:$0xf] }
 0x1b6   : > { %v5181_v47 = vpack.c.bf16 %v2408_v7, %v2408_v7  ;;  %v2545_v45 = vsel %vm2538_vm15, %v2542_v39, %v2544_v16  ;;  %v2709_v40 = vrot.slane %v2707_v37, 2  ;;  %v2712_v63 = vrot.slane %v2710_v11, 3  ;;  %5892 = vmatprep.subr.bf16.mxu0 %v6423_v1  ;;  %v7663_v7 = vld [vmem:[#allocation2 + $0x14] sm:$0xf] }
 0x1b7   : > { %v2168_v8 = vmax.f32 %v2158_v54, 0.0  ;;  %5803 = vmatmul.mubr.bf16.gmra.mxu1 %v2545_v45  ;;  %v2885_v39 = vshll.u32 %v7363_v2, 16  ;;  %v3118_v20 = vshll.u32 %v4992_v53, 16  ;;  %v3107_v25 = vshrl.u32 %v4991_v15, 16  ;;  %v6346_v53 = vld [vmem:[%s8248_s4 + $0x118] sm:$0xff]  }
 0x1b8   : > { %2460 = vst [vmem:[#allocation2 + $0x28] sm:$0xf] %v5181_v47  ;;  %5859 = vmatpush3.bf16.msra.mxu1 %v6324_v58  ;;  %5806 = vmatprep.mubr.msk.bf16.mxu1 %vm6424_vm0, %v6423_v1  ;;  %v2713_v36 = vor.u32 %v2712_v63, %v2709_v40  ;;  %v3110_v61 = vshll.u32 %v4991_v15, 16  ;;  %v2891_v5 = vor.u32 %v2890_v14, %v2889_v23  ;;  %v2893_v63 = vrot.slane %v2698_v10, 3 }
 0x1b9   : > { %v2409_v19 = vsel %vm2379_vm13, %v2168_v8, 0.0  ;;  %5860 = vmatprep.subr.bf16.mxu1 %v6423_v1  ;;  %5893 = vmatpush3.bf16.msra.mxu0 %v6327_v22  ;;  %v2887_v29 = vrot.slane %v2885_v39, 4  ;;  %v3120_v58 = vrot.slane %v3118_v20, 4  ;;  %v4993_v47 = vcombine.low %v7663_v7, %v7661_v57  ;;  %v6336_v8 = vld [vmem:[%s8248_s4 + $0x138] sm:$0xff]  }
 0x1ba   : > { %v5182_v51 = vpack.c.bf16 %v2409_v19, %v2409_v19  ;;  %v2714_v31 = vsel %vm2679_vm8, %v2704_v60, %v2713_v36  ;;  %5894 = vmatprep.subr.bf16.mxu0 %v6423_v1  ;;  %v3109_v45 = vrot.slane %v3107_v25, 3  ;;  %v3112_v40 = vrot.slane %v3110_v61, 4 }
 0x1bb   : > { %v7603_v18 = vld [vmem:[#allocation2 + $0x20] sm:$0xff]   ;;  %5839 = vmatmul.mubr.bf16.gmra.mxu0 %v2714_v31  ;;  %v2888_v44 = vor.u32 %v2887_v29, %v2884_v50  ;;  %v2894_v19 = vrot.slane %v2701_v28, 4  ;;  %v7690_v28 = vld [vmem:[#allocation2 + $0x1c] sm:$0xf]  ;;  %v2897_v30 = vrot.slane %v2707_v37, 3 }
 0x1bc   : > { %2461 = vst [vmem:[#allocation2 + $0x2c] sm:$0x7] %v5182_v51  ;;  %v2546_v3 = vrot.slane %v7603_v18, 3  ;;  %5861 = vmatpush3.bf16.msra.mxu1 %v6328_v26  ;;  %v2716_v24 = vshrl.u32 %v7603_v18, 16  ;;  %v2719_v41 = vshll.u32 %v7603_v18, 16  ;;  %5842 = vmatprep.mubr.msk.bf16.mxu0 %vm6424_vm0, %v6423_v1  ;;  %v3124_v51 = vshrl.u32 %v4993_v47, 16 }
 0x1bd   : > { %5862 = vmatprep.subr.bf16.mxu1 %v6423_v1  ;;  %5895 = vmatpush3.bf16.msra.mxu0 %v6329_v4  ;;  %v6339_v4 = vld [vmem:[%s8248_s4 + $0x130] sm:$0xff]   ;;  %v7684_v31 = vld [vmem:[#allocation2 + $0x20] sm:$0xf]  ;;  %v2895_v10 = vor.u32 %v2894_v19, %v2893_v63 }
 0x1be   : > { %v2547_v6 = vsel %vm2538_vm15, %v2544_v16, %v2546_v3  ;;  %v2718_v55 = vrot.slane %v2716_v24, 2  ;;  %v2721_v27 = vrot.slane %v2719_v41, 3  ;;  %5896 = vmatprep.subr.bf16.mxu0 %v6423_v1  ;;  %v3117_v16 = vrot.slane %v3115_v35, 3  ;;  %v6343_v37 = vld [vmem:[%s8248_s4 + $0x120] sm:$0xff]   ;;  %v6349_v18 = vld [vmem:[%s8248_s4 + $0x110] sm:$0xff]   ;;  %v6351_v35 = vld [vmem:[%s8248_s4 + $0x158] sm:$0xff]  }
 0x1bf   : > { %5807 = vmatmul.mubr.bf16.gmra.mxu1 %v2547_v6  ;;  %v6331_v43 = vld [vmem:[#allocation2 + $0x28] ss:$0 sps:$4 sm:$0x77]   ;;  %v3126_v6 = vrot.slane %v3124_v51, 3  ;;  %v2901_v15 = vrot.slane %v2716_v24, 3  ;;  %v6348_v29 = vld [vmem:[%s8248_s4 + $0x160] sm:$0xff]  }
 0x1c0   : > { %v2722_v9 = vor.u32 %v2721_v27, %v2718_v55  ;;  %5810 = vmatprep.mubr.msk.bf16.mxu1 %vm6424_vm0, %v6423_v1  ;;  %5863 = vmatpush3.bf16.msra.mxu1 %v6330_v46  ;;  %v2725_v33 = vshrl.u32 %v6331_v43, 16  ;;  %v2728_v52 = vshll.u32 %v6331_v43, 16  ;;  %v2548_v34 = vrot.slane %v6331_v43, 3  ;;  %v7715_v21 = vld [vmem:[#allocation2 + $0x28] sm:$0xf]  ;;  %v6356_v19 = vld [vmem:[%s8248_s4 + $0x100] sm:$0xff]  }
 0x1c1   : > { %5864 = vmatprep.subr.bf16.mxu1 %v6423_v1  ;;  %5897 = vmatpush3.bf16.msra.mxu0 %v6332_v56  ;;  %v3121_v26 = vor.u32 %v3120_v58, %v3117_v16  ;;  %v4994_v27 = vcombine.low %v7690_v28, %v7684_v31  ;;  %v6340_v56 = vld [vmem:[%s8248_s4 + $0x128] sm:$0xff]  }
 0x1c2   : > { %v2723_v42 = vsel %vm2679_vm8, %v2713_v36, %v2722_v9  ;;  %v2727_v2 = vrot.slane %v2725_v33, 2  ;;  %v2730_v17 = vrot.slane %v2728_v52, 3  ;;  %5898 = vmatprep.subr.bf16.mxu0 %v6423_v1  ;;  %v2549_v13 = vsel %vm2538_vm15, %v2546_v3, %v2548_v34  ;;  %v6347_v52 = vld [vmem:[%s8248_s4 + $0x168] sm:$0xff]  }
 0x1c3   : > { %5843 = vmatmul.mubr.bf16.gmra.mxu0 %v2723_v42  ;;  %vm2880_vm15 = vsmask.f32 4352  ;;  %v3127_v36 = vshll.u32 %v4993_v47, 16  ;;  %v3113_v3 = vor.u32 %v3112_v40, %v3109_v45  ;;  %v3133_v49 = vshrl.u32 %v4994_v27, 16  ;;  %v7721_v42 = vld [vmem:[#allocation2 + $0x24] sm:$0xf] }
 0x1c4   : > { %5865 = vmatpush3.bf16.msra.mxu1 %v6333_v59  ;;  %5846 = vmatprep.mubr.msk.bf16.mxu0 %vm6424_vm0, %v6423_v1  ;;  %v2731_v60 = vor.u32 %v2730_v17, %v2727_v2  ;;  %v2892_v22 = vsel %vm2880_vm15, %v2888_v44, %v2891_v5  ;;  %v2896_v43 = vsel %vm2880_vm15, %v2891_v5, %v2895_v10  ;;  %v6344_v59 = vld [vmem:[%s8248_s4 + $0x170] sm:$0xff]   ;;  %v3136_v33 = vshll.u32 %v4994_v27, 16  ;;  %v6353_v23 = vld [vmem:[#allocation2 + $0x28] ss:$0 sps:$4 sm:$0xff]   ;;  %v7747_v24 = vld [vmem:[#allocation2 + $0x2c] sm:$0xf] }
 0x1c5   : > { %5922 = vmatprep.subr.bf16.mxu1 %v6423_v1  ;;  %5899 = vmatpush3.bf16.msra.mxu0 %v6334_v12  ;;  %v3122_v46 = vsel %vm2880_vm15, %v3113_v3, %v3121_v26  ;;  %v3129_v55 = vrot.slane %v3127_v36, 4  ;;  %v3135_v12 = vrot.slane %v3133_v49, 3  ;;  %v4995_v17 = vcombine.low %v7721_v42, %v7715_v21  ;;  %v6352_v16 = vld [vmem:[%s8248_s4 + $0x108] sm:$0xff]   ;;  %v6354_v45 = vld [vmem:[%s8248_s4 + $0x150] sm:$0xff]  }
 0x1c6   : > { %5900 = vmatprep.subr.bf16.mxu0 %v6423_v1  ;;  %v2732_v54 = vsel %vm2679_vm8, %v2722_v9, %v2731_v60  ;;  %v2898_v9 = vrot.slane %v2710_v11, 4  ;;  %v3138_v2 = vrot.slane %v3136_v33, 4  ;;  %v2906_v20 = vshrl.u32 %v6353_v23, 16  ;;  %v6357_v51 = vld [vmem:[%s8248_s4 + $0x148] sm:$0xff]   ;;  %v6366_v33 = vld [vmem:[#allocation2 + $0x18] sm:$0xff]  }
 0x1c7   : > { %5811 = vmatmul.mubr.bf16.gmra.mxu1 %v2549_v13  ;;  %v3130_v39 = vor.u32 %v3129_v55, %v3126_v6  ;;  %v2902_v13 = vrot.slane %v2719_v41, 4  ;;  %v3145_v60 = vshll.u32 %v4995_v17, 16  ;;  %v2909_v25 = vshll.u32 %v6353_v23, 16  ;;  %v6362_v55 = vld [vmem:[#allocation2 + $0x10] sm:$0xff]   ;;  %v6372_v23 = vld [vmem:[%s8248_s4 + $0x198] sm:$0xff]  }
 0x1c8   : > { %5866 = vmatprep.mubr.msk.bf16.mxu1 %vm6424_vm0, %v6423_v1  ;;  %v2899_v11 = vor.u32 %v2898_v9, %v2897_v30  ;;  %v3139_v14 = vor.u32 %v3138_v2, %v3135_v12  ;;  %v2908_v47 = vrot.slane %v2906_v20, 3  ;;  %v6360_v30 = vld [vmem:[%s8248_s4 + $0x1b8] sm:$0xff]   ;;  %v5021_v9 = vcombine.low %v7635_v62, %v7637_v0  ;;  %v6370_v2 = vld [vmem:[%s8248_s4 + $0x1f0] sm:$0xff]  }
 0x1c9   : > { %5901 = vmatpush3.bf16.msra.mxu0 %v6335_v32  ;;  %v3131_v34 = vsel %vm2880_vm15, %v3121_v26, %v3130_v39  ;;  %v3142_v32 = vshrl.u32 %v4995_v17, 16  ;;  %v2903_v41 = vor.u32 %v2902_v13, %v2901_v15  ;;  %v3147_v5 = vrot.slane %v3145_v60, 4  ;;  %v6367_v62 = vld [vmem:[%s8248_s4 + $0x1f8] sm:$0xff]   ;;  %v6373_v15 = vld [vmem:[%s8248_s4 + $0x1e8] sm:$0xff]  }
 0x1ca   : > { %5958 = vmatprep.subr.bf16.mxu0 %v6423_v1  ;;  %v2900_v50 = vsel %vm2880_vm15, %v2895_v10, %v2899_v11  ;;  %v3140_v61 = vsel %vm2880_vm15, %v3130_v39, %v3139_v14  ;;  %v6361_v10 = vld [vmem:[#allocation2 + $0x8] sm:$0xff]   ;;  %v5022_v12 = vcombine.low %v7632_v48, %v7663_v7  ;;  %v3521_v17 = vshrl.u32 %v6362_v55, 16  ;;  %v6369_v48 = vld [vmem:[%s8248_s4 + $0x1a0] sm:$0xff]  }
 0x1cb   : > { %5847 = vmatmul.mubr.bf16.gmra.mxu0 %v2732_v54  ;;  %v3144_v44 = vrot.slane %v3142_v32, 3  ;;  %v4996_v54 = vcombine.low %v7747_v24, %v7747_v24  ;;  %v2904_v58 = vsel %vm2880_vm15, %v2899_v11, %v2903_v41  ;;  %v3512_v27 = vshll.u32 %v6361_v10, 16  ;;  %v6375_v32 = vld [vmem:[%s8248_s4 + $0x1e0] sm:$0xff]  }
 0x1cc   : > { %5902 = vmatprep.mubr.msk.bf16.mxu0 %vm6424_vm0, %v6423_v1  ;;  %v3510_v39 = vshrl.u32 %v6361_v10, 16  ;;  %v3529_v60 = vshrl.u32 %v6366_v33, 16  ;;  %vm8281_vm8 = vcmask 1046528  }
 0x1cd   : > { %v3148_v40 = vor.u32 %v3147_v5, %v3144_v44  ;;  %v3154_v63 = vshll.u32 %v4996_v54, 16  ;;  %v5024_v44 = vcombine.low %v7684_v31, %v7721_v42  ;;  %v3690_v5 = vld [vmem:[#allocation2 + $0x10] sm:$0xf]  ;;  %v6383_v31 = vld [vmem:[%s8248_s4 + $0x180] sm:$0xff]   ;;  %vm8282_vm11 = vmmov %vm8281_vm8 }
 0x1ce   : > { %vm8283_vm2 = vmmov %vm8281_vm8 }
 0x1cf   : > { %5867 = vmatmul.mubr.bf16.vlgmr.msra.gmra.mxu1 %v2892_v22  ;;  %v3151_v22 = vshrl.u32 %v4996_v54, 16  ;;  %v3149_v36 = vsel %vm2880_vm15, %v3139_v14, %v3148_v40  ;;  %v3156_v3 = vrot.slane %v3154_v63, 4  ;;  %v5023_v14 = vcombine.low %v7661_v57, %v7690_v28  ;;  %v6376_v57 = vld [vmem:[%s8248_s4 + $0x190] sm:$0xff]   ;;  %vm8284_vm3 = vmmov %vm8283_vm2 }
 0x1d0   : > { %5923 = vmatpush3.bf16.msra.mxu1 %v6336_v8  ;;  %5870 = vmatprep.mubr.msk.bf16.mxu1 %vm6424_vm0, %v6423_v1  ;;  %v2911_v8 = vrot.slane %v2909_v25, 4  ;;  %v6381_v54 = vld [vmem:[%s8248_s4 + $0x1d0] sm:$0xff]  }
 0x1d1   : > { %5924 = vmatprep.subr.bf16.mxu1 %v6423_v1 }
 0x1d2   : > { %v2912_v26 = vor.u32 %v2911_v8, %v2908_v47  ;;  %v3689_v8 = vld [vmem:[#allocation2 + $0xc] sm:$0xf] }
 0x1d3   : > { %5903 = vmatmul.mubr.bf16.vlgmr.msra.gmra.mxu0 %v3122_v46  ;;  %v6359_v46 = vld [vmem:[%s8248_s4 + $0x140] sm:$0xff]   ;;  %v5080_v42 = vcombine.low %v3689_v8, %v3690_v5 }
 0x1d4   : > { %5925 = vmatpush3.bf16.msra.mxu1 %v6339_v4  ;;  %5906 = vmatprep.mubr.msk.bf16.mxu0 %vm6424_vm0, %v6423_v1  ;;  %v3153_v4 = vrot.slane %v3151_v22, 3  ;;  %v7875_v22 = vld [vmem:[#allocation2 + $0x14] sm:$0xff]  }
 0x1d5   : > { %5926 = vmatprep.subr.bf16.mxu1 %v6423_v1  ;;  %5959 = vmatpush3.bf16.msra.mxu0 %v6342_v38  ;;  %v2913_v38 = vsel %vm2880_vm15, %v2903_v41, %v2912_v26  ;;  %v6377_v41 = vld [vmem:[#allocation2 + $0x28] sm:$0xff]   ;;  %v3748_v26 = vshll.u32 %v5080_v42, 16 }
 0x1d6   : > { %5960 = vmatprep.subr.bf16.mxu0 %v6423_v1  ;;  %v3157_v6 = vor.u32 %v3156_v3, %v3153_v4  ;;  %v3541_v25 = vshll.u32 %v6377_v41, 16  ;;  %v3753_v4 = vshll.u32 %v7875_v22, 16  ;;  %v6387_v3 = vld [vmem:[%s8248_s4 + $0x1c0] sm:$0xff]  }
 0x1d7   : > { %5871 = vmatmul.mubr.bf16.gmra.mxu1 %v2896_v43  ;;  %v3517_v43 = vshll.u32 %v6362_v55, 16 }
 0x1d8   : > { %5927 = vmatpush3.bf16.msra.mxu1 %v6340_v56  ;;  %5874 = vmatprep.mubr.msk.bf16.mxu1 %vm6424_vm0, %v6423_v1  ;;  %v3158_v56 = vsel %vm2880_vm15, %v3148_v40, %v3157_v6  ;;  %v3543_v47 = vrot.slane %v3541_v25, 1  ;;  %v6384_v40 = vld [vmem:[%s8248_s4 + $0x1c8] sm:$0xff]   ;;  %v7893_v6 = vld [vmem:[#allocation2 + $0x1c] sm:$0xff]  }
 0x1d9   : > { %5928 = vmatprep.subr.bf16.mxu1 %v6423_v1  ;;  %5961 = vmatpush3.bf16.msra.mxu0 %v6344_v59  ;;  %v3514_v59 = vrot.slane %v3512_v27, 1  ;;  %v3519_v49 = vrot.slane %v3517_v43, 1  ;;  %v3925_v43 = vld [vmem:[#allocation2 + $0xc] sm:$0xe]  ;;  %v7993_v25 = vld [vmem:[%s8251_s7 + $0x18] sm:$0xff]  }
 0x1da   : > { %5962 = vmatprep.subr.bf16.mxu0 %v6423_v1 }
 0x1db   : > { %5907 = vmatmul.mubr.bf16.gmra.mxu0 %v3131_v34  ;;  %v3515_v11 = vor.u32 %v3514_v59, %v3510_v39  ;;  %v6365_v34 = vld [vmem:[%s8248_s4 + $0x1a8] sm:$0xff]   ;;  %v3523_v7 = vor.u32 %v3521_v17, %v3519_v49  ;;  %v3761_v59 = vshll.u32 %v7893_v6, 16  ;;  %v3947_v39 = vrot.slane %v7875_v22, 1 }
 0x1dc   : > { %5929 = vmatpush3.bf16.msra.mxu1 %v6343_v37  ;;  %5910 = vmatprep.mubr.msk.bf16.mxu0 %vm6424_vm0, %v6423_v1  ;;  %v6363_v37 = vld [vmem:[%s8248_s4 + $0x1b0] sm:$0xff]  }
 0x1dd   : > { %5930 = vmatprep.subr.bf16.mxu1 %v6423_v1  ;;  %5963 = vmatpush3.bf16.msra.mxu0 %v6347_v52  ;;  %v3520_v0 = vsel %vm738_vm1, %v3515_v11, %v3519_v49  ;;  %v3525_v52 = vshll.u32 %v6366_v33, 16  ;;  %v6390_v49 = vld [vmem:[%s8248_s4 + $0x230] sm:$0xff]   ;;  %v3763_v11 = vrot.slane %v3761_v59, 1 }
 0x1de   : > { %5964 = vmatprep.subr.bf16.mxu0 %v6423_v1 }
 0x1df   : > { %5875 = vmatmul.mubr.bf16.gmra.mxu1 %v2900_v50  ;;  %v6371_v50 = vld [vmem:[#allocation2 + $0x20] sm:$0xff]  }
 0x1e0   : > { %5931 = vmatpush3.bf16.msra.mxu1 %v6346_v53  ;;  %5878 = vmatprep.mubr.msk.bf16.mxu1 %vm6424_vm0, %v6423_v1  ;;  %v3527_v53 = vrot.slane %v3525_v52, 1 }
 0x1e1   : > { %5932 = vmatprep.subr.bf16.mxu1 %v6423_v1  ;;  %5965 = vmatpush3.bf16.msra.mxu0 %v6348_v29  ;;  %v3533_v29 = vshll.u32 %v6371_v50, 16 }
 0x1e2   : > { %5966 = vmatprep.subr.bf16.mxu0 %v6423_v1  ;;  %v3528_v13 = vsel %vm738_vm1, %v3523_v7, %v3527_v53  ;;  %v3531_v28 = vor.u32 %v3529_v60, %v3527_v53  ;;  %v7939_v53 = vld [vmem:[%s8251_s7 + $0x30] sm:$0xff]   ;;  %v3765_v7 = vshrl.u32 %v7893_v6, 16 }
 0x1e3   : > { %5911 = vmatmul.mubr.bf16.gmra.mxu0 %v3140_v61  ;;  %v6379_v61 = vld [vmem:[%s8248_s4 + $0x188] sm:$0xff]  }
 0x1e4   : > { %5933 = vmatpush3.bf16.msra.mxu1 %v6349_v18  ;;  %5914 = vmatprep.mubr.msk.bf16.mxu0 %vm6424_vm0, %v6423_v1  ;;  %v3535_v18 = vrot.slane %v3533_v29, 1  ;;  %v7958_v29 = vld [vmem:[#allocation2 + $0x2c] sm:$0xff]  }
 0x1e5   : > { %5934 = vmatprep.subr.bf16.mxu1 %v6423_v1  ;;  %5967 = vmatpush3.bf16.msra.mxu0 %v6351_v35  ;;  %v6378_v35 = vld [vmem:[%s8248_s4 + $0x1d8] sm:$0xff]   ;;  %v3953_v8 = vrot.slane %v7958_v29, 1 }
 0x1e6   : > { %5968 = vmatprep.subr.bf16.mxu0 %v6423_v1  ;;  %v3536_v20 = vsel %vm738_vm1, %v3531_v28, %v3535_v18  ;;  %v6401_v28 = vld [vmem:[%s8248_s4 + $0x210] sm:$0xff]  }
 0x1e7   : > { %5879 = vmatmul.mubr.bf16.gmra.mxu1 %v2904_v58  ;;  %v3537_v58 = vshrl.u32 %v6371_v50, 16  ;;  %v3949_v50 = vrot.slane %v7893_v6, 1 }
 0x1e8   : > { %5882 = vmatprep.mubr.msk.bf16.mxu1 %vm6424_vm0, %v6423_v1  ;;  %5935 = vmatpush3.bf16.msra.mxu1 %v6352_v16  ;;  %v6382_v16 = vld [vmem:[#allocation2 + $0x30] ss:$0 sps:$4 sm:$0x11]  }
 0x1e9   : > { %5936 = vmatprep.subr.bf16.mxu1 %v6423_v1  ;;  %5969 = vmatpush3.bf16.msra.mxu0 %v6354_v45  ;;  %v3539_v45 = vor.u32 %v3537_v58, %v3535_v18  ;;  %v3777_v18 = vshll.u32 %v7958_v29, 16 }
 0x1ea   : > { %5970 = vmatprep.subr.bf16.mxu0 %v6423_v1 }
 0x1eb   : > { %5915 = vmatmul.mubr.bf16.gmra.mxu0 %v3149_v36  ;;  %v3544_v63 = vsel %vm738_vm1, %v3539_v45, %v3543_v47  ;;  %v3545_v36 = vshrl.u32 %v6377_v41, 16  ;;  %v7976_v41 = vld [vmem:[%s8251_s7 + $0x20] sm:$0xff]  }
 0x1ec   : > { %5937 = vmatpush3.bf16.msra.mxu1 %v6356_v19  ;;  %5918 = vmatprep.mubr.msk.bf16.mxu0 %vm6424_vm0, %v6423_v1  ;;  %v3549_v19 = vshll.u32 %v6382_v16, 16 }
 0x1ed   : > { %5994 = vmatprep.subr.bf16.mxu1 %v6423_v1  ;;  %5971 = vmatpush3.bf16.msra.mxu0 %v6357_v51  ;;  %v5025_v51 = vcombine.low %v7715_v21, %v7747_v24  ;;  %v3547_v10 = vor.u32 %v3545_v36, %v3543_v47  ;;  %v3750_v21 = vrot.slane %v3748_v26, 1  ;;  %v3746_v24 = vshrl.u32 %v5080_v42, 16  ;;  %v8010_v47 = vld [vmem:[%s8251_s7 + $0x10] sm:$0xff]   ;;  %v6406_v42 = vld [vmem:[%s8248_s4 + $0x200] sm:$0xff]  }
 0x1ee   : > { %5972 = vmatprep.subr.bf16.mxu0 %v6423_v1 }
 0x1ef   : > { %5883 = vmatmul.mubr.bf16.gmra.mxu1 %v2913_v38  ;;  %v3551_v38 = vrot.slane %v3549_v19, 1  ;;  %v3751_v27 = vor.u32 %v3750_v21, %v3746_v24 }
 0x1f0   : > { %5938 = vmatprep.mubr.msk.bf16.mxu1 %vm6424_vm0, %v6423_v1 }
 0x1f1   : > { %5973 = vmatpush3.bf16.msra.mxu0 %v6359_v46  ;;  %v3755_v46 = vrot.slane %v3753_v4, 1  ;;  %v3552_v55 = vsel %vm738_vm1, %v3547_v10, %v3551_v38  ;;  %v4123_v10 = vrot.slane %v3753_v4, 2  ;;  %v6408_v38 = vld [vmem:[%s8251_s7] sm:$0xff]  }
 0x1f2   : > { %6030 = vmatprep.subr.bf16.mxu0 %v6423_v1 }
 0x1f3   : > { %5919 = vmatmul.mubr.bf16.gmra.mxu0 %v3158_v56  ;;  %v6388_v56 = vld [vmem:[%s8248_s4 + $0x238] sm:$0xff]  }
 0x1f4   : > { %5974 = vmatprep.mubr.msk.bf16.mxu0 %vm6424_vm0, %v6423_v1 }
 0x1f7   : > { %5939 = vmatmul.mubr.bf16.vlgmr.msra.gmra.mxu1 %v5021_v9  ;;  %v3756_v9 = vsel %vm738_vm1, %v3751_v27, %v3755_v46 }
 0x1f8   : > { %5995 = vmatpush3.bf16.msra.mxu1 %v6360_v30  ;;  %5942 = vmatprep.mubr.msk.bf16.mxu1 %vm6424_vm0, %v6423_v1  ;;  %v7902_v30 = vcombine.low %v3925_v43, %v3690_v5  ;;  %v6403_v5 = vld [vmem:[%s8248_s4 + $0x208] sm:$0xff]   ;;  %v4127_v43 = vrot.slane %v3761_v59, 2 }
 0x1f9   : > { %5996 = vmatprep.subr.bf16.mxu1 %v6423_v1 }
 0x1fa   : > { %v3946_v33 = vrot.slane %v7902_v30, 1  ;;  %v4115_v26 = vshrl.u32 %v7902_v30, 16 }
 0x1fb   : > { %5975 = vmatmul.mubr.bf16.vlgmr.msra.gmra.mxu0 %v3520_v0  ;;  %v7922_v0 = vld [vmem:[#allocation2 + $0x24] sm:$0xff]  }
 0x1fc   : > { %5997 = vmatpush3.bf16.msra.mxu1 %v6363_v37  ;;  %5978 = vmatprep.mubr.msk.bf16.mxu0 %vm6424_vm0, %v6423_v1  ;;  %v3757_v37 = vshrl.u32 %v7875_v22, 16  ;;  %v3948_v52 = vsel %vm8281_vm8, %v3946_v33, %v3947_v39  ;;  %v3769_v17 = vshll.u32 %v7922_v0, 16  ;;  %v4117_v24 = vrot.slane %v4115_v26, 1 }
 0x1fd   : > { %5998 = vmatprep.subr.bf16.mxu1 %v6423_v1  ;;  %6031 = vmatpush3.bf16.msra.mxu0 %v6367_v62  ;;  %v7920_v62 = vld [vmem:[%s8251_s7 + $0x38] sm:$0xff]  }
 0x1fe   : > { %6032 = vmatprep.subr.bf16.mxu0 %v6423_v1  ;;  %v4122_v36 = vrot.slane %v3757_v37, 1 }
 0x1ff   : > { %5943 = vmatmul.mubr.bf16.gmra.mxu1 %v5022_v12  ;;  %v6392_v12 = vld [vmem:[%s8248_s4 + $0x228] sm:$0xff]  }
 0x200   : > { %5999 = vmatpush3.bf16.msra.mxu1 %v6365_v34  ;;  %5946 = vmatprep.mubr.msk.bf16.mxu1 %vm6424_vm0, %v6423_v1  ;;  %v3759_v34 = vor.u32 %v3757_v37, %v3755_v46 }
 0x201   : > { %6000 = vmatprep.subr.bf16.mxu1 %v6423_v1  ;;  %6033 = vmatpush3.bf16.msra.mxu0 %v6370_v2 }
 0x202   : > { %6034 = vmatprep.subr.bf16.mxu0 %v6423_v1  ;;  %v3764_v2 = vsel %vm738_vm1, %v3759_v34, %v3763_v11 }
 0x203   : > { %5979 = vmatmul.mubr.bf16.gmra.mxu0 %v3528_v13  ;;  %v7956_v13 = vld [vmem:[%s8251_s7 + $0x28] sm:$0xff]  }
 0x204   : > { %6001 = vmatpush3.bf16.msra.mxu1 %v6369_v48  ;;  %5982 = vmatprep.mubr.msk.bf16.mxu0 %vm6424_vm0, %v6423_v1  ;;  %v6395_v48 = vld [vmem:[%s8248_s4 + $0x220] sm:$0xff]  }
 0x205   : > { %6002 = vmatprep.subr.bf16.mxu1 %v6423_v1  ;;  %6035 = vmatpush3.bf16.msra.mxu0 %v6373_v15  ;;  %v3771_v15 = vrot.slane %v3769_v17, 1 }
 0x206   : > { %6036 = vmatprep.subr.bf16.mxu0 %v6423_v1 }
 0x207   : > { %5947 = vmatmul.mubr.bf16.gmra.mxu1 %v5023_v14  ;;  %v3767_v14 = vor.u32 %v3765_v7, %v3763_v11 }
 0x208   : > { %6003 = vmatpush3.bf16.msra.mxu1 %v6372_v23  ;;  %5950 = vmatprep.mubr.msk.bf16.mxu1 %vm6424_vm0, %v6423_v1  ;;  %v3950_v23 = vsel %vm8282_vm11, %v3947_v39, %v3949_v50  ;;  %v4131_v39 = vrot.slane %v3769_v17, 2 }
 0x209   : > { %6004 = vmatprep.subr.bf16.mxu1 %v6423_v1  ;;  %6037 = vmatpush3.bf16.msra.mxu0 %v6375_v32  ;;  %v6397_v32 = vld [vmem:[%s8248_s4 + $0x218] sm:$0xff]   ;;  %v3772_v60 = vsel %vm738_vm1, %v3767_v14, %v3771_v15 }
 0x20a   : > { %6038 = vmatprep.subr.bf16.mxu0 %v6423_v1 }
 0x20b   : > { %5983 = vmatmul.mubr.bf16.gmra.mxu0 %v3536_v20  ;;  %v3779_v20 = vrot.slane %v3777_v18, 1 }
 0x20c   : > { %6005 = vmatpush3.bf16.msra.mxu1 %v6376_v57  ;;  %5986 = vmatprep.mubr.msk.bf16.mxu0 %vm6424_vm0, %v6423_v1  ;;  %v3951_v57 = vrot.slane %v7922_v0, 1 }
 0x20d   : > { %6006 = vmatprep.subr.bf16.mxu1 %v6423_v1  ;;  %6039 = vmatpush3.bf16.msra.mxu0 %v6378_v35  ;;  %v3773_v35 = vshrl.u32 %v7922_v0, 16  ;;  %v6412_v0 = vld [vmem:[#allocation2 + $0x34] ss:$0 sps:$4 sm:$0x33]  }
 0x20e   : > { %6040 = vmatprep.subr.bf16.mxu0 %v6423_v1  ;;  %v3954_v19 = vsel %vm8284_vm3, %v3951_v57, %v3953_v8 }
 0x20f   : > { %5951 = vmatmul.mubr.bf16.gmra.mxu1 %v5024_v44  ;;  %v3775_v44 = vor.u32 %v3773_v35, %v3771_v15  ;;  %v4130_v59 = vrot.slane %v3773_v35, 1 }
 0x210   : > { %5954 = vmatprep.mubr.msk.bf16.mxu1 %vm6424_vm0, %v6423_v1  ;;  %6007 = vmatpush3.bf16.msra.mxu1 %v6379_v61  ;;  %v3952_v61 = vsel %vm8283_vm2, %v3949_v50, %v3951_v57 }
 0x211   : > { %6008 = vmatprep.subr.bf16.mxu1 %v6423_v1  ;;  %6041 = vmatpush3.bf16.msra.mxu0 %v6381_v54  ;;  %v6404_v54 = vld [vmem:[#allocation2 + $0x34] ss:$0 sps:$4 sm:$0x11]   ;;  %v3780_v16 = vsel %vm738_vm1, %v3775_v44, %v3779_v20  ;;  %v4132_v33 = vor.u32 %v4131_v39, %v4130_v59 }
 0x212   : > { %6042 = vmatprep.subr.bf16.mxu0 %v6423_v1  ;;  %v3785_v58 = vshll.u32 %v6404_v54, 16  ;;  %v3955_v21 = vrot.slane %v6404_v54, 1 }
 0x213   : > { %5987 = vmatmul.mubr.bf16.gmra.mxu0 %v3544_v63  ;;  %v8025_v63 = vld [vmem:[%s8251_s7 + $0x8] sm:$0xff]  }
 0x214   : > { %6009 = vmatpush3.bf16.msra.mxu1 %v6383_v31  ;;  %5990 = vmatprep.mubr.msk.bf16.mxu0 %vm6424_vm0, %v6423_v1  ;;  %v3781_v31 = vshrl.u32 %v7958_v29, 16 }
 0x215   : > { %6066 = vmatprep.subr.bf16.mxu1 %v6423_v1  ;;  %6043 = vmatpush3.bf16.msra.mxu0 %v6384_v40  ;;  %v3787_v40 = vrot.slane %v3785_v58, 1 }
 0x216   : > { %6044 = vmatprep.subr.bf16.mxu0 %v6423_v1  ;;  %v3783_v45 = vor.u32 %v3781_v31, %v3779_v20  ;;  %v4134_v11 = vrot.slane %v3781_v31, 1 }
 0x217   : > { %5955 = vmatmul.mubr.bf16.gmra.mxu1 %v5025_v51  ;;  %v4118_v51 = vshll.u32 %v7902_v30, 16  ;;  %v6409_v30 = vld [vmem:[%s6538_s20 + $0x9c] sm:$0xff]  }
 0x218   : > { %6010 = vmatprep.mubr.msk.bf16.mxu1 %vm6424_vm0, %v6423_v1 }
 0x219   : > { %6045 = vmatpush3.bf16.msra.mxu0 %v6387_v3  ;;  %v3788_v3 = vsel %vm738_vm1, %v3783_v45, %v3787_v40  ;;  %v4120_v46 = vrot.slane %v4118_v51, 2  ;;  %vm8285_vm1 = vmmov %vm8283_vm2 }
 0x21a   : > { %6102 = vmatprep.subr.bf16.mxu0 %v6423_v1  ;;  %v3956_v27 = vsel %vm8285_vm1, %v3953_v8, %v3955_v21 }
 0x21b   : > { %5991 = vmatmul.mubr.bf16.gmra.mxu0 %v3552_v55  ;;  %v4124_v55 = vor.u32 %v4123_v10, %v4122_v36  ;;  %v4121_v22 = vor.u32 %v4120_v46, %v4117_v24 }
 0x21c   : > { %6046 = vmatprep.mubr.msk.bf16.mxu0 %vm6424_vm0, %v6423_v1 }
 0x21d   : > { %v4125_v4 = vsel %vm8286_vm6, %v4121_v22, %v4124_v55 }
 0x21f   : > { %6011 = vmatmul.mubr.bf16.vlgmr.msra.gmra.mxu1 %v3756_v9 }
 0x220   : > { %6067 = vmatpush3.bf16.msra.mxu1 %v6388_v56  ;;  %6014 = vmatprep.mubr.msk.bf16.mxu1 %vm6424_vm0, %v6423_v1  ;;  %v4126_v56 = vrot.slane %v3765_v7, 1 }
 0x221   : > { %6068 = vmatprep.subr.bf16.mxu1 %v6423_v1 }
 0x222   : > { %v4128_v9 = vor.u32 %v4127_v43, %v4126_v56 }
 0x223   : > { %6047 = vmatmul.mubr.bf16.vlgmr.msra.gmra.mxu0 %v3948_v52  ;;  %v6411_v52 = vld [vmem:[%s6538_s20 + $0xac] sm:$0xff]  }
 0x224   : > { %6069 = vmatpush3.bf16.msra.mxu1 %v6390_v49  ;;  %6050 = vmatprep.mubr.msk.bf16.mxu0 %vm6424_vm0, %v6423_v1  ;;  %v4129_v6 = vsel %vm8287_vm5, %v4124_v55, %v4128_v9  ;;  %v6410_v49 = vld [vmem:[%s6538_s20 + $0xa4] sm:$0xff]   ;;  %v4133_v37 = vsel %vm8288_vm7, %v4128_v9, %v4132_v33 }
 0x225   : > { %6070 = vmatprep.subr.bf16.mxu1 %v6423_v1  ;;  %6103 = vmatpush3.bf16.msra.mxu0 %v7920_v62 }
 0x226   : > { %6104 = vmatprep.subr.bf16.mxu0 %v6423_v1 }
 0x227   : > { %6015 = vmatmul.mubr.bf16.gmra.mxu1 %v3764_v2  ;;  %v4142_v2 = vshll.u32 %v6412_v0, 16 }
 0x228   : > { %6071 = vmatpush3.bf16.msra.mxu1 %v6392_v12  ;;  %6018 = vmatprep.mubr.msk.bf16.mxu1 %vm6424_vm0, %v6423_v1  ;;  %v4139_v12 = vshrl.u32 %v6412_v0, 16 }
 0x229   : > { %6072 = vmatprep.subr.bf16.mxu1 %v6423_v1  ;;  %6105 = vmatpush3.bf16.msra.mxu0 %v7939_v53  ;;  %v4144_v50 = vrot.slane %v4142_v2, 2 }
 0x22a   : > { %6106 = vmatprep.subr.bf16.mxu0 %v6423_v1 }
 0x22b   : > { %6051 = vmatmul.mubr.bf16.gmra.mxu0 %v3950_v23  ;;  %v6413_v23 = vld [vmem:[%s6538_s20 + $0xb4] sm:$0xff]  }
 0x22c   : > { %6073 = vmatpush3.bf16.msra.mxu1 %v6395_v48  ;;  %6054 = vmatprep.mubr.msk.bf16.mxu0 %vm6424_vm0, %v6423_v1 }
 0x22d   : > { %6074 = vmatprep.subr.bf16.mxu1 %v6423_v1  ;;  %6107 = vmatpush3.bf16.msra.mxu0 %v7956_v13 }
 0x22e   : > { %6108 = vmatprep.subr.bf16.mxu0 %v6423_v1 }
 0x22f   : > { %6019 = vmatmul.mubr.bf16.gmra.mxu1 %v3772_v60 }
 0x230   : > { %6075 = vmatpush3.bf16.msra.mxu1 %v6397_v32  ;;  %6022 = vmatprep.mubr.msk.bf16.mxu1 %vm6424_vm0, %v6423_v1 }
 0x231   : > { %6076 = vmatprep.subr.bf16.mxu1 %v6423_v1  ;;  %6109 = vmatpush3.bf16.msra.mxu0 %v7976_v41 }
 0x232   : > { %6110 = vmatprep.subr.bf16.mxu0 %v6423_v1 }
 0x233   : > { %6055 = vmatmul.mubr.bf16.gmra.mxu0 %v3952_v61  ;;  %v6414_v61 = vld [vmem:[%s6538_s20 + $0xbc] sm:$0xff]  }
 0x234   : > { %6077 = vmatpush3.bf16.msra.mxu1 %v6401_v28  ;;  %6058 = vmatprep.mubr.msk.bf16.mxu0 %vm6424_vm0, %v6423_v1 }
 0x235   : > { %6078 = vmatprep.subr.bf16.mxu1 %v6423_v1  ;;  %6111 = vmatpush3.bf16.msra.mxu0 %v7993_v25 }
 0x236   : > { %6112 = vmatprep.subr.bf16.mxu0 %v6423_v1 }
 0x237   : > { %6023 = vmatmul.mubr.bf16.gmra.mxu1 %v3780_v16 }
 0x238   : > { %6026 = vmatprep.mubr.msk.bf16.mxu1 %vm6424_vm0, %v6423_v1  ;;  %6079 = vmatpush3.bf16.msra.mxu1 %v6403_v5 }
 0x239   : > { %6080 = vmatprep.subr.bf16.mxu1 %v6423_v1  ;;  %6113 = vmatpush3.bf16.msra.mxu0 %v8010_v47 }
 0x23a   : > { %6114 = vmatprep.subr.bf16.mxu0 %v6423_v1 }
 0x23b   : > { %6059 = vmatmul.mubr.bf16.gmra.mxu0 %v3954_v19 }
 0x23c   : > { %6081 = vmatpush3.bf16.msra.mxu1 %v6406_v42  ;;  %6062 = vmatprep.mubr.msk.bf16.mxu0 %vm6424_vm0, %v6423_v1 }
 0x23d   : > { %6138 = vmatprep.subr.bf16.mxu1 %v6423_v1  ;;  %6115 = vmatpush3.bf16.msra.mxu0 %v8025_v63 }
 0x23e   : > { %6116 = vmatprep.subr.bf16.mxu0 %v6423_v1 }
 0x23f   : > { %6027 = vmatmul.mubr.bf16.gmra.mxu1 %v3788_v3 }
 0x240   : > { %6082 = vmatprep.mubr.msk.bf16.mxu1 %vm6424_vm0, %v6423_v1 }
 0x241   : > { %6117 = vmatpush3.bf16.msra.mxu0 %v6408_v38 }
 0x243   : > { %6063 = vmatmul.mubr.bf16.gmra.mxu0 %v3956_v27 }
 0x244   : > { %6118 = vmatprep.mubr.msk.bf16.mxu0 %vm6424_vm0, %v6423_v1 }
 0x247   : > { %6083 = vmatmul.mubr.bf16.vlgmr.msra.gmra.mxu1 %v4125_v4 }
 0x248   : > { %6146 = vmatpush3.bf16.msra.mxu1 %v7920_v62  ;;  %6086 = vmatprep.mubr.msk.bf16.mxu1 %vm6424_vm0, %v6423_v1  ;;  %v4135_v62 = vrot.slane %v3777_v18, 2 }
 0x249   : > { %6139 = vmatprep.subr.bf16.mxu1 %v6423_v1 }
 0x24a   : > { %v4136_v34 = vor.u32 %v4135_v62, %v4134_v11 }
 0x24b   : > { %6119 = vmatmul.mubr.bf16.vlgmr.msra.gmra.mxu0 %v6409_v30 }
 0x24c   : > { %6147 = vmatpush3.bf16.msra.mxu1 %v7939_v53  ;;  %6122 = vmatprep.mubr.msk.bf16.mxu0 %vm6424_vm0, %v6423_v1  ;;  %v4137_v17 = vsel %vm8289_vm9, %v4132_v33, %v4136_v34  ;;  %v4141_v53 = vrot.slane %v4139_v12, 1 }
 0x24d   : > { %6140 = vmatprep.subr.bf16.mxu1 %v6423_v1 }
 0x24e   : > { %v4145_v48 = vor.u32 %v4144_v50, %v4141_v53 }
 0x24f   : > { %6087 = vmatmul.mubr.bf16.gmra.mxu1 %v4129_v6 }
 0x250   : > { %6148 = vmatpush3.bf16.msra.mxu1 %v7956_v13  ;;  %6090 = vmatprep.mubr.msk.bf16.mxu1 %vm6424_vm0, %v6423_v1  ;;  %v4146_v7 = vsel %vm8290_vm10, %v4136_v34, %v4145_v48 }
 0x251   : > { %6141 = vmatprep.subr.bf16.mxu1 %v6423_v1 }
 0x253   : > { %6123 = vmatmul.mubr.bf16.gmra.mxu0 %v6410_v49 }
 0x254   : > { %6149 = vmatpush3.bf16.msra.mxu1 %v7976_v41  ;;  %6126 = vmatprep.mubr.msk.bf16.mxu0 %vm6424_vm0, %v6423_v1 }
 0x255   : > { %6142 = vmatprep.subr.bf16.mxu1 %v6423_v1 }
 0x257   : > { %6091 = vmatmul.mubr.bf16.gmra.mxu1 %v4133_v37 }
 0x258   : > { %6150 = vmatpush3.bf16.msra.mxu1 %v7993_v25  ;;  %6094 = vmatprep.mubr.msk.bf16.mxu1 %vm6424_vm0, %v6423_v1 }
 0x259   : > { %6143 = vmatprep.subr.bf16.mxu1 %v6423_v1 }
 0x25b   : > { %6127 = vmatmul.mubr.bf16.gmra.mxu0 %v6411_v52 }
 0x25c   : > { %6151 = vmatpush3.bf16.msra.mxu1 %v8010_v47 }
 0x25d   : > { %6144 = vmatprep.subr.bf16.mxu1 %v6423_v1 }
 0x25f   : > { %6095 = vmatmul.mubr.bf16.gmra.mxu1 %v4137_v17 }
 0x260   : > { %6098 = vmatprep.mubr.msk.bf16.mxu1 %vm6424_vm0, %v6423_v1  ;;  %6152 = vmatpush3.bf16.msra.mxu1 %v8025_v63 }
 0x261   : > { %6145 = vmatprep.subr.bf16.mxu1 %v6423_v1 }
 0x264   : > { %6153 = vmatpush3.bf16.msra.mxu1 %v6408_v38 }
 0x267   : > { %v2637_v15 = vpop.f32.mrf.mxu1  ;;  %6099 = vmatmul.mubr.bf16.gmra.mxu1 %v4146_v7 }
 0x268   : > { %6130 = vmatprep.mubr.msk.bf16.mxu1 %vm6424_vm0, %v6423_v1 }
 0x269   : > { %v5796_v13 = vpop.f32.mrf.mxu1 }
 0x26b   : > { %v2640_v29 = vpop.f32.mrf.mxu1  ;;  %v2820_v14 = vpop.f32.mrf.mxu0 }
 0x26c   : > { %v2821_v32 = vadd.f32 %v2820_v14, %v2637_v15 }
 0x26d   : > { %v5797_v60 = vpop.f32.mrf.mxu1  ;;  %v5832_v18 = vpop.f32.mrf.mxu0 }
 0x26f   : > { %v2645_v41 = vpop.f32.mrf.mxu1  ;;  %6131 = vmatmul.mubr.bf16.vlgmr.msra.gmra.mxu1 %v6413_v23  ;;  %v2823_v57 = vpop.f32.mrf.mxu0 }
 0x270   : > { %6134 = vmatprep.mubr.msk.bf16.mxu1 %vm6424_vm0, %v6423_v1  ;;  %v2824_v28 = vadd.f32 %v2823_v57, %v2640_v29 }
 0x271   : > { %v5800_v35 = vpop.f32.mrf.mxu1  ;;  %v5833_v20 = vpop.f32.mrf.mxu0 }
 0x273   : > { %v2648_v25 = vpop.f32.mrf.mxu1  ;;  %v2828_v44 = vpop.f32.mrf.mxu0 }
 0x274   : > { %v2829_v5 = vadd.f32 %v2828_v44, %v2645_v41 }
 0x275   : > { %v5801_v54 = vpop.f32.mrf.mxu1  ;;  %v5836_v16 = vpop.f32.mrf.mxu0 }
 0x277   : > { %v2653_v58 = vpop.f32.mrf.mxu1  ;;  %6135 = vmatmul.mubr.bf16.gmra.mxu1 %v6414_v61  ;;  %v2831_v47 = vpop.f32.mrf.mxu0 }
 0x278   : > { %v2832_v8 = vadd.f32 %v2831_v47, %v2648_v25 }
 0x279   : > { %v5804_v31 = vpop.f32.mrf.mxu1  ;;  %v5837_v42 = vpop.f32.mrf.mxu0 }
 0x27b   : > { %v2656_v45 = vpop.f32.mrf.mxu1  ;;  %v2836_v40 = vpop.f32.mrf.mxu0 }
 0x27c   : > { %v2837_v63 = vadd.f32 %v2836_v40, %v2653_v58 }
 0x27d   : > { %v5805_v19 = vpop.f32.mrf.mxu1  ;;  %v5840_v1 = vpop.f32.mrf.mxu0 }
 0x27f   : > { %v2661_v26 = vpop.f32.mrf.mxu1  ;;  %v2839_v51 = vpop.f32.mrf.mxu0 }
 0x280   : > { %v2840_v36 = vadd.f32 %v2839_v51, %v2656_v45 }
 0x281   : > { %v5808_v3 = vpop.f32.mrf.mxu1  ;;  %v5841_v10 = vpop.f32.mrf.mxu0 }
 0x283   : > { %v2664_v38 = vpop.f32.mrf.mxu1  ;;  %v2844_v21 = vpop.f32.mrf.mxu0 }
 0x284   : > { %v2845_v24 = vadd.f32 %v2844_v21, %v2661_v26 }
 0x285   : > { %v5809_v46 = vpop.f32.mrf.mxu1  ;;  %v5844_v55 = vpop.f32.mrf.mxu0 }
 0x287   : > { %v2669_v27 = vpop.f32.mrf.mxu1  ;;  %v2847_v22 = vpop.f32.mrf.mxu0 }
 0x288   : > { %v2848_v4 = vadd.f32 %v2847_v22, %v2664_v38 }
 0x289   : > { %v5812_v56 = vpop.f32.mrf.mxu1  ;;  %v5845_v43 = vpop.f32.mrf.mxu0 }
 0x28b   : > { %v2672_v30 = vpop.f32.mrf.mxu1  ;;  %v2852_v9 = vpop.f32.mrf.mxu0 }
 0x28c   : > { %v2853_v6 = vadd.f32 %v2852_v9, %v2669_v27 }
 0x28d   : > { %v5813_v59 = vpop.f32.mrf.mxu1  ;;  %v5848_v39 = vpop.f32.mrf.mxu0 }
 0x28f   : > { %v3001_v49 = vpop.f32.mrf.mxu1  ;;  %v2855_v33 = vpop.f32.mrf.mxu0 }
 0x290   : > { %v3040_v37 = vadd.f32 %v3001_v49, %v2821_v32  ;;  %v2856_v11 = vadd.f32 %v2855_v33, %v2672_v30 }
 0x291   : > { %v5868_v62 = vpop.f32.mrf.mxu1  ;;  %v5849_v0 = vpop.f32.mrf.mxu0 }
 0x293   : > { %v3004_v52 = vpop.f32.mrf.mxu1  ;;  %v3246_v12 = vpop.f32.mrf.mxu0 }
 0x294   : > { %v3041_v34 = vadd.f32 %v3004_v52, %v2824_v28  ;;  %v3285_v2 = vadd.f32 %v3246_v12, %v3040_v37 }
 0x295   : > { %v5869_v17 = vpop.f32.mrf.mxu1  ;;  %v5904_v53 = vpop.f32.mrf.mxu0 }
 0x297   : > { %v3009_v50 = vpop.f32.mrf.mxu1  ;;  %v3249_v7 = vpop.f32.mrf.mxu0 }
 0x298   : > { %v3042_v48 = vadd.f32 %v3009_v50, %v2829_v5  ;;  %v3286_v15 = vadd.f32 %v3249_v7, %v3041_v34 }
 0x299   : > { %v5872_v13 = vpop.f32.mrf.mxu1  ;;  %v5905_v29 = vpop.f32.mrf.mxu0 }
 0x29b   : > { %v3012_v23 = vpop.f32.mrf.mxu1  ;;  %v3254_v60 = vpop.f32.mrf.mxu0 }
 0x29c   : > { %v3043_v14 = vadd.f32 %v3012_v23, %v2832_v8  ;;  %v3287_v18 = vadd.f32 %v3254_v60, %v3042_v48 }
 0x29d   : > { %v5873_v32 = vpop.f32.mrf.mxu1  ;;  %v5908_v41 = vpop.f32.mrf.mxu0 }
 0x29f   : > { %v3017_v57 = vpop.f32.mrf.mxu1  ;;  %v3257_v20 = vpop.f32.mrf.mxu0 }
 0x2a0   : > { %v3044_v35 = vadd.f32 %v3017_v57, %v2837_v63  ;;  %v3288_v28 = vadd.f32 %v3257_v20, %v3043_v14 }
 0x2a1   : > { %v5876_v25 = vpop.f32.mrf.mxu1  ;;  %v5909_v61 = vpop.f32.mrf.mxu0 }
 0x2a3   : > { %v3020_v44 = vpop.f32.mrf.mxu1  ;;  %v3262_v16 = vpop.f32.mrf.mxu0 }
 0x2a4   : > { %v3045_v54 = vadd.f32 %v3020_v44, %v2840_v36  ;;  %v3289_v5 = vadd.f32 %v3262_v16, %v3044_v35 }
 0x2a5   : > { %v5877_v58 = vpop.f32.mrf.mxu1  ;;  %v5912_v47 = vpop.f32.mrf.mxu0 }
 0x2a7   : > { %v3025_v31 = vpop.f32.mrf.mxu1  ;;  %v3265_v45 = vpop.f32.mrf.mxu0 }
 0x2a8   : > { %v3046_v42 = vadd.f32 %v3025_v31, %v2845_v24  ;;  %v3290_v8 = vadd.f32 %v3265_v45, %v3045_v54 }
 0x2a9   : > { %v5880_v40 = vpop.f32.mrf.mxu1  ;;  %v5913_v19 = vpop.f32.mrf.mxu0 }
 0x2ab   : > { %v3028_v1 = vpop.f32.mrf.mxu1  ;;  %v3270_v51 = vpop.f32.mrf.mxu0 }
 0x2ac   : > { %v3047_v26 = vadd.f32 %v3028_v1, %v2848_v4  ;;  %v3291_v63 = vadd.f32 %v3270_v51, %v3046_v42 }
 0x2ad   : > { %v5881_v3 = vpop.f32.mrf.mxu1  ;;  %v5916_v10 = vpop.f32.mrf.mxu0 }
 0x2af   : > { %v3033_v38 = vpop.f32.mrf.mxu1  ;;  %v3273_v46 = vpop.f32.mrf.mxu0 }
 0x2b0   : > { %v3048_v21 = vadd.f32 %v3033_v38, %v2853_v6  ;;  %v3292_v36 = vadd.f32 %v3273_v46, %v3047_v26 }
 0x2b1   : > { %v5884_v55 = vpop.f32.mrf.mxu1  ;;  %v5917_v27 = vpop.f32.mrf.mxu0 }
 0x2b3   : > { %v3036_v22 = vpop.f32.mrf.mxu1  ;;  %v3278_v43 = vpop.f32.mrf.mxu0 }
 0x2b4   : > { %v3049_v56 = vadd.f32 %v3036_v22, %v2856_v11  ;;  %v3293_v24 = vadd.f32 %v3278_v43, %v3048_v21 }
 0x2b5   : > { %v5885_v30 = vpop.f32.mrf.mxu1  ;;  %v5920_v9 = vpop.f32.mrf.mxu0 }
 0x2b7   : > { %v3404_v59 = vpop.f32.mrf.mxu1  ;;  %v3281_v39 = vpop.f32.mrf.mxu0 }
 0x2b8   : > { %v3443_v49 = vadd.f32 %v3404_v59, %v3285_v2  ;;  %v3294_v4 = vadd.f32 %v3281_v39, %v3049_v56 }
 0x2b9   : > { %v5940_v33 = vpop.f32.mrf.mxu1  ;;  %v5921_v37 = vpop.f32.mrf.mxu0 }
 0x2bb   : > { %v3407_v62 = vpop.f32.mrf.mxu1  ;;  %v3640_v52 = vpop.f32.mrf.mxu0 }
 0x2bc   : > { %v3444_v0 = vadd.f32 %v3407_v62, %v3286_v15  ;;  %v8099_v6 = vadd.f32 %v3640_v52, %v3443_v49 }
 0x2bd   : > { %v5941_v34 = vpop.f32.mrf.mxu1  ;;  %v5976_v12 = vpop.f32.mrf.mxu0 }
 0x2bf   : > { %v3412_v17 = vpop.f32.mrf.mxu1  ;;  %v3643_v11 = vpop.f32.mrf.mxu0 }
 0x2c0   : > { %v3445_v53 = vadd.f32 %v3412_v17, %v3287_v18  ;;  %v8101_v50 = vadd.f32 %v3643_v11, %v3444_v0 }
 0x2c1   : > { %v5944_v48 = vpop.f32.mrf.mxu1  ;;  %v5977_v7 = vpop.f32.mrf.mxu0 }
 0x2c3   : > { %v3415_v13 = vpop.f32.mrf.mxu1  ;;  %v3648_v2 = vpop.f32.mrf.mxu0 }
 0x2c4   : > { %v3446_v29 = vadd.f32 %v3415_v13, %v3288_v28  ;;  %v8103_v23 = vadd.f32 %v3648_v2, %v3445_v53 }
 0x2c5   : > { %v5945_v14 = vpop.f32.mrf.mxu1  ;;  %v5980_v60 = vpop.f32.mrf.mxu0 }
 0x2c7   : > { %v3420_v15 = vpop.f32.mrf.mxu1  ;;  %v3651_v41 = vpop.f32.mrf.mxu0 }
 0x2c8   : > { %v3447_v32 = vadd.f32 %v3420_v15, %v3289_v5  ;;  %v8105_v57 = vadd.f32 %v3651_v41, %v3446_v29 }
 0x2c9   : > { %v5948_v35 = vpop.f32.mrf.mxu1  ;;  %v5981_v20 = vpop.f32.mrf.mxu0 }
 0x2cb   : > { %v3423_v18 = vpop.f32.mrf.mxu1  ;;  %v3656_v61 = vpop.f32.mrf.mxu0 }
 0x2cc   : > { %v3448_v25 = vadd.f32 %v3423_v18, %v3290_v8  ;;  %v8107_v44 = vadd.f32 %v3656_v61, %v3447_v32 }
 0x2cd   : > { %v5949_v54 = vpop.f32.mrf.mxu1  ;;  %v5984_v16 = vpop.f32.mrf.mxu0 }
 0x2cf   : > { %v3428_v28 = vpop.f32.mrf.mxu1  ;;  %v3659_v47 = vpop.f32.mrf.mxu0 }
 0x2d0   : > { %v3449_v58 = vadd.f32 %v3428_v28, %v3291_v63  ;;  %v8109_v31 = vadd.f32 %v3659_v47, %v3448_v25 }
 0x2d1   : > { %v5952_v42 = vpop.f32.mrf.mxu1  ;;  %v5985_v45 = vpop.f32.mrf.mxu0 }
 0x2d3   : > { %v3431_v5 = vpop.f32.mrf.mxu1  ;;  %v3664_v19 = vpop.f32.mrf.mxu0 }
 0x2d4   : > { %v3450_v40 = vadd.f32 %v3431_v5, %v3292_v36  ;;  %v8111_v1 = vadd.f32 %v3664_v19, %v3449_v58 }
 0x2d5   : > { %v5953_v26 = vpop.f32.mrf.mxu1  ;;  %v5988_v51 = vpop.f32.mrf.mxu0 }
 0x2d7   : > { %v3436_v8 = vpop.f32.mrf.mxu1  ;;  %v3667_v10 = vpop.f32.mrf.mxu0 }
 0x2d8   : > { %v3451_v3 = vadd.f32 %v3436_v8, %v3293_v24  ;;  %v8113_v38 = vadd.f32 %v3667_v10, %v3450_v40  ;;  %v8148_v10 = vld [vmem:[%s8249_s5] ss:$0 sm:$0xff] }
 0x2d9   : > { %v5956_v21 = vpop.f32.mrf.mxu1  ;;  %v5989_v46 = vpop.f32.mrf.mxu0 }
 0x2db   : > { %v3439_v63 = vpop.f32.mrf.mxu1  ;;  %v3672_v27 = vpop.f32.mrf.mxu0 }
 0x2dc   : > { %v3452_v55 = vadd.f32 %v3439_v63, %v3294_v4  ;;  %v8115_v22 = vadd.f32 %v3672_v27, %v3451_v3  ;;  %v8153_v63 = vld [vmem:[%s8252_s8] ss:$0 sm:$0xff] }
 0x2dd   : > { %v5957_v56 = vpop.f32.mrf.mxu1  ;;  %v5992_v43 = vpop.f32.mrf.mxu0 }
 0x2de   : > { %v8160_v56 = vld [vmem:[%s8250_s6] ss:$0 sm:$0xff] }
 0x2df   : > { %v3876_v36 = vpop.f32.mrf.mxu1  ;;  %v3675_v30 = vpop.f32.mrf.mxu0 }
 0x2e0   : > { %v8117_v9 = vadd.f32 %v3675_v30, %v3452_v55  ;;  %v3915_v42 = vadd.f32 %v3876_v36, %v8099_v6  ;;  %v8165_v30 = vld [vmem:[%s8253_s9] ss:$0 sm:$0xff] }
 0x2e1   : > { %v6012_v59 = vpop.f32.mrf.mxu1  ;;  %v5993_v39 = vpop.f32.mrf.mxu0 }
 0x2e3   : > { %v3879_v49 = vpop.f32.mrf.mxu1  ;;  %v4044_v24 = vpop.f32.mrf.mxu0 }
 0x2e4   : > { %v4083_v40 = vadd.f32 %v4044_v24, %v3915_v42  ;;  %v3916_v51 = vadd.f32 %v3879_v49, %v8101_v50 }
 0x2e5   : > { %v6013_v33 = vpop.f32.mrf.mxu1  ;;  %v6048_v37 = vpop.f32.mrf.mxu0 }
 0x2e7   : > { %v3884_v62 = vpop.f32.mrf.mxu1  ;;  %v4047_v0 = vpop.f32.mrf.mxu0 }
 0x2e8   : > { %v4084_v46 = vadd.f32 %v4047_v0, %v3916_v51  ;;  %v3917_v27 = vadd.f32 %v3884_v62, %v8103_v23 }
 0x2e9   : > { %v6016_v52 = vpop.f32.mrf.mxu1  ;;  %v6049_v34 = vpop.f32.mrf.mxu0 }
 0x2eb   : > { %v3887_v4 = vpop.f32.mrf.mxu1  ;;  %v4052_v12 = vpop.f32.mrf.mxu0 }
 0x2ec   : > { %v4085_v49 = vadd.f32 %v4052_v12, %v3917_v27  ;;  %v3918_v0 = vadd.f32 %v3887_v4, %v8105_v57 }
 0x2ed   : > { %v6017_v17 = vpop.f32.mrf.mxu1  ;;  %v6052_v53 = vpop.f32.mrf.mxu0 }
 0x2ef   : > { %v8119_v11 = vpop.f32.mrf.mxu1  ;;  %v4055_v48 = vpop.f32.mrf.mxu0 }
 0x2f1   : > { %v6020_v7 = vpop.f32.mrf.mxu1  ;;  %v6053_v13 = vpop.f32.mrf.mxu0 }
 0x2f2   : > { %v4086_v13 = vadd.f32 %v4055_v48, %v3918_v0 }
 0x2f3   : > { %v8121_v29 = vpop.f32.mrf.mxu1  ;;  %v8123_v2 = vpop.f32.mrf.mxu0 }
 0x2f5   : > { %v6021_v14 = vpop.f32.mrf.mxu1  ;;  %v6056_v60 = vpop.f32.mrf.mxu0 }
 0x2f7   : > { %v8125_v15 = vpop.f32.mrf.mxu1  ;;  %v8127_v32 = vpop.f32.mrf.mxu0 }
 0x2f9   : > { %v6024_v41 = vpop.f32.mrf.mxu1  ;;  %v6057_v35 = vpop.f32.mrf.mxu0 }
 0x2fa   : > { %v3919_v35 = vadd.f32 %v8119_v11, %v8107_v44  ;;  %v3920_v44 = vadd.f32 %v8121_v29, %v8109_v31 }
 0x2fb   : > { %v8129_v20 = vpop.f32.mrf.mxu1  ;;  %v8131_v18 = vpop.f32.mrf.mxu0 }
 0x2fc   : > { %v4087_v42 = vadd.f32 %v8123_v2, %v3919_v35  ;;  %v3921_v35 = vadd.f32 %v8125_v15, %v8111_v1 }
 0x2fd   : > { %v6025_v25 = vpop.f32.mrf.mxu1  ;;  %v6060_v61 = vpop.f32.mrf.mxu0 }
 0x2ff   : > { %v8133_v54 = vpop.f32.mrf.mxu1  ;;  %v8135_v16 = vpop.f32.mrf.mxu0 }
 0x301   : > { %v6028_v28 = vpop.f32.mrf.mxu1  ;;  %v6061_v58 = vpop.f32.mrf.mxu0 }
 0x303   : > { %v8137_v47 = vpop.f32.mrf.mxu1  ;;  %v8140_v45 = vpop.f32.mrf.mxu0 }
 0x305   : > { %v6029_v5 = vpop.f32.mrf.mxu1  ;;  %v6064_v19 = vpop.f32.mrf.mxu0 }
 0x307   : > { %v4234_v26 = vpop.f32.mrf.mxu1  ;;  %v8143_v8 = vpop.f32.mrf.mxu0 }
 0x308   : > { %v4273_v3 = vadd.f32 %v4234_v26, %v4083_v40 }
 0x309   : > { %v6084_v21 = vpop.f32.mrf.mxu1  ;;  %v6065_v6 = vpop.f32.mrf.mxu0 }
 0x30a   : > { %v4290_v55 = vmul.f32 %v8148_v10, %v4273_v3 }
 0x30b   : > { %v4237_v50 = vpop.f32.mrf.mxu1  ;;  %v4455_v36 = vpop.f32.mrf.mxu0 }
 0x30c   : > { %v4274_v43 = vadd.f32 %v4237_v50, %v4084_v46  ;;  %v4501_v59 = vmul.f32 %v8153_v63, %v4455_v36  ;;  %v4307_v23 = vadd.f32 %v8160_v56, %v4290_v55  ;;  %v4088_v55 = vadd.f32 %v8127_v32, %v3920_v44 }
 0x30d   : > { %v6085_v39 = vpop.f32.mrf.mxu1  ;;  %v6120_v24 = vpop.f32.mrf.mxu0 }
 0x30e   : > { %v4291_v33 = vmul.f32 %v8148_v10, %v4274_v43  ;;  %v4518_v37 = vadd.f32 %v8165_v30, %v4501_v59 }
 0x30f   : > { %v4242_v62 = vpop.f32.mrf.mxu1  ;;  %v4458_v34 = vpop.f32.mrf.mxu0 }
 0x310   : > { %v4275_v52 = vadd.f32 %v4242_v62, %v4085_v49  ;;  %v4528_v17 = vadd.f32 %v4518_v37, %v4307_v23  ;;  %v4502_v53 = vmul.f32 %v8153_v63, %v4458_v34  ;;  %v4308_v14 = vadd.f32 %v8160_v56, %v4291_v33 }
 0x311   : > { %v6088_v7 = vpop.f32.mrf.mxu1  ;;  %v6121_v12 = vpop.f32.mrf.mxu0 }
 0x312   : > { %v4538_v60 = vmax.f32 %v4528_v17, 0.0  ;;  %v4292_v41 = vmul.f32 %v8148_v10, %v4275_v52  ;;  %v4519_v57 = vadd.f32 %v8165_v30, %v4502_v53 }
 0x313   : > { %v4245_v4 = vpop.f32.mrf.mxu1  ;;  %v4463_v48 = vpop.f32.mrf.mxu0 }
 0x314   : > { %v4276_v25 = vadd.f32 %v4245_v4, %v4086_v13  ;;  %4548 = vst [vmem:[%s8177_s14] sm:$0xff] %v4538_v60  ;;  %v4529_v61 = vadd.f32 %v4519_v57, %v4308_v14  ;;  %v4503_v28 = vmul.f32 %v8153_v63, %v4463_v48  ;;  %v4309_v40 = vadd.f32 %v8160_v56, %v4292_v41 }
 0x315   : > { %v6089_v58 = vpop.f32.mrf.mxu1  ;;  %v6124_v5 = vpop.f32.mrf.mxu0 }
 0x316   : > { %v4539_v19 = vmax.f32 %v4529_v61, 0.0  ;;  %v4293_v26 = vmul.f32 %v8148_v10, %v4276_v25  ;;  %v4520_v51 = vadd.f32 %v8165_v30, %v4503_v28  ;;  %v4089_v61 = vadd.f32 %v8131_v18, %v3921_v35 }
 0x317   : > { %v4250_v3 = vpop.f32.mrf.mxu1  ;;  %v4466_v21 = vpop.f32.mrf.mxu0  ;;  %v3922_v28 = vadd.f32 %v8129_v20, %v8113_v38 }
 0x318   : > { %v4277_v11 = vadd.f32 %v4250_v3, %v4087_v42  ;;  %4549 = vst [vmem:[%s8177_s14 + $0x8] sm:$0xff] %v4539_v19  ;;  %v4530_v46 = vadd.f32 %v4520_v51, %v4309_v40  ;;  %v4504_v6 = vmul.f32 %v8153_v63, %v4466_v21  ;;  %v4310_v27 = vadd.f32 %v8160_v56, %v4293_v26 }
 0x319   : > { %v6092_v2 = vpop.f32.mrf.mxu1  ;;  %v6125_v50 = vpop.f32.mrf.mxu0  ;;  %v4090_v5 = vadd.f32 %v8135_v16, %v3922_v28  ;;  %v3923_v51 = vadd.f32 %v8133_v54, %v8115_v22  ;;  %v3924_v16 = vadd.f32 %v8137_v47, %v8117_v9 }
 0x31a   : > { %v4540_v43 = vmax.f32 %v4530_v46, 0.0  ;;  %v4294_v36 = vmul.f32 %v8148_v10, %v4277_v11  ;;  %v4521_v59 = vadd.f32 %v8165_v30, %v4504_v6 }
 0x31b   : > { %v4253_v31 = vpop.f32.mrf.mxu1  ;;  %v4471_v39 = vpop.f32.mrf.mxu0  ;;  %v4091_v3 = vadd.f32 %v8140_v45, %v3923_v51  ;;  %v4092_v54 = vadd.f32 %v8143_v8, %v3924_v16 }
 0x31c   : > { %v4278_v29 = vadd.f32 %v4253_v31, %v4088_v55  ;;  %4550 = vst [vmem:[%s8177_s14 + $0x10] sm:$0xff] %v4540_v43  ;;  %v4531_v49 = vadd.f32 %v4521_v59, %v4310_v27  ;;  %v4505_v24 = vmul.f32 %v8153_v63, %v4471_v39  ;;  %v4311_v32 = vadd.f32 %v8160_v56, %v4294_v36 }
 0x31d   : > { %v6093_v23 = vpop.f32.mrf.mxu1  ;;  %v6128_v33 = vpop.f32.mrf.mxu0 }
 0x31e   : > { %v4541_v37 = vmax.f32 %v4531_v49, 0.0  ;;  %v4295_v62 = vmul.f32 %v8148_v10, %v4278_v29  ;;  %v4522_v0 = vadd.f32 %v8165_v30, %v4505_v24 }
 0x31f   : > { %v4258_v52 = vpop.f32.mrf.mxu1  ;;  %v4474_v34 = vpop.f32.mrf.mxu0 }
 0x320   : > { %4551 = vst [vmem:[%s8177_s14 + $0x18] sm:$0xff] %v4541_v37  ;;  %v4532_v17 = vadd.f32 %v4522_v0, %v4311_v32  ;;  %v4506_v53 = vmul.f32 %v8153_v63, %v4474_v34  ;;  %v4312_v12 = vadd.f32 %v8160_v56, %v4295_v62  ;;  %v4279_v42 = vadd.f32 %v4258_v52, %v4089_v61 }
 0x321   : > { %v6096_v7 = vpop.f32.mrf.mxu1  ;;  %v6129_v13 = vpop.f32.mrf.mxu0 }
 0x322   : > { %v4542_v14 = vmax.f32 %v4532_v17, 0.0  ;;  %v4523_v60 = vadd.f32 %v8165_v30, %v4506_v53  ;;  %v4296_v1 = vmul.f32 %v8148_v10, %v4279_v42 }
 0x323   : > { %v4261_v41 = vpop.f32.mrf.mxu1 }
 0x324   : > { %4552 = vst [vmem:[%s8177_s14 + $0x20] sm:$0xff] %v4542_v14  ;;  %v4533_v57 = vadd.f32 %v4523_v60, %v4312_v12  ;;  %v4280_v19 = vadd.f32 %v4261_v41, %v4090_v5  ;;  %v4313_v44 = vadd.f32 %v8160_v56, %v4296_v1 }
 0x325   : > { %v6097_v4 = vpop.f32.mrf.mxu1 }
 0x326   : > { %v4543_v25 = vmax.f32 %v4533_v57, 0.0  ;;  %v4297_v38 = vmul.f32 %v8148_v10, %v4280_v19 }
 0x327   : > { %v4266_v48 = vpop.f32.mrf.mxu1 }
 0x328   : > { %4553 = vst [vmem:[%s8177_s14 + $0x28] sm:$0xff] %v4543_v25  ;;  %v4281_v11 = vadd.f32 %v4266_v48, %v4091_v3  ;;  %v4314_v6 = vadd.f32 %v8160_v56, %v4297_v38 }
 0x329   : > { %v6100_v58 = vpop.f32.mrf.mxu1 }
 0x32a   : > { %v4298_v55 = vmul.f32 %v8148_v10, %v4281_v11 }
 0x32b   : > { %v4269_v40 = vpop.f32.mrf.mxu1 }
 0x32c   : > { %v4282_v50 = vadd.f32 %v4269_v40, %v4092_v54  ;;  %v4315_v59 = vadd.f32 %v8160_v56, %v4298_v55 }
 0x32d   : > { %v6101_v26 = vpop.f32.mrf.mxu1 }
 0x32e   : > { %v4299_v31 = vmul.f32 %v8148_v10, %v4282_v50 }
 0x32f   : > { %v4479_v15 = vpop.f32.mrf.mxu1 }
 0x330   : > { %v4507_v18 = vmul.f32 %v8153_v63, %v4479_v15  ;;  %v4316_v32 = vadd.f32 %v8160_v56, %v4299_v31 }
 0x331   : > { %v6132_v20 = vpop.f32.mrf.mxu1 }
 0x332   : > { %v4524_v21 = vadd.f32 %v8165_v30, %v4507_v18 }
 0x333   : > { %v4482_v22 = vpop.f32.mrf.mxu1 }
 0x334   : > { %v4534_v46 = vadd.f32 %v4524_v21, %v4313_v44  ;;  %v4508_v45 = vmul.f32 %v8153_v63, %v4482_v22 }
 0x335   : > { %v6133_v2 = vpop.f32.mrf.mxu1 }
 0x336   : > { %v4544_v27 = vmax.f32 %v4534_v46, 0.0  ;;  %v4525_v9 = vadd.f32 %v8165_v30, %v4508_v45 }
 0x337   : > { %v4487_v47 = vpop.f32.mrf.mxu1 }
 0x338   : > { %4554 = vst [vmem:[%s8177_s14 + $0x30] sm:$0xff] %v4544_v27  ;;  %v4535_v43 = vadd.f32 %v4525_v9, %v4314_v6  ;;  %v4509_v36 = vmul.f32 %v8153_v63, %v4487_v47 }
 0x339   : > { %v6136_v8 = vpop.f32.mrf.mxu1 }
 0x33a   : > { %v4545_v29 = vmax.f32 %v4535_v43, 0.0  ;;  %v4526_v39 = vadd.f32 %v8165_v30, %v4509_v36 }
 0x33b   : > { %v4490_v49 = vpop.f32.mrf.mxu1 }
 0x33c   : > { %4555 = vst [vmem:[%s8177_s14 + $0x38] sm:$0xff] %v4545_v29  ;;  %v4536_v24 = vadd.f32 %v4526_v39, %v4315_v59  ;;  %v4510_v23 = vmul.f32 %v8153_v63, %v4490_v49 }
 0x33d   : > { %v6137_v33 = vpop.f32.mrf.mxu1 }
 0x33e   : > { %v4546_v37 = vmax.f32 %v4536_v24, 0.0  ;;  %v4527_v62 = vadd.f32 %v8165_v30, %v4510_v23 }
 0x340   : > { %4556 = vst [vmem:[%s8177_s14 + $0x40] sm:$0xff] %v4546_v37  ;;  %v4537_v0 = vadd.f32 %v4527_v62, %v4316_v32 }
 0x342   : > { %v4547_v52 = vmax.f32 %v4537_v0, 0.0 }
 0x344   : > { %4557 = vst [vmem:[%s8177_s14 + $0x48] sm:$0xff] %v4547_v52 }
 0x345 PF: > { %s20_s13 = sadd.s32 1, %s6421_s13  }
 0x346   : > { %p17_p4 = scmp.ge.s32.totalorder %s20_s13, 4  }
 0x348   :  { %19 = sbr.rel (!%p17_p4) target bundleno = 1 (0x1), region = 109 }

</bundles_post_ra>
